<compile_context>
chip_gen: v6e
topology: v6e:2x2x1
jax: 0.10.0
libtpu: 0.0.40
codegen_flags: <defaults>
</compile_context>

<pallas_src>
import functools
import math

import numpy as np
import jax
import jax.numpy as jnp
from jax import lax
from jax.experimental import pallas as pl
from jax.experimental.pallas import tpu as pltpu

# ----------------------------- attack hyper-params ---------------------------
EPSILON = 0.1
NUM_STEPS = 5
STEP_SIZE = 0.05
NUM_BARS = 4
BAR_WIDTH = 3
GREY = 0.5  # grey = [0.5, 0.5, 0.5] (same value for every channel)

# ----------------------------- problem sizes --------------------------------
B, C, H, W = 2, 3, 16, 16     # small NCHW batch (C=3 required by grey.view(1,3,1))
D = C * H * W                 # 768  (multiple of 128 -> lane friendly)
K = 10                        # number of classes of the linear model
KP = 128                      # class axis padded to a full lane tile


def build_bar_mask(height, width, num_bars, bar_width):
    """Exactly reproduces get_bar_variables' mask construction (H, W) bool."""
    start = (width // num_bars) // 2
    stop = width - (width // num_bars) // 2
    step = width // num_bars
    bar_locations = np.arange(start, stop, step)
    xx = np.broadcast_to(np.arange(width)[None, :], (height, width))  # indexing='xy'
    mask = np.zeros((height, width), dtype=bool)
    for b in bar_locations:
        mask |= (b - bar_width // 2 <= xx) & (xx <= b + bar_width // 2)
    return mask


# ------------------------------- Pallas kernel -------------------------------
def prison_kernel(x_ref, mask_ref, w_ref, wt_ref, b_ref, onehot_ref, out_ref,
                  *, num_steps, step_size, epsilon):
    x = x_ref[...]               # (bb, D)   original images, flattened NCHW
    mask = mask_ref[...]         # (1, D)    bar mask as float {0, 1}
    w = w_ref[...]               # (D, KP)   linear model weight (K padded to 128)
    wt = wt_ref[...]             # (KP, D)   transpose of the SAME padded weight
    bias = b_ref[...]            # (1, KP)   padded classes carry -1e30 bias
    onehot = onehot_ref[...]     # (bb, KP)  one-hot targets, zero in padding

    # add_bars: set masked pixels to grey (0.5) in every channel.
    x0 = jnp.where(mask > 0.5, GREY, x)

    # Hoisted forward pass of the bar-free image: logits are affine in bar, so
    # per step we only need the matmul of the (masked) bar variables.
    base_logits = jnp.dot(x0, w, preferred_element_type=jnp.float32) + bias

    def step(_, bar):
        # bar is kept exactly zero off-mask (the update is masked below), so
        # `bar` here already equals `bar * mask` from the reference.
        logits = base_logits + jnp.dot(bar, w, preferred_element_type=jnp.float32)
        # softmax over the 128-lane-padded class axis (padded logits = -1e30
        # -> exp underflows to exactly 0, so probabilities are unchanged).
        m = jnp.max(logits, axis=-1, keepdims=True)
        e = jnp.exp(logits - m)
        p = e * pl.reciprocal(jnp.sum(e, axis=-1, keepdims=True), approx=False)
        # dL/dlogits for mean-reduced cross-entropy is (p - onehot) / B; the
        # positive 1/B scale is dropped because only the sign is used.
        g_adv = jnp.dot(p - onehot, wt, preferred_element_type=jnp.float32)
        g_bar = g_adv * mask
        # fused step_size * sign(g_bar): zero gradient (incl. off-mask) -> 0.
        delta = jnp.where(g_bar > 0.0, step_size,
                          jnp.where(g_bar < 0.0, -step_size, 0.0))
        # signed gradient ascent step + clamp to [0, epsilon]
        return jnp.clip(bar + delta, 0.0, epsilon)

    bar = lax.fori_loop(0, num_steps, step, jnp.zeros_like(x), unroll=True)
    out_ref[...] = x0 + bar * mask


def _batch_block(batch):
    """Pick a sublane-friendly batch block so large batches shard over cores."""
    if batch <= 8 or batch % 8 != 0:
        return batch                      # tiny/ragged batch: one grid step
    for cand in (128, 64, 32, 16, 8):
        if batch % cand == 0:
            return cand
    return batch


def prison_attack(x_flat, mask_f, w, b, onehot):
    batch, d = x_flat.shape
    k = w.shape[1]
    kp = max(128, ((k + 127) // 128) * 128)

    # Lane-pad the class axis: zero weight columns / onehot entries, -1e30 bias
    # so padded classes get exactly zero softmax probability.  W^T is derived
    # from the same padded array so the two matmuls can never drift apart.
    w_pad = jnp.zeros((d, kp), jnp.float32).at[:, :k].set(w)
    wt_pad = w_pad.T
    b_pad = jnp.full((1, kp), -1e30, jnp.float32).at[0, :k].set(b)
    onehot_pad = jnp.zeros((batch, kp), jnp.float32).at[:, :k].set(onehot)

    bb = _batch_block(batch)
    grid = (batch // bb,)

    kern = functools.partial(
        prison_kernel,
        num_steps=NUM_STEPS, step_size=STEP_SIZE, epsilon=EPSILON)

    grid_spec = pltpu.PrefetchScalarGridSpec(
        num_scalar_prefetch=0,
        grid=grid,
        in_specs=[
            pl.BlockSpec((bb, d), lambda i: (i, 0)),    # x (per-batch block)
            pl.BlockSpec((1, d), lambda i: (0, 0)),     # bar mask
            pl.BlockSpec((d, kp), lambda i: (0, 0)),    # W  (padded)
            pl.BlockSpec((kp, d), lambda i: (0, 0)),    # W^T (padded)
            pl.BlockSpec((1, kp), lambda i: (0, 0)),    # bias (padded)
            pl.BlockSpec((bb, kp), lambda i: (i, 0)),   # one-hot targets
        ],
        out_specs=pl.BlockSpec((bb, d), lambda i: (i, 0)),
    )
    return pl.pallas_call(
        kern,
        out_shape=jax.ShapeDtypeStruct((batch, d), jnp.float32),
        grid_spec=grid_spec,
        compiler_params=pltpu.CompilerParams(
            dimension_semantics=("parallel",)),
    )(x_flat, mask_f, w_pad, wt_pad, b_pad, onehot_pad)


# ----------------------------- pure-JAX reference ----------------------------
def prison_reference(x_flat, mask_f, w, b, onehot):
    x0 = jnp.where(mask_f > 0.5, GREY, x_flat)
    bar = jnp.zeros_like(x_flat)
    for _ in range(NUM_STEPS):
        adv = x0 + bar * mask_f
        logits = adv @ w + b[None, :]
        p = jax.nn.softmax(logits, axis=-1)
        g_logits = (p - onehot) / x_flat.shape[0]
        g_bar = (g_logits @ w.T) * mask_f
        bar = jnp.clip(bar + STEP_SIZE * jnp.sign(g_bar), 0.0, EPSILON)
    return x0 + bar * mask_f


if __name__ == "__main__":
    key = jax.random.PRNGKey(0)
    k_x, k_w, k_b, k_t = jax.random.split(key, 4)

    # deterministic inputs / parameters
    inputs = jax.random.uniform(k_x, (B, C, H, W), dtype=jnp.float32)      # NCHW
    targets = jax.random.randint(k_t, (B,), 0, K)
    # TODO(synk): the original module attacks an arbitrary `model`; here it is
    # instantiated as a fixed linear classifier so the backward pass is analytic.
    w = (jax.random.normal(k_w, (D, K), dtype=jnp.float32)
         * (1.0 / math.sqrt(D)))
    bias = jax.random.normal(k_b, (K,), dtype=jnp.float32) * 0.01

    # bar mask (H, W) -> broadcast over channels -> flattened NCHW order
    mask_hw = build_bar_mask(H, W, NUM_BARS, BAR_WIDTH)                    # (H, W) bool
    mask_chw = np.broadcast_to(mask_hw[None, :, :], (C, H, W))
    mask_f = jnp.asarray(mask_chw.reshape(1, D).astype(np.float32))

    x_flat = inputs.reshape(B, D)
    onehot = jax.nn.one_hot(targets, K, dtype=jnp.float32)

    adv_flat = prison_attack(x_flat, mask_f, w, bias, onehot)
    adv_flat = jax.block_until_ready(adv_flat)
    adv_images = adv_flat.reshape(B, C, H, W)                              # back to NCHW

    # correctness check against the pure-JAX reference
    ref = prison_reference(x_flat, mask_f, w, bias, onehot)
    np.testing.assert_allclose(np.asarray(adv_flat), np.asarray(ref),
                               rtol=1e-5, atol=1e-5)
    assert adv_images.shape == (B, C, H, W)
    print("KERNEL_OK")
</pallas_src>

<mosaic_0001>
module attributes {stable_mosaic.version = 11 : i64} {
  func.func @prison_kernel(%arg0: i32, %arg1: memref<2x768xf32, #tpu.memory_space<vmem>>, %arg2: memref<1x768xf32, #tpu.memory_space<vmem>>, %arg3: memref<768x128xf32, #tpu.memory_space<vmem>>, %arg4: memref<128x768xf32, #tpu.memory_space<vmem>>, %arg5: memref<1x128xf32, #tpu.memory_space<vmem>>, %arg6: memref<2x128xf32, #tpu.memory_space<vmem>>, %arg7: memref<2x768xf32, #tpu.memory_space<vmem>>) attributes {dimension_semantics = [#tpu.dimension_semantics<parallel>], iteration_bounds = array<i64: 1>, scalar_prefetch = 0 : i64, scratch_operands = 0 : i64, tpu.core_type = #tpu.core_type<tc>, window_params = [{transform_indices = @transform_0, window_bounds = array<i64: 2, 768>}, {pipeline_mode = #tpu.pipeline_mode<synchronous>, transform_indices = @transform_1, window_bounds = array<i64: 1, 768>}, {pipeline_mode = #tpu.pipeline_mode<synchronous>, transform_indices = @transform_2, window_bounds = array<i64: 768, 128>}, {pipeline_mode = #tpu.pipeline_mode<synchronous>, transform_indices = @transform_3, window_bounds = array<i64: 128, 768>}, {pipeline_mode = #tpu.pipeline_mode<synchronous>, transform_indices = @transform_4, window_bounds = array<i64: 1, 128>}, {transform_indices = @transform_5, window_bounds = array<i64: 2, 128>}, {transform_indices = @transform_6, window_bounds = array<i64: 2, 768>}]} {
    %c0 = arith.constant 0 : index
    %c0_0 = arith.constant 0 : index
    %0 = vector.load %arg1[%c0, %c0_0] : memref<2x768xf32, #tpu.memory_space<vmem>>, vector<2x768xf32>
    %c0_1 = arith.constant 0 : index
    %c0_2 = arith.constant 0 : index
    %1 = vector.load %arg2[%c0_1, %c0_2] : memref<1x768xf32, #tpu.memory_space<vmem>>, vector<1x768xf32>
    %c0_3 = arith.constant 0 : index
    %c0_4 = arith.constant 0 : index
    %2 = vector.load %arg3[%c0_3, %c0_4] : memref<768x128xf32, #tpu.memory_space<vmem>>, vector<768x128xf32>
    %c0_5 = arith.constant 0 : index
    %c0_6 = arith.constant 0 : index
    %3 = vector.load %arg4[%c0_5, %c0_6] : memref<128x768xf32, #tpu.memory_space<vmem>>, vector<128x768xf32>
    %c0_7 = arith.constant 0 : index
    %c0_8 = arith.constant 0 : index
    %4 = vector.load %arg5[%c0_7, %c0_8] : memref<1x128xf32, #tpu.memory_space<vmem>>, vector<1x128xf32>
    %c0_9 = arith.constant 0 : index
    %c0_10 = arith.constant 0 : index
    %5 = vector.load %arg6[%c0_9, %c0_10] : memref<2x128xf32, #tpu.memory_space<vmem>>, vector<2x128xf32>
    %cst = arith.constant 5.000000e-01 : f32
    %6 = vector.broadcast %cst : f32 to vector<1x768xf32>
    %7 = arith.cmpf ogt, %1, %6 : vector<1x768xf32>
    %cst_11 = arith.constant 5.000000e-01 : f32
    %8 = vector.shape_cast %7 : vector<1x768xi1> to vector<1x768xi1>
    %9 = vector.broadcast %8 : vector<1x768xi1> to vector<2x768xi1>
    %10 = vector.broadcast %cst_11 : f32 to vector<2x768xf32>
    %11 = arith.select %9, %10, %0 : vector<2x768xi1>, vector<2x768xf32>
    %cst_12 = arith.constant dense<0.000000e+00> : vector<2x128xf32>
    %12 = tpu.matmul %11, %2, %cst_12 {dimension_numbers = #tpu.dot_dimension_numbers<[1], [0], [0], [1], [0, 0, 1, 1], [], []>} : vector<2x768xf32>, vector<768x128xf32>, vector<2x128xf32> -> vector<2x128xf32>
    %13 = vector.broadcast %4 : vector<1x128xf32> to vector<2x128xf32>
    %14 = arith.addf %12, %13 : vector<2x128xf32>
    %cst_13 = arith.constant 0.000000e+00 : f32
    %15 = vector.broadcast %cst_13 : f32 to vector<2x768xf32>
    %c0_i32 = arith.constant 0 : i32
    %cst_14 = arith.constant dense<0.000000e+00> : vector<2x128xf32>
    %16 = tpu.matmul %15, %2, %cst_14 {dimension_numbers = #tpu.dot_dimension_numbers<[1], [0], [0], [1], [0, 0, 1, 1], [], []>} : vector<2x768xf32>, vector<768x128xf32>, vector<2x128xf32> -> vector<2x128xf32>
    %17 = arith.addf %14, %16 : vector<2x128xf32>
    %cst_15 = arith.constant dense<0xFF800000> : vector<2xf32>
    %18 = vector.multi_reduction <maximumf>, %17, %cst_15 [1] : vector<2x128xf32> to vector<2xf32>
    %19 = vector.shape_cast %18 : vector<2xf32> to vector<2x1xf32>
    %20 = vector.broadcast %19 : vector<2x1xf32> to vector<2x128xf32>
    %21 = arith.subf %17, %20 : vector<2x128xf32>
    %22 = math.exp %21 : vector<2x128xf32>
    %cst_16 = arith.constant dense<0.000000e+00> : vector<2xf32>
    %23 = vector.multi_reduction <add>, %22, %cst_16 [1] : vector<2x128xf32> to vector<2xf32>
    %24 = vector.shape_cast %23 : vector<2xf32> to vector<2x1xf32>
    %25 = tpu.reciprocal %24 : vector<2x1xf32> -> vector<2x1xf32>
    %26 = vector.broadcast %25 : vector<2x1xf32> to vector<2x128xf32>
    %27 = arith.mulf %22, %26 : vector<2x128xf32>
    %28 = arith.subf %27, %5 : vector<2x128xf32>
    %cst_17 = arith.constant dense<0.000000e+00> : vector<2x768xf32>
    %29 = tpu.matmul %28, %3, %cst_17 {dimension_numbers = #tpu.dot_dimension_numbers<[1], [0], [0], [1], [0, 0, 1, 1], [], []>} : vector<2x128xf32>, vector<128x768xf32>, vector<2x768xf32> -> vector<2x768xf32>
    %30 = vector.broadcast %1 : vector<1x768xf32> to vector<2x768xf32>
    %31 = arith.mulf %29, %30 : vector<2x768xf32>
    %cst_18 = arith.constant 0.000000e+00 : f32
    %32 = vector.broadcast %cst_18 : f32 to vector<2x768xf32>
    %33 = arith.cmpf ogt, %31, %32 : vector<2x768xf32>
    %cst_19 = arith.constant 0.000000e+00 : f32
    %34 = vector.broadcast %cst_19 : f32 to vector<2x768xf32>
    %35 = arith.cmpf olt, %31, %34 : vector<2x768xf32>
    %cst_20 = arith.constant -5.000000e-02 : f32
    %cst_21 = arith.constant 0.000000e+00 : f32
    %36 = vector.broadcast %cst_20 : f32 to vector<2x768xf32>
    %37 = vector.broadcast %cst_21 : f32 to vector<2x768xf32>
    %38 = arith.select %35, %36, %37 : vector<2x768xi1>, vector<2x768xf32>
    %cst_22 = arith.constant 5.000000e-02 : f32
    %39 = vector.broadcast %cst_22 : f32 to vector<2x768xf32>
    %40 = arith.select %33, %39, %38 : vector<2x768xi1>, vector<2x768xf32>
    %41 = arith.addf %15, %40 : vector<2x768xf32>
    %cst_23 = arith.constant 0.000000e+00 : f32
    %cst_24 = arith.constant 1.000000e-01 : f32
    %42 = vector.broadcast %cst_23 : f32 to vector<2x768xf32>
    %43 = arith.maximumf %42, %41 : vector<2x768xf32>
    %44 = vector.broadcast %cst_24 : f32 to vector<2x768xf32>
    %45 = arith.minimumf %44, %43 : vector<2x768xf32>
    %c1_i32 = arith.constant 1 : i32
    %cst_25 = arith.constant dense<0.000000e+00> : vector<2x128xf32>
    %46 = tpu.matmul %45, %2, %cst_25 {dimension_numbers = #tpu.dot_dimension_numbers<[1], [0], [0], [1], [0, 0, 1, 1], [], []>} : vector<2x768xf32>, vector<768x128xf32>, vector<2x128xf32> -> vector<2x128xf32>
    %47 = arith.addf %14, %46 : vector<2x128xf32>
    %cst_26 = arith.constant dense<0xFF800000> : vector<2xf32>
    %48 = vector.multi_reduction <maximumf>, %47, %cst_26 [1] : vector<2x128xf32> to vector<2xf32>
    %49 = vector.shape_cast %48 : vector<2xf32> to vector<2x1xf32>
    %50 = vector.broadcast %49 : vector<2x1xf32> to vector<2x128xf32>
    %51 = arith.subf %47, %50 : vector<2x128xf32>
    %52 = math.exp %51 : vector<2x128xf32>
    %cst_27 = arith.constant dense<0.000000e+00> : vector<2xf32>
    %53 = vector.multi_reduction <add>, %52, %cst_27 [1] : vector<2x128xf32> to vector<2xf32>
    %54 = vector.shape_cast %53 : vector<2xf32> to vector<2x1xf32>
    %55 = tpu.reciprocal %54 : vector<2x1xf32> -> vector<2x1xf32>
    %56 = vector.broadcast %55 : vector<2x1xf32> to vector<2x128xf32>
    %57 = arith.mulf %52, %56 : vector<2x128xf32>
    %58 = arith.subf %57, %5 : vector<2x128xf32>
    %cst_28 = arith.constant dense<0.000000e+00> : vector<2x768xf32>
    %59 = tpu.matmul %58, %3, %cst_28 {dimension_numbers = #tpu.dot_dimension_numbers<[1], [0], [0], [1], [0, 0, 1, 1], [], []>} : vector<2x128xf32>, vector<128x768xf32>, vector<2x768xf32> -> vector<2x768xf32>
    %60 = vector.broadcast %1 : vector<1x768xf32> to vector<2x768xf32>
    %61 = arith.mulf %59, %60 : vector<2x768xf32>
    %cst_29 = arith.constant 0.000000e+00 : f32
    %62 = vector.broadcast %cst_29 : f32 to vector<2x768xf32>
    %63 = arith.cmpf ogt, %61, %62 : vector<2x768xf32>
    %cst_30 = arith.constant 0.000000e+00 : f32
    %64 = vector.broadcast %cst_30 : f32 to vector<2x768xf32>
    %65 = arith.cmpf olt, %61, %64 : vector<2x768xf32>
    %cst_31 = arith.constant -5.000000e-02 : f32
    %cst_32 = arith.constant 0.000000e+00 : f32
    %66 = vector.broadcast %cst_31 : f32 to vector<2x768xf32>
    %67 = vector.broadcast %cst_32 : f32 to vector<2x768xf32>
    %68 = arith.select %65, %66, %67 : vector<2x768xi1>, vector<2x768xf32>
    %cst_33 = arith.constant 5.000000e-02 : f32
    %69 = vector.broadcast %cst_33 : f32 to vector<2x768xf32>
    %70 = arith.select %63, %69, %68 : vector<2x768xi1>, vector<2x768xf32>
    %71 = arith.addf %45, %70 : vector<2x768xf32>
    %cst_34 = arith.constant 0.000000e+00 : f32
    %cst_35 = arith.constant 1.000000e-01 : f32
    %72 = vector.broadcast %cst_34 : f32 to vector<2x768xf32>
    %73 = arith.maximumf %72, %71 : vector<2x768xf32>
    %74 = vector.broadcast %cst_35 : f32 to vector<2x768xf32>
    %75 = arith.minimumf %74, %73 : vector<2x768xf32>
    %c2_i32 = arith.constant 2 : i32
    %cst_36 = arith.constant dense<0.000000e+00> : vector<2x128xf32>
    %76 = tpu.matmul %75, %2, %cst_36 {dimension_numbers = #tpu.dot_dimension_numbers<[1], [0], [0], [1], [0, 0, 1, 1], [], []>} : vector<2x768xf32>, vector<768x128xf32>, vector<2x128xf32> -> vector<2x128xf32>
    %77 = arith.addf %14, %76 : vector<2x128xf32>
    %cst_37 = arith.constant dense<0xFF800000> : vector<2xf32>
    %78 = vector.multi_reduction <maximumf>, %77, %cst_37 [1] : vector<2x128xf32> to vector<2xf32>
    %79 = vector.shape_cast %78 : vector<2xf32> to vector<2x1xf32>
    %80 = vector.broadcast %79 : vector<2x1xf32> to vector<2x128xf32>
    %81 = arith.subf %77, %80 : vector<2x128xf32>
    %82 = math.exp %81 : vector<2x128xf32>
    %cst_38 = arith.constant dense<0.000000e+00> : vector<2xf32>
    %83 = vector.multi_reduction <add>, %82, %cst_38 [1] : vector<2x128xf32> to vector<2xf32>
    %84 = vector.shape_cast %83 : vector<2xf32> to vector<2x1xf32>
    %85 = tpu.reciprocal %84 : vector<2x1xf32> -> vector<2x1xf32>
    %86 = vector.broadcast %85 : vector<2x1xf32> to vector<2x128xf32>
    %87 = arith.mulf %82, %86 : vector<2x128xf32>
    %88 = arith.subf %87, %5 : vector<2x128xf32>
    %cst_39 = arith.constant dense<0.000000e+00> : vector<2x768xf32>
    %89 = tpu.matmul %88, %3, %cst_39 {dimension_numbers = #tpu.dot_dimension_numbers<[1], [0], [0], [1], [0, 0, 1, 1], [], []>} : vector<2x128xf32>, vector<128x768xf32>, vector<2x768xf32> -> vector<2x768xf32>
    %90 = vector.broadcast %1 : vector<1x768xf32> to vector<2x768xf32>
    %91 = arith.mulf %89, %90 : vector<2x768xf32>
    %cst_40 = arith.constant 0.000000e+00 : f32
    %92 = vector.broadcast %cst_40 : f32 to vector<2x768xf32>
    %93 = arith.cmpf ogt, %91, %92 : vector<2x768xf32>
    %cst_41 = arith.constant 0.000000e+00 : f32
    %94 = vector.broadcast %cst_41 : f32 to vector<2x768xf32>
    %95 = arith.cmpf olt, %91, %94 : vector<2x768xf32>
    %cst_42 = arith.constant -5.000000e-02 : f32
    %cst_43 = arith.constant 0.000000e+00 : f32
    %96 = vector.broadcast %cst_42 : f32 to vector<2x768xf32>
    %97 = vector.broadcast %cst_43 : f32 to vector<2x768xf32>
    %98 = arith.select %95, %96, %97 : vector<2x768xi1>, vector<2x768xf32>
    %cst_44 = arith.constant 5.000000e-02 : f32
    %99 = vector.broadcast %cst_44 : f32 to vector<2x768xf32>
    %100 = arith.select %93, %99, %98 : vector<2x768xi1>, vector<2x768xf32>
    %101 = arith.addf %75, %100 : vector<2x768xf32>
    %cst_45 = arith.constant 0.000000e+00 : f32
    %cst_46 = arith.constant 1.000000e-01 : f32
    %102 = vector.broadcast %cst_45 : f32 to vector<2x768xf32>
    %103 = arith.maximumf %102, %101 : vector<2x768xf32>
    %104 = vector.broadcast %cst_46 : f32 to vector<2x768xf32>
    %105 = arith.minimumf %104, %103 : vector<2x768xf32>
    %c3_i32 = arith.constant 3 : i32
    %cst_47 = arith.constant dense<0.000000e+00> : vector<2x128xf32>
    %106 = tpu.matmul %105, %2, %cst_47 {dimension_numbers = #tpu.dot_dimension_numbers<[1], [0], [0], [1], [0, 0, 1, 1], [], []>} : vector<2x768xf32>, vector<768x128xf32>, vector<2x128xf32> -> vector<2x128xf32>
    %107 = arith.addf %14, %106 : vector<2x128xf32>
    %cst_48 = arith.constant dense<0xFF800000> : vector<2xf32>
    %108 = vector.multi_reduction <maximumf>, %107, %cst_48 [1] : vector<2x128xf32> to vector<2xf32>
    %109 = vector.shape_cast %108 : vector<2xf32> to vector<2x1xf32>
    %110 = vector.broadcast %109 : vector<2x1xf32> to vector<2x128xf32>
    %111 = arith.subf %107, %110 : vector<2x128xf32>
    %112 = math.exp %111 : vector<2x128xf32>
    %cst_49 = arith.constant dense<0.000000e+00> : vector<2xf32>
    %113 = vector.multi_reduction <add>, %112, %cst_49 [1] : vector<2x128xf32> to vector<2xf32>
    %114 = vector.shape_cast %113 : vector<2xf32> to vector<2x1xf32>
    %115 = tpu.reciprocal %114 : vector<2x1xf32> -> vector<2x1xf32>
    %116 = vector.broadcast %115 : vector<2x1xf32> to vector<2x128xf32>
    %117 = arith.mulf %112, %116 : vector<2x128xf32>
    %118 = arith.subf %117, %5 : vector<2x128xf32>
    %cst_50 = arith.constant dense<0.000000e+00> : vector<2x768xf32>
    %119 = tpu.matmul %118, %3, %cst_50 {dimension_numbers = #tpu.dot_dimension_numbers<[1], [0], [0], [1], [0, 0, 1, 1], [], []>} : vector<2x128xf32>, vector<128x768xf32>, vector<2x768xf32> -> vector<2x768xf32>
    %120 = vector.broadcast %1 : vector<1x768xf32> to vector<2x768xf32>
    %121 = arith.mulf %119, %120 : vector<2x768xf32>
    %cst_51 = arith.constant 0.000000e+00 : f32
    %122 = vector.broadcast %cst_51 : f32 to vector<2x768xf32>
    %123 = arith.cmpf ogt, %121, %122 : vector<2x768xf32>
    %cst_52 = arith.constant 0.000000e+00 : f32
    %124 = vector.broadcast %cst_52 : f32 to vector<2x768xf32>
    %125 = arith.cmpf olt, %121, %124 : vector<2x768xf32>
    %cst_53 = arith.constant -5.000000e-02 : f32
    %cst_54 = arith.constant 0.000000e+00 : f32
    %126 = vector.broadcast %cst_53 : f32 to vector<2x768xf32>
    %127 = vector.broadcast %cst_54 : f32 to vector<2x768xf32>
    %128 = arith.select %125, %126, %127 : vector<2x768xi1>, vector<2x768xf32>
    %cst_55 = arith.constant 5.000000e-02 : f32
    %129 = vector.broadcast %cst_55 : f32 to vector<2x768xf32>
    %130 = arith.select %123, %129, %128 : vector<2x768xi1>, vector<2x768xf32>
    %131 = arith.addf %105, %130 : vector<2x768xf32>
    %cst_56 = arith.constant 0.000000e+00 : f32
    %cst_57 = arith.constant 1.000000e-01 : f32
    %132 = vector.broadcast %cst_56 : f32 to vector<2x768xf32>
    %133 = arith.maximumf %132, %131 : vector<2x768xf32>
    %134 = vector.broadcast %cst_57 : f32 to vector<2x768xf32>
    %135 = arith.minimumf %134, %133 : vector<2x768xf32>
    %c4_i32 = arith.constant 4 : i32
    %cst_58 = arith.constant dense<0.000000e+00> : vector<2x128xf32>
    %136 = tpu.matmul %135, %2, %cst_58 {dimension_numbers = #tpu.dot_dimension_numbers<[1], [0], [0], [1], [0, 0, 1, 1], [], []>} : vector<2x768xf32>, vector<768x128xf32>, vector<2x128xf32> -> vector<2x128xf32>
    %137 = arith.addf %14, %136 : vector<2x128xf32>
    %cst_59 = arith.constant dense<0xFF800000> : vector<2xf32>
    %138 = vector.multi_reduction <maximumf>, %137, %cst_59 [1] : vector<2x128xf32> to vector<2xf32>
    %139 = vector.shape_cast %138 : vector<2xf32> to vector<2x1xf32>
    %140 = vector.broadcast %139 : vector<2x1xf32> to vector<2x128xf32>
    %141 = arith.subf %137, %140 : vector<2x128xf32>
    %142 = math.exp %141 : vector<2x128xf32>
    %cst_60 = arith.constant dense<0.000000e+00> : vector<2xf32>
    %143 = vector.multi_reduction <add>, %142, %cst_60 [1] : vector<2x128xf32> to vector<2xf32>
    %144 = vector.shape_cast %143 : vector<2xf32> to vector<2x1xf32>
    %145 = tpu.reciprocal %144 : vector<2x1xf32> -> vector<2x1xf32>
    %146 = vector.broadcast %145 : vector<2x1xf32> to vector<2x128xf32>
    %147 = arith.mulf %142, %146 : vector<2x128xf32>
    %148 = arith.subf %147, %5 : vector<2x128xf32>
    %cst_61 = arith.constant dense<0.000000e+00> : vector<2x768xf32>
    %149 = tpu.matmul %148, %3, %cst_61 {dimension_numbers = #tpu.dot_dimension_numbers<[1], [0], [0], [1], [0, 0, 1, 1], [], []>} : vector<2x128xf32>, vector<128x768xf32>, vector<2x768xf32> -> vector<2x768xf32>
    %150 = vector.broadcast %1 : vector<1x768xf32> to vector<2x768xf32>
    %151 = arith.mulf %149, %150 : vector<2x768xf32>
    %cst_62 = arith.constant 0.000000e+00 : f32
    %152 = vector.broadcast %cst_62 : f32 to vector<2x768xf32>
    %153 = arith.cmpf ogt, %151, %152 : vector<2x768xf32>
    %cst_63 = arith.constant 0.000000e+00 : f32
    %154 = vector.broadcast %cst_63 : f32 to vector<2x768xf32>
    %155 = arith.cmpf olt, %151, %154 : vector<2x768xf32>
    %cst_64 = arith.constant -5.000000e-02 : f32
    %cst_65 = arith.constant 0.000000e+00 : f32
    %156 = vector.broadcast %cst_64 : f32 to vector<2x768xf32>
    %157 = vector.broadcast %cst_65 : f32 to vector<2x768xf32>
    %158 = arith.select %155, %156, %157 : vector<2x768xi1>, vector<2x768xf32>
    %cst_66 = arith.constant 5.000000e-02 : f32
    %159 = vector.broadcast %cst_66 : f32 to vector<2x768xf32>
    %160 = arith.select %153, %159, %158 : vector<2x768xi1>, vector<2x768xf32>
    %161 = arith.addf %135, %160 : vector<2x768xf32>
    %cst_67 = arith.constant 0.000000e+00 : f32
    %cst_68 = arith.constant 1.000000e-01 : f32
    %162 = vector.broadcast %cst_67 : f32 to vector<2x768xf32>
    %163 = arith.maximumf %162, %161 : vector<2x768xf32>
    %164 = vector.broadcast %cst_68 : f32 to vector<2x768xf32>
    %165 = arith.minimumf %164, %163 : vector<2x768xf32>
    %166 = vector.broadcast %1 : vector<1x768xf32> to vector<2x768xf32>
    %167 = arith.mulf %165, %166 : vector<2x768xf32>
    %168 = arith.addf %11, %167 : vector<2x768xf32>
    %c0_69 = arith.constant 0 : index
    %c0_70 = arith.constant 0 : index
    %169 = vector.load %arg7[%c0_69, %c0_70] : memref<2x768xf32, #tpu.memory_space<vmem>>, vector<2x768xf32>
    tpu.vector_store %arg7[%c0_69, %c0_70], %168 {strides = array<i32>} : memref<2x768xf32, #tpu.memory_space<vmem>>, vector<2x768xf32>,
    return
  }
  func.func @transform_0(%arg0: i32) -> (i32, i32) {
    %c0_i32 = arith.constant 0 : i32
    %c0_i32_0 = arith.constant 0 : i32
    return %arg0, %c0_i32 : i32, i32
  }
  func.func @transform_1(%arg0: i32) -> (i32, i32) {
    %c0_i32 = arith.constant 0 : i32
    %c0_i32_0 = arith.constant 0 : i32
    %c0_i32_1 = arith.constant 0 : i32
    return %c0_i32, %c0_i32_0 : i32, i32
  }
  func.func @transform_2(%arg0: i32) -> (i32, i32) {
    %c0_i32 = arith.constant 0 : i32
    %c0_i32_0 = arith.constant 0 : i32
    %c0_i32_1 = arith.constant 0 : i32
    return %c0_i32, %c0_i32_0 : i32, i32
  }
  func.func @transform_3(%arg0: i32) -> (i32, i32) {
    %c0_i32 = arith.constant 0 : i32
    %c0_i32_0 = arith.constant 0 : i32
    %c0_i32_1 = arith.constant 0 : i32
    return %c0_i32, %c0_i32_0 : i32, i32
  }
  func.func @transform_4(%arg0: i32) -> (i32, i32) {
    %c0_i32 = arith.constant 0 : i32
    %c0_i32_0 = arith.constant 0 : i32
    %c0_i32_1 = arith.constant 0 : i32
    return %c0_i32, %c0_i32_0 : i32, i32
  }
  func.func @transform_5(%arg0: i32) -> (i32, i32) {
    %c0_i32 = arith.constant 0 : i32
    %c0_i32_0 = arith.constant 0 : i32
    return %arg0, %c0_i32 : i32, i32
  }
  func.func @transform_6(%arg0: i32) -> (i32, i32) {
    %c0_i32 = arith.constant 0 : i32
    %c0_i32_0 = arith.constant 0 : i32
    return %arg0, %c0_i32 : i32, i32
  }
}

</mosaic_0001>

<bundles_post_ra>
// kernel: tpu_custom_call.1
= control target key start
LH: loop header
LB: loop body
LE: loop exit
PB: predicated region body
PF: predicated region fallthrough
CT: control target
= control target key end

     0   :  { %11 = vsyncpa [#allocation3], 0  ;;  %s6410_s0 = inlined_call_operand.hbm [shape: f32[2,768], index: 0, kind: input, shape index: {}]   ;;  %s6411_s1 = inlined_call_operand.hbm [shape: f32[1,768], index: 1, kind: input, shape index: {}]   ;;  %s6412_s2 = inlined_call_operand.hbm [shape: f32[768,128], index: 2, kind: input, shape index: {}]   ;;  %s6413_s3 = inlined_call_operand.hbm [shape: f32[128,768], index: 3, kind: input, shape index: {}]   ;;  %s6414_s4 = inlined_call_operand.vmem [shape: f32[1,128], index: 4, kind: input, shape index: {}]   ;;  %s6415_s5 = inlined_call_operand.vmem [shape: f32[2,128], index: 5, kind: input, shape index: {}]   ;;  %s6416_s6 = inlined_call_operand.hbm [shape: f32[2,768], index: 6, kind: output, shape index: {}]  }
   0x1   :  { %12 = vsyncpa [#allocation6], 0 }
   0x2   :  { %13 = vsyncpa [#allocation9], 0 }
   0x3   :  { %14 = vsyncpa [#allocation4], 0  ;;  %s4235_s21 = smov [#allocation5]   ;;  %s4236_s23 = smov [#allocation2]  }
   0x4   :  { %s31_s22 = sshll.u32 %s4235_s21, 4  ;;  %s21_s24 = sshll.u32 %s4236_s23, 4  ;;  %s32_s22 = int_to_ptr.vmem [resolvable:$true] %s31_s22  ;;  %s22_s24 = int_to_ptr.vmem [resolvable:$true] %s21_s24 }
   0x5   :  { %s4135_s25 = scalar_lea.vmem %s32_s22, 96  ;;  %p4140_p1 = scmp.lt.s32.totalorder %s32_s22, %s32_s22 }
   0x6   :  { %p4136_p0 = scmp.ne.s32.totalorder %s32_s22, %s4135_s25  ;;  %p4141_p2 = scmp.lt.s32.totalorder %s4135_s25, %s4135_s25 }
   0x8   :  { %p4142_p3 = por %p4141_p2, %p4140_p1 }
   0xa   :  { %p4143_p4 = pnand %p4142_p3, %p4136_p0 }
   0xc   :  { %4146 = shalt.err (!%p4143_p4)
}
   0xd   :  { %34 = dma.hbm_to_vmem [thread:$0]  %s6411_s1, 96, %s32_s22, [#allocation6]  }
   0xe   :  { %s4155_s28 = scalar_lea.vmem %s22_s24, 192  ;;  %p4160_p6 = scmp.lt.s32.totalorder %s22_s24, %s22_s24 }
   0xf   :  { %p4156_p5 = scmp.ne.s32.totalorder %s22_s24, %s4155_s28  ;;  %p4161_p7 = scmp.lt.s32.totalorder %s4155_s28, %s4155_s28 }
  0x11   :  { %p4162_p8 = por %p4161_p7, %p4160_p6 }
  0x13   :  { %p4163_p9 = pnand %p4162_p8, %p4156_p5 }
  0x15   :  { %4166 = shalt.err (!%p4163_p9)
}
  0x16   :  { %24 = dma.hbm_to_vmem [thread:$0]  %s6410_s0, 192, %s22_s24, [#allocation3]  }
  0x17   :  { %s4237_s7 = smov [#allocation7]  }
  0x18   :  { %s40_s8 = sshll.u32 %s4237_s7, 4  ;;  %s41_s8 = int_to_ptr.vmem [resolvable:$true] %s40_s8 }
  0x19   :  { %s4175_s9 = scalar_lea.vmem %s41_s8, 12288  ;;  %p4180_p11 = scmp.lt.s32.totalorder %s41_s8, %s41_s8 }
  0x1a   :  { %p4176_p10 = scmp.ne.s32.totalorder %s41_s8, %s4175_s9  ;;  %p4181_p12 = scmp.lt.s32.totalorder %s4175_s9, %s4175_s9 }
  0x1c   :  { %p4182_p13 = por %p4181_p12, %p4180_p11 }
  0x1e   :  { %p4183_p0 = pnand %p4182_p13, %p4176_p10 }
  0x20   :  { %4186 = shalt.err (!%p4183_p0)
}
  0x21   :  { %s4238_s1 = smov 128   ;;  %s4239_s10 = smov 8  }
  0x22   :  { %46 = dma.hbm_to_vmem [thread:$0]  %s6412_s2, 12288, %s41_s8, [#allocation6], %s4238_s1, %s4238_s1, %s4239_s10  }
  0x23   :  { %s4240_s13 = smov [#allocation8]  }
  0x24   :  { %s52_s14 = sshll.u32 %s4240_s13, 4  ;;  %s53_s14 = int_to_ptr.vmem [resolvable:$true] %s52_s14 }
  0x25   :  { %s4195_s0 = scalar_lea.vmem %s53_s14, 12288  ;;  %p4200_p2 = scmp.lt.s32.totalorder %s53_s14, %s53_s14 }
  0x26   :  { %p4196_p1 = scmp.ne.s32.totalorder %s53_s14, %s4195_s0  ;;  %p4201_p3 = scmp.lt.s32.totalorder %s4195_s0, %s4195_s0 }
  0x28   :  { %p4202_p4 = por %p4201_p3, %p4200_p2 }
  0x2a   :  { %p4203_p5 = pnand %p4202_p4, %p4196_p1 }
  0x2c   :  { %4206 = shalt.err (!%p4203_p5)
}
  0x2d   :  { %s4241_s15 = smov 768   ;;  %s4242_s16 = smov 48  }
  0x2e   :  { %58 = dma.hbm_to_vmem [thread:$0]  %s6413_s3, 12288, %s53_s14, [#allocation9], %s4241_s15, %s4241_s15, %s4242_s16  }
  0x2f   :  { %4227 = dma.done.wait [#allocation3], 192  }
  0x30   :  { %4228 = vsyncadd [#allocation3], 4294967104 }
  0x31   :  { %4229 = dma.done.wait [#allocation6], 12384  }
  0x32   :  { %4230 = vsyncadd [#allocation6], 4294954912 }
  0x33   :  { %4231 = dma.done.wait [#allocation9], 12288  }
  0x34   :  { %4232 = vsyncadd [#allocation9], 4294955008  ;;  %v4294_v0 = vld [vmem:[#allocation7 + $0xf8] sm:$0xff]  ;;  %v4304_v4 = vld [vmem:[#allocation7 + $0xf0] sm:$0xff]  ;;  %v274_v26 = vlaneseq  ;;  %v4243_v27 = vmov 1983009808  }
  0x35   :  { %v4296_v1 = vld [vmem:[#allocation7 + $0x1f8] sm:$0xff]  ;;  %3078 = vmatprep.subr.mxu0 %v4294_v0  ;;  %v4306_v5 = vld [vmem:[#allocation7 + $0x1f0] sm:$0xff]  ;;  %v4314_v8 = vld [vmem:[#allocation7 + $0xe8] sm:$0xff]  ;;  %v308_v28 = vunpack.c.l.s4 %v4243_v27  ;;  %vm770_vm7 = vcmask 1041408  }
  0x36   :  { %v4298_v2 = vld [vmem:[#allocation7 + $0x78] sm:$0xff]  ;;  %3113 = vmatprep.subr.mxu1 %v4296_v1  ;;  %v4310_v6 = vld [vmem:[#allocation7 + $0x70] sm:$0xff]  ;;  %v4318_v9 = vld [vmem:[#allocation7 + $0x1e8] sm:$0xff]  ;;  %v4390_v37 = vshrl.u32 %v274_v26, 7 }
  0x37   :  { %v4302_v3 = vld [vmem:[#allocation7 + $0x178] sm:$0xff]  ;;  %3079 = vmatpush3.msra.mxu0 %v4298_v2  ;;  %v4312_v7 = vld [vmem:[#allocation7 + $0x170] sm:$0xff]  ;;  %v4320_v10 = vld [vmem:[#allocation7 + $0x68] sm:$0xff]  ;;  %v309_v38 = vunpack.c.0.s8 %v308_v28 }
  0x38   :  { %3114 = vmatpush3.msra.mxu1 %v4302_v3  ;;  %3080 = vmatprep.subr.mxu0 %v4304_v4  ;;  %v4322_v11 = vld [vmem:[#allocation7 + $0x168] sm:$0xff]  ;;  %v4326_v12 = vld [vmem:[#allocation7 + $0xe0] sm:$0xff]  ;;  %v4338_v16 = vld [vmem:[#allocation7 + $0xd8] sm:$0xff]  ;;  %v280_v53 = vsub.s32 1, %v4390_v37  ;;  %v276_v54 = vsub.s32 0, %v4390_v37  ;;  %v288_v58 = vsub.s32 3, %v4390_v37 }
  0x39   :  { %3115 = vmatprep.subr.mxu1 %v4306_v5  ;;  %3081 = vmatpush3.msra.mxu0 %v4310_v6  ;;  %v4328_v13 = vld [vmem:[#allocation7 + $0x1e0] sm:$0xff]  ;;  %v4340_v17 = vld [vmem:[#allocation7 + $0x1d8] sm:$0xff]  ;;  %v4350_v20 = vld [vmem:[#allocation7 + $0xd0] sm:$0xff]  ;;  %v4417_v47 = vsub.s32 %v309_v38, %v4390_v37  ;;  %v284_v59 = vsub.s32 2, %v4390_v37  ;;  %v4244_v38 = vmov 0  }
  0x3a   :  { %3116 = vmatpush3.msra.mxu1 %v4312_v7  ;;  %3082 = vmatprep.subr.mxu0 %v4314_v8  ;;  %v4332_v14 = vld [vmem:[#allocation7 + $0x60] sm:$0xff]  ;;  %v4344_v18 = vld [vmem:[#allocation7 + $0x58] sm:$0xff]  ;;  %v4352_v21 = vld [vmem:[#allocation7 + $0x1d0] sm:$0xff] }
  0x3b   :  { %3117 = vmatprep.subr.mxu1 %v4318_v9  ;;  %v4334_v15 = vld [vmem:[#allocation7 + $0x160] sm:$0xff]  ;;  %3083 = vmatpush3.msra.mxu0 %v4320_v10  ;;  %v4346_v19 = vld [vmem:[#allocation7 + $0x158] sm:$0xff]  ;;  %v4356_v22 = vld [vmem:[#allocation7 + $0x50] sm:$0xff]  ;;  %6722 = vst [vmem:[#allocation24_spill] sm:$0xff] %v4417_v47 }
  0x3c   :  { %3118 = vmatpush3.msra.mxu1 %v4322_v11  ;;  %3084 = vmatprep.subr.mxu0 %v4326_v12  ;;  %v4358_v23 = vld [vmem:[#allocation7 + $0x150] sm:$0xff]  ;;  %v4362_v24 = vld [vmem:[#allocation7 + $0xc8] sm:$0xff]  ;;  %v4374_v31 = vld [vmem:[#allocation7 + $0xc0] sm:$0xff] }
  0x3d   :  { %3119 = vmatprep.subr.mxu1 %v4328_v13  ;;  %3085 = vmatpush3.msra.mxu0 %v4332_v14  ;;  %v4364_v25 = vld [vmem:[#allocation7 + $0x1c8] sm:$0xff]  ;;  %v4376_v32 = vld [vmem:[#allocation7 + $0x1c0] sm:$0xff]  ;;  %v4386_v35 = vld [vmem:[#allocation7 + $0xb8] sm:$0xff] }
  0x3e   :  { %3120 = vmatpush3.msra.mxu1 %v4334_v15  ;;  %3086 = vmatprep.subr.mxu0 %v4338_v16  ;;  %v4368_v29 = vld [vmem:[#allocation7 + $0x48] sm:$0xff]  ;;  %6713 = vst [vmem:[#allocation15_spill] sm:$0xff] %v4376_v32  ;;  %v4380_v33 = vld [vmem:[#allocation7 + $0x40] sm:$0xff]  ;;  %v4388_v36 = vld [vmem:[#allocation7 + $0x1b8] sm:$0xff] }
  0x3f   :  { %3121 = vmatprep.subr.mxu1 %v4340_v17  ;;  %3087 = vmatpush3.msra.mxu0 %v4344_v18  ;;  %v4370_v30 = vld [vmem:[#allocation7 + $0x148] sm:$0xff]  ;;  %v4382_v34 = vld [vmem:[#allocation7 + $0x140] sm:$0xff]  ;;  %6715 = vst [vmem:[#allocation17_spill] sm:$0xff] %v4388_v36  ;;  %v4394_v39 = vld [vmem:[#allocation7 + $0x38] sm:$0xff] }
  0x40   :  { %3122 = vmatpush3.msra.mxu1 %v4346_v19  ;;  %3088 = vmatprep.subr.mxu0 %v4350_v20  ;;  %6714 = vst [vmem:[#allocation16_spill] sm:$0xff] %v4382_v34  ;;  %v4396_v40 = vld [vmem:[#allocation7 + $0x138] sm:$0xff]  ;;  %v4400_v41 = vld [vmem:[#allocation7 + $0xb0] sm:$0xff]  ;;  %v4412_v45 = vld [vmem:[#allocation7 + $0xa8] sm:$0xff] }
  0x41   :  { %3123 = vmatprep.subr.mxu1 %v4352_v21  ;;  %3089 = vmatpush3.msra.mxu0 %v4356_v22  ;;  %6716 = vst [vmem:[#allocation18_spill] sm:$0xff] %v4396_v40  ;;  %v4402_v42 = vld [vmem:[#allocation7 + $0x1b0] sm:$0xff]  ;;  %6720 = vst [vmem:[#allocation22_spill] sm:$0xff] %v4412_v45  ;;  %v4414_v46 = vld [vmem:[#allocation7 + $0x1a8] sm:$0xff] }
  0x42   :  { %3124 = vmatpush3.msra.mxu1 %v4358_v23  ;;  %3090 = vmatprep.subr.mxu0 %v4362_v24  ;;  %6717 = vst [vmem:[#allocation19_spill] sm:$0xff] %v4402_v42  ;;  %v4406_v43 = vld [vmem:[#allocation7 + $0x30] sm:$0xff]  ;;  %6721 = vst [vmem:[#allocation23_spill] sm:$0xff] %v4414_v46  ;;  %v4421_v48 = vld [vmem:[#allocation7 + $0x28] sm:$0xff] }
  0x43   :  { %3125 = vmatprep.subr.mxu1 %v4364_v25  ;;  %3091 = vmatpush3.msra.mxu0 %v4368_v29  ;;  %6718 = vst [vmem:[#allocation20_spill] sm:$0xff] %v4406_v43  ;;  %v4408_v44 = vld [vmem:[#allocation7 + $0x130] sm:$0xff]  ;;  %6723 = vst [vmem:[#allocation25_spill] sm:$0xff] %v4421_v48  ;;  %v4423_v49 = vld [vmem:[#allocation7 + $0x128] sm:$0xff] }
  0x44   :  { %3126 = vmatpush3.msra.mxu1 %v4370_v30  ;;  %3092 = vmatprep.subr.mxu0 %v4374_v31  ;;  %6719 = vst [vmem:[#allocation21_spill] sm:$0xff] %v4408_v44  ;;  %6724 = vst [vmem:[#allocation26_spill] sm:$0xff] %v4423_v49  ;;  %v4427_v50 = vld [vmem:[#allocation7 + $0xa0] sm:$0xff]  ;;  %v75_v56 = vld [vmem:[#allocation2] sm:$0xff] }
  0x45   :  { %3127 = vmatprep.subr.mxu1 %v4376_v32  ;;  %3093 = vmatpush3.msra.mxu0 %v4380_v33  ;;  %v4429_v51 = vld [vmem:[#allocation7 + $0x1a0] sm:$0xff]  ;;  %v77_v57 = vld [vmem:[#allocation5] sm:$0x3f]  ;;  %v313_v62 = vrot.slane %v75_v56, %v4417_v47  ;;  %v6439_v32 = vsub.s32 4, %v4390_v37 }
  0x46   :  { %3128 = vmatpush3.msra.mxu1 %v4382_v34  ;;  %3094 = vmatprep.subr.mxu0 %v4386_v35  ;;  %6725 = vst [vmem:[#allocation27_spill] sm:$0xff] %v4429_v51  ;;  %v4431_v52 = vld [vmem:[#allocation7 + $0x20] sm:$0xff]  ;;  %v4443_v60 = vld [vmem:[#allocation7 + $0x98] sm:$0xff]  ;;  %vm272_vm0 = vcmp.gt.f32.partialorder %v77_v57, 0.5  ;;  %v4448_v63 = vrot.slane %v77_v57, %v280_v53  ;;  %v4450_v26 = vrot.slane %v77_v57, %v276_v54 }
  0x47   :  { %3129 = vmatprep.subr.mxu1 %v4388_v36  ;;  %3095 = vmatpush3.msra.mxu0 %v4394_v39  ;;  %v4437_v55 = vld [vmem:[#allocation7 + $0x120] sm:$0xff]  ;;  %v4445_v61 = vld [vmem:[#allocation7 + $0x198] sm:$0xff] }
  0x48   :  { %3130 = vmatpush3.msra.mxu1 %v4396_v40  ;;  %3096 = vmatprep.subr.mxu0 %v4400_v41  ;;  %6726 = vst [vmem:[#allocation28_spill] sm:$0xff] %v4437_v55  ;;  %6727 = vst [vmem:[#allocation29_spill] sm:$0xff] %v4445_v61  ;;  %v4454_v27 = vld [vmem:[#allocation7 + $0x18] sm:$0xff]  ;;  %v321_v40 = vcombine.high %v313_v62, %v313_v62 }
  0x49   :  { %3131 = vmatprep.subr.mxu1 %v4402_v42  ;;  %3097 = vmatpush3.msra.mxu0 %v4406_v43  ;;  %6728 = vst [vmem:[#allocation30_spill] sm:$0xff] %v4448_v63  ;;  %6729 = vst [vmem:[#allocation31_spill] sm:$0xff] %v4450_v26  ;;  %v4456_v28 = vld [vmem:[#allocation7 + $0x118] sm:$0xff]  ;;  %v4462_v42 = vrot.slane %v77_v57, %v284_v59  ;;  %v4466_v63 = vld [vmem:[#allocation7 + $0x90] sm:$0xff] }
  0x4a   :  { %3132 = vmatpush3.msra.mxu1 %v4408_v44  ;;  %3098 = vmatprep.subr.mxu0 %v4412_v45  ;;  %6730 = vst [vmem:[#allocation32_spill] sm:$0xff] %v4454_v27  ;;  %6731 = vst [vmem:[#allocation33_spill] sm:$0xff] %v4456_v28  ;;  %v4460_v44 = vrot.slane %v77_v57, %v288_v58  ;;  %v4468_v26 = vld [vmem:[#allocation7 + $0x190] sm:$0xff] }
  0x4b   :  { %3133 = vmatprep.subr.mxu1 %v4414_v46  ;;  %3099 = vmatpush3.msra.mxu0 %v4421_v48  ;;  %v306_v46 = vcombine.high %v75_v56, %v75_v56  ;;  %6733 = vst [vmem:[#allocation35_spill] sm:$0xff] %v4462_v42  ;;  %6734 = vst [vmem:[#allocation36_spill] sm:$0xff] %v4466_v63  ;;  %v4475_v56 = vld [vmem:[#allocation7 + $0x10] sm:$0xff] }
  0x4c   :  { %3134 = vmatpush3.msra.mxu1 %v4423_v49  ;;  %3100 = vmatprep.subr.mxu0 %v4427_v50  ;;  %v4458_v49 = vsel %vm272_vm0, 1, %v4244_v38  ;;  %6732 = vst [vmem:[#allocation34_spill] sm:$0xff] %v4460_v44  ;;  %6735 = vst [vmem:[#allocation37_spill] sm:$0xff] %v4468_v26  ;;  %v6434_v38 = vsub.s32 5, %v4390_v37  ;;  %v4477_v44 = vld [vmem:[#allocation7 + $0x110] sm:$0xff] }
  0x4d   :  { %3135 = vmatprep.subr.mxu1 %v4429_v51  ;;  %3101 = vmatpush3.msra.mxu0 %v4431_v52  ;;  %v281_v51 = vrot.slane %v4458_v49, %v280_v53  ;;  %v277_v36 = vrot.slane %v4458_v49, %v276_v54  ;;  %6736 = vst [vmem:[#allocation38_spill] sm:$0xff] %v4477_v44  ;;  %v4484_v53 = vld [vmem:[#allocation7 + $0x88] sm:$0xff] }
  0x4e   :  { %3136 = vmatpush3.msra.mxu1 %v4437_v55  ;;  %3102 = vmatprep.subr.mxu0 %v4443_v60  ;;  %v289_v42 = vrot.slane %v4458_v49, %v288_v58  ;;  %v320_v55 = vrot.slane %v306_v46, %v4417_v47  ;;  %v285_v34 = vrot.slane %v4458_v49, %v284_v59  ;;  %v4486_v54 = vld [vmem:[#allocation7 + $0x188] sm:$0xff]  ;;  %v4501_v47 = vld [vmem:[#allocation7 + $0x80] sm:$0xff] }
  0x4f   :  { %3137 = vmatprep.subr.mxu1 %v4445_v61  ;;  %3103 = vmatpush3.msra.mxu0 %v4454_v27  ;;  %vm299_vm1 = vcmp.eq.s32.totalorder %v281_v51, 1  ;;  %v4490_v61 = vrot.slane %v77_v57, %v6434_v38  ;;  %v4495_v46 = vld [vmem:[#allocation7 + $0x8] sm:$0xff]  ;;  %vm298_vm2 = vcmp.eq.s32.totalorder %v277_v36, 1  ;;  %v4503_v38 = vld [vmem:[#allocation7 + $0x180] sm:$0xff]  ;;  %v4535_v36 = vld [vmem:[#allocation7 + $0x278] sm:$0xff] }
  0x50   :  { %3138 = vmatpush3.msra.mxu1 %v4456_v28  ;;  %3104 = vmatprep.subr.mxu0 %v4466_v63  ;;  %v4497_v58 = vld [vmem:[#allocation7 + $0x108] sm:$0xff]  ;;  %v322_v59 = vcombine.high %v320_v55, %v320_v55  ;;  %vm301_vm3 = vcmp.eq.s32.totalorder %v289_v42, 1  ;;  %v4514_v28 = vsel %vm299_vm1, 0.5, %v321_v40  ;;  %vm300_vm4 = vcmp.eq.s32.totalorder %v285_v34, 1  ;;  %v4539_v40 = vld [vmem:[#allocation7 + $0x2f0] sm:$0xff] }
  0x51   :  { %6737 = vst [vmem:[#allocation39_spill] sm:$0xff] %v4490_v61  ;;  %3139 = vmatprep.subr.mxu1 %v4468_v26  ;;  %3105 = vmatpush3.msra.mxu0 %v4475_v56  ;;  %v4507_v61 = vrot.slane %v77_v57, %v6439_v32  ;;  %v4511_v26 = vld [vmem:[#allocation7] sm:$0xff]  ;;  %6739 = vst [vmem:[#allocation41_spill] sm:$0xff] %v4514_v28  ;;  %v4521_v42 = vsel %vm298_vm2, 0.5, %v313_v62  ;;  %v4527_v32 = vld [vmem:[#allocation7 + $0x2f8] sm:$0xff]  ;;  %v4531_v34 = vsel %vm300_vm4, 0.5, %v320_v55 }
  0x52   :  { %3140 = vmatpush3.msra.mxu1 %v4477_v44  ;;  %3106 = vmatprep.subr.mxu0 %v4484_v53  ;;  %v4518_v44 = vld [vmem:[#allocation7 + $0x100] sm:$0xff]  ;;  %6740 = vst [vmem:[#allocation42_spill] sm:$0xff] %v4521_v42  ;;  %v4525_v57 = vsel %vm301_vm3, 0.5, %v322_v59  ;;  %6742 = vst [vmem:[#allocation44_spill] sm:$0xff] %v4531_v34  ;;  %v4543_v51 = vld [vmem:[#allocation7 + $0x270] sm:$0xff] }
  0x53   :  { %6738 = vst [vmem:[#allocation40_spill] sm:$0xff] %v4507_v61  ;;  %3141 = vmatprep.subr.mxu1 %v4486_v54  ;;  %3107 = vmatpush3.msra.mxu0 %v4495_v46  ;;  %6741 = vst [vmem:[#allocation43_spill] sm:$0xff] %v4525_v57  ;;  %v4547_v55 = vld [vmem:[#allocation7 + $0x2e8] sm:$0xff]  ;;  %v4559_v59 = vld [vmem:[#allocation7 + $0x260] sm:$0xff]  ;;  %v6746_v61 = vsub.s32 4, %v4390_v37 }
  0x54   :  { %3142 = vmatpush3.msra.mxu1 %v4497_v58  ;;  %3108 = vmatprep.subr.mxu0 %v4501_v47  ;;  %v4551_v62 = vld [vmem:[#allocation7 + $0x268] sm:$0xff] }
  0x55   :  { %3143 = vmatprep.subr.mxu1 %v4503_v38  ;;  %3109 = vmatpush3.msra.mxu0 %v4511_v26 }
  0x56   :  { %413 = vmatprep.mubr.f32.mxu0 %v4514_v28  ;;  %3144 = vmatpush3.msra.mxu1 %v4518_v44 }
  0x57   :  { %414 = vmatmul.mubr.f32.vlgmr.msra.gmra.mxu0 %v4521_v42  ;;  %483 = vmatprep.mubr.f32.mxu1 %v4525_v57  ;;  %v3075_v57 = vld.sshfl [vmem:[#allocation2 + $0x8] sm:$0x33 pattern:$0x76325410] }
  0x58   :  { %3148 = vmatprep.subr.mxu0 %v4527_v32  ;;  %3183 = vmatprep.subr.mxu1 %v4294_v0  ;;  %v4555_v0 = vld [vmem:[#allocation7 + $0x2e0] sm:$0xff]  ;;  %v4634_v42 = vld [vmem:[#allocation7 + $0x218] sm:$0xff] }
  0x59   :  { %484 = vmatmul.mubr.f32.vlgmr.msra.gmra.mxu1 %v4531_v34  ;;  %3149 = vmatpush3.msra.mxu0 %v4535_v36  ;;  %v6744_v34 = vsub.s32 5, %v4390_v37  ;;  %6745 = vst [vmem:[#allocation46_spill] sm:$0xff] %v4634_v42  ;;  %v4649_v37 = vld [vmem:[#allocation7 + $0x288] sm:$0xff] }
  0x5a   :  { %3184 = vmatpush3.msra.mxu1 %v4298_v2  ;;  %3150 = vmatprep.subr.mxu0 %v4539_v40  ;;  %v4563_v2 = vld [vmem:[#allocation7 + $0x2d8] sm:$0xff]  ;;  %6749 = vst [vmem:[#allocation49_spill] sm:$0xff] %v4649_v37 }
  0x5b   :  { %3185 = vmatprep.subr.mxu1 %v4304_v4  ;;  %3151 = vmatpush3.msra.mxu0 %v4543_v51  ;;  %v4567_v4 = vld [vmem:[#allocation7 + $0x258] sm:$0xff]  ;;  %v297_v28 = vrot.slane %v4458_v49, %v6744_v34  ;;  %v4645_v34 = vld [vmem:[#allocation7 + $0x210] sm:$0xff] }
  0x5c   :  { %3186 = vmatpush3.msra.mxu1 %v4310_v6  ;;  %3152 = vmatprep.subr.mxu0 %v4547_v55  ;;  %v4571_v6 = vld [vmem:[#allocation7 + $0x2d0] sm:$0xff]  ;;  %6748 = vst [vmem:[#allocation48_spill] sm:$0xff] %v4645_v34 }
  0x5d   :  { %3187 = vmatprep.subr.mxu1 %v4314_v8  ;;  %3153 = vmatpush3.msra.mxu0 %v4551_v62  ;;  %v4575_v8 = vld [vmem:[#allocation7 + $0x250] sm:$0xff]  ;;  %vm303_vm5 = vcmp.eq.s32.totalorder %v297_v28, 1 }
  0x5e   :  { %3188 = vmatpush3.msra.mxu1 %v4320_v10  ;;  %3154 = vmatprep.subr.mxu0 %v4555_v0  ;;  %v4579_v10 = vld [vmem:[#allocation7 + $0x2c8] sm:$0xff] }
  0x5f   :  { %3189 = vmatprep.subr.mxu1 %v4326_v12  ;;  %3155 = vmatpush3.msra.mxu0 %v4559_v59  ;;  %v4583_v12 = vld [vmem:[#allocation7 + $0x248] sm:$0xff] }
  0x60   :  { %3190 = vmatpush3.msra.mxu1 %v4332_v14  ;;  %3156 = vmatprep.subr.mxu0 %v4563_v2  ;;  %v4587_v14 = vld [vmem:[#allocation7 + $0x2c0] sm:$0xff] }
  0x61   :  { %3191 = vmatprep.subr.mxu1 %v4338_v16  ;;  %3157 = vmatpush3.msra.mxu0 %v4567_v4  ;;  %v4591_v16 = vld [vmem:[#allocation7 + $0x240] sm:$0xff] }
  0x62   :  { %3192 = vmatpush3.msra.mxu1 %v4344_v18  ;;  %3158 = vmatprep.subr.mxu0 %v4571_v6  ;;  %v4595_v18 = vld [vmem:[#allocation7 + $0x2b8] sm:$0xff] }
  0x63   :  { %3193 = vmatprep.subr.mxu1 %v4350_v20  ;;  %3159 = vmatpush3.msra.mxu0 %v4575_v8  ;;  %v4599_v20 = vld [vmem:[#allocation7 + $0x238] sm:$0xff] }
  0x64   :  { %3194 = vmatpush3.msra.mxu1 %v4356_v22  ;;  %3160 = vmatprep.subr.mxu0 %v4579_v10  ;;  %v4603_v22 = vld [vmem:[#allocation7 + $0x2b0] sm:$0xff] }
  0x65   :  { %3195 = vmatprep.subr.mxu1 %v4362_v24  ;;  %3161 = vmatpush3.msra.mxu0 %v4583_v12  ;;  %v4607_v24 = vld [vmem:[#allocation7 + $0x230] sm:$0xff] }
  0x66   :  { %3196 = vmatpush3.msra.mxu1 %v4368_v29  ;;  %3162 = vmatprep.subr.mxu0 %v4587_v14  ;;  %v4611_v29 = vld [vmem:[#allocation7 + $0x2a8] sm:$0xff] }
  0x67   :  { %3197 = vmatprep.subr.mxu1 %v4374_v31  ;;  %3163 = vmatpush3.msra.mxu0 %v4591_v16  ;;  %v4615_v31 = vld [vmem:[#allocation7 + $0x228] sm:$0xff] }
  0x68   :  { %3198 = vmatpush3.msra.mxu1 %v4380_v33  ;;  %3164 = vmatprep.subr.mxu0 %v4595_v18  ;;  %v4619_v33 = vld [vmem:[#allocation7 + $0x2a0] sm:$0xff] }
  0x69   :  { %3199 = vmatprep.subr.mxu1 %v4386_v35  ;;  %3165 = vmatpush3.msra.mxu0 %v4599_v20  ;;  %v4623_v35 = vld [vmem:[#allocation7 + $0x220] sm:$0xff] }
  0x6a   :  { %3200 = vmatpush3.msra.mxu1 %v4394_v39  ;;  %3166 = vmatprep.subr.mxu0 %v4603_v22  ;;  %v4627_v39 = vld [vmem:[#allocation7 + $0x298] sm:$0xff] }
  0x6b   :  { %3201 = vmatprep.subr.mxu1 %v4400_v41  ;;  %3167 = vmatpush3.msra.mxu0 %v4607_v24  ;;  %6743 = vst [vmem:[#allocation45_spill] sm:$0xff] %v4627_v39 }
  0x6c   :  { %3202 = vmatpush3.msra.mxu1 %v4406_v43  ;;  %3168 = vmatprep.subr.mxu0 %v4611_v29  ;;  %v330_v43 = vcombine.high %v3075_v57, %v3075_v57 }
  0x6d   :  { %3203 = vmatprep.subr.mxu1 %v4412_v45  ;;  %3169 = vmatpush3.msra.mxu0 %v4615_v31  ;;  %v293_v45 = vrot.slane %v4458_v49, %v6746_v61  ;;  %v4653_v49 = vld [vmem:[#allocation7 + $0x208] sm:$0xff]  ;;  %v4657_v61 = vld [vmem:[#allocation7 + $0x280] sm:$0xff] }
  0x6e   :  { %3204 = vmatpush3.msra.mxu1 %v4421_v48  ;;  %3170 = vmatprep.subr.mxu0 %v4619_v33  ;;  %v4641_v48 = vld [vmem:[#allocation7 + $0x290] sm:$0xff]  ;;  %6750 = vst [vmem:[#allocation50_spill] sm:$0xff] %v4653_v49  ;;  %6751 = vst [vmem:[#allocation51_spill] sm:$0xff] %v4657_v61  ;;  %v4663_v28 = vsel %vm303_vm5, 0.5, %v330_v43  ;;  %v6450_v43 = vmov 0.0  }
  0x6f   :  { %3205 = vmatprep.subr.mxu1 %v4427_v50  ;;  %3171 = vmatpush3.msra.mxu0 %v4623_v35  ;;  %6747 = vst [vmem:[#allocation47_spill] sm:$0xff] %v4641_v48  ;;  %vm302_vm6 = vcmp.eq.s32.totalorder %v293_v45, 1  ;;  %6753 = vst [vmem:[#allocation53_spill] sm:$0xff] %v4663_v28 }
  0x70   :  { %3206 = vmatpush3.msra.mxu1 %v4431_v52  ;;  %3172 = vmatprep.subr.mxu0 %v4627_v39 }
  0x71   :  { %3207 = vmatprep.subr.mxu1 %v4443_v60  ;;  %3173 = vmatpush3.msra.mxu0 %v4634_v42 }
  0x72   :  { %3208 = vmatpush3.msra.mxu1 %v4454_v27  ;;  %3174 = vmatprep.subr.mxu0 %v4641_v48  ;;  %v4661_v27 = vld [vmem:[#allocation7 + $0x200] sm:$0xff] }
  0x73   :  { %3209 = vmatprep.subr.mxu1 %v4466_v63  ;;  %3175 = vmatpush3.msra.mxu0 %v4645_v34  ;;  %6752 = vst [vmem:[#allocation52_spill] sm:$0xff] %v4661_v27  ;;  %v4667_v63 = vsel %vm302_vm6, 0.5, %v3075_v57 }
  0x74   :  { %3210 = vmatpush3.msra.mxu1 %v4475_v56  ;;  %3176 = vmatprep.subr.mxu0 %v4649_v37  ;;  %6754 = vst [vmem:[#allocation54_spill] sm:$0xff] %v4667_v63 }
  0x75   :  { %3211 = vmatprep.subr.mxu1 %v4484_v53  ;;  %3177 = vmatpush3.msra.mxu0 %v4653_v49 }
  0x76   :  { %3212 = vmatpush3.msra.mxu1 %v4495_v46  ;;  %3178 = vmatprep.subr.mxu0 %v4657_v61 }
  0x77   :  { %3213 = vmatprep.subr.mxu1 %v4501_v47  ;;  %3179 = vmatpush3.msra.mxu0 %v4661_v27 }
  0x78   :  { %553 = vmatprep.mubr.f32.mxu0 %v4663_v28  ;;  %3214 = vmatpush3.msra.mxu1 %v4511_v26  ;;  %v4819_v28 = vld [vmem:[#allocation8 + $0x1e0] sm:$0xff] }
  0x79   :  { %554 = vmatmul.mubr.f32.vlgmr.msra.gmra.mxu0 %v4667_v63  ;;  %623 = vmatprep.mubr.f32.mxu1 %v6450_v43  ;;  %v4821_v63 = vld [vmem:[#allocation8 + $0x1f0] sm:$0xff] }
  0x7a   :  { %3218 = vmatprep.subr.mxu0 %v4296_v1  ;;  %3253 = vmatprep.subr.mxu1 %v4527_v32  ;;  %v6755_v1 = vld [vmem:[#allocation15_spill] sm:$0xff] }
  0x7b   :  { %624 = vmatmul.mubr.f32.vlgmr.msra.gmra.mxu1 %v6450_v43  ;;  %3219 = vmatpush3.msra.mxu0 %v4302_v3  ;;  %v6756_v3 = vld [vmem:[#allocation16_spill] sm:$0xff] }
  0x7c   :  { %3254 = vmatpush3.msra.mxu1 %v4535_v36  ;;  %3220 = vmatprep.subr.mxu0 %v4306_v5  ;;  %v6757_v5 = vld [vmem:[#allocation17_spill] sm:$0xff] }
  0x7d   :  { %3255 = vmatprep.subr.mxu1 %v4539_v40  ;;  %3221 = vmatpush3.msra.mxu0 %v4312_v7  ;;  %v6758_v7 = vld [vmem:[#allocation18_spill] sm:$0xff] }
  0x7e   :  { %3256 = vmatpush3.msra.mxu1 %v4543_v51  ;;  %3222 = vmatprep.subr.mxu0 %v4318_v9  ;;  %v6759_v9 = vld [vmem:[#allocation19_spill] sm:$0xff] }
  0x7f   :  { %3257 = vmatprep.subr.mxu1 %v4547_v55  ;;  %3223 = vmatpush3.msra.mxu0 %v4322_v11  ;;  %v6760_v11 = vld [vmem:[#allocation21_spill] sm:$0xff] }
  0x80   :  { %3258 = vmatpush3.msra.mxu1 %v4551_v62  ;;  %3224 = vmatprep.subr.mxu0 %v4328_v13  ;;  %v6761_v13 = vld [vmem:[#allocation23_spill] sm:$0xff] }
  0x81   :  { %3259 = vmatprep.subr.mxu1 %v4555_v0  ;;  %3225 = vmatpush3.msra.mxu0 %v4334_v15  ;;  %v6762_v15 = vld [vmem:[#allocation26_spill] sm:$0xff]  ;;  %v3076_v62 = vld [vmem:[%s6414_s4] ss:$0 sm:$0xff] }
  0x82   :  { %3260 = vmatpush3.msra.mxu1 %v4559_v59  ;;  %3226 = vmatprep.subr.mxu0 %v4340_v17  ;;  %v6763_v17 = vld [vmem:[#allocation27_spill] sm:$0xff] }
  0x83   :  { %3261 = vmatprep.subr.mxu1 %v4563_v2  ;;  %3227 = vmatpush3.msra.mxu0 %v4346_v19  ;;  %v6764_v19 = vld [vmem:[#allocation28_spill] sm:$0xff] }
  0x84   :  { %3262 = vmatpush3.msra.mxu1 %v4567_v4  ;;  %3228 = vmatprep.subr.mxu0 %v4352_v21  ;;  %v6765_v21 = vld [vmem:[#allocation29_spill] sm:$0xff] }
  0x85   :  { %3263 = vmatprep.subr.mxu1 %v4571_v6  ;;  %3229 = vmatpush3.msra.mxu0 %v4358_v23  ;;  %v6766_v23 = vld [vmem:[#allocation33_spill] sm:$0xff] }
  0x86   :  { %3264 = vmatpush3.msra.mxu1 %v4575_v8  ;;  %3230 = vmatprep.subr.mxu0 %v4364_v25  ;;  %v6767_v25 = vld [vmem:[#allocation37_spill] sm:$0xff] }
  0x87   :  { %3265 = vmatprep.subr.mxu1 %v4579_v10  ;;  %3231 = vmatpush3.msra.mxu0 %v4370_v30  ;;  %v6768_v30 = vld [vmem:[#allocation38_spill] sm:$0xff]  ;;  %6781 = vst [vmem:[#allocation37_spill] sm:$0xff] %v4821_v63 }
  0x88   :  { %3266 = vmatpush3.msra.mxu1 %v4583_v12  ;;  %3232 = vmatprep.subr.mxu0 %v6755_v1 }
  0x89   :  { %3267 = vmatprep.subr.mxu1 %v4587_v14  ;;  %3233 = vmatpush3.msra.mxu0 %v6756_v3 }
  0x8a   :  { %3268 = vmatpush3.msra.mxu1 %v4591_v16  ;;  %3234 = vmatprep.subr.mxu0 %v6757_v5 }
  0x8b   :  { %3269 = vmatprep.subr.mxu1 %v4595_v18  ;;  %3235 = vmatpush3.msra.mxu0 %v6758_v7 }
  0x8c   :  { %3270 = vmatpush3.msra.mxu1 %v4599_v20  ;;  %3236 = vmatprep.subr.mxu0 %v6759_v9 }
  0x8d   :  { %3271 = vmatprep.subr.mxu1 %v4603_v22  ;;  %3237 = vmatpush3.msra.mxu0 %v6760_v11 }
  0x8e   :  { %3272 = vmatpush3.msra.mxu1 %v4607_v24  ;;  %3238 = vmatprep.subr.mxu0 %v6761_v13 }
  0x8f   :  { %3273 = vmatprep.subr.mxu1 %v4611_v29  ;;  %3239 = vmatpush3.msra.mxu0 %v6762_v15 }
  0x90   :  { %3274 = vmatpush3.msra.mxu1 %v4615_v31  ;;  %3240 = vmatprep.subr.mxu0 %v6763_v17 }
  0x91   :  { %3275 = vmatprep.subr.mxu1 %v4619_v33  ;;  %3241 = vmatpush3.msra.mxu0 %v6764_v19 }
  0x92   :  { %3276 = vmatpush3.msra.mxu1 %v4623_v35  ;;  %3242 = vmatprep.subr.mxu0 %v6765_v21 }
  0x93   :  { %3277 = vmatprep.subr.mxu1 %v4627_v39  ;;  %3243 = vmatpush3.msra.mxu0 %v6766_v23  ;;  %v4913_v39 = vld [vmem:[#allocation8 + $0xa0] sm:$0xff] }
  0x94   :  { %3278 = vmatpush3.msra.mxu1 %v4634_v42  ;;  %3244 = vmatprep.subr.mxu0 %v6767_v25  ;;  %v4907_v42 = vld [vmem:[#allocation8 + $0xa8] sm:$0xff]  ;;  %6800 = vst [vmem:[#allocation72_spill] sm:$0xff] %v4913_v39 }
  0x95   :  { %3279 = vmatprep.subr.mxu1 %v4641_v48  ;;  %3245 = vmatpush3.msra.mxu0 %v6768_v30  ;;  %v4901_v48 = vld [vmem:[#allocation8 + $0xd0] sm:$0xff]  ;;  %6798 = vst [vmem:[#allocation70_spill] sm:$0xff] %v4907_v42 }
  0x96   :  { %3280 = vmatpush3.msra.mxu1 %v4645_v34  ;;  %3246 = vmatprep.subr.mxu0 %v4486_v54  ;;  %v4899_v34 = vld [vmem:[#allocation8 + $0x98] sm:$0xff]  ;;  %6796 = vst [vmem:[#allocation68_spill] sm:$0xff] %v4901_v48 }
  0x97   :  { %3281 = vmatprep.subr.mxu1 %v4649_v37  ;;  %3247 = vmatpush3.msra.mxu0 %v4497_v58  ;;  %v4893_v37 = vld [vmem:[#allocation8 + $0xc0] sm:$0xff]  ;;  %6795 = vst [vmem:[#allocation67_spill] sm:$0xff] %v4899_v34 }
  0x98   :  { %3282 = vmatpush3.msra.mxu1 %v4653_v49  ;;  %3248 = vmatprep.subr.mxu0 %v4503_v38  ;;  %v4889_v49 = vld [vmem:[#allocation8 + $0x100] sm:$0xff]  ;;  %6793 = vst [vmem:[#allocation65_spill] sm:$0xff] %v4893_v37 }
  0x99   :  { %3283 = vmatprep.subr.mxu1 %v4657_v61  ;;  %3249 = vmatpush3.msra.mxu0 %v4518_v44  ;;  %v4883_v61 = vld [vmem:[#allocation8 + $0x108] sm:$0xff]  ;;  %6792 = vst [vmem:[#allocation64_spill] sm:$0xff] %v4889_v49 }
  0x9a   :  { %693 = vmatprep.mubr.f32.mxu0 %v6450_v43  ;;  %3284 = vmatpush3.msra.mxu1 %v4661_v27  ;;  %v4881_v27 = vld [vmem:[#allocation8 + $0xf0] sm:$0xff]  ;;  %6790 = vst [vmem:[#allocation62_spill] sm:$0xff] %v4883_v61 }
  0x9b   :  { %763 = vmatprep.mubr.f32.mxu1 %v6450_v43  ;;  %694 = vmatmul.mubr.f32.vlgmr.msra.gmra.mxu0 %v6450_v43 }
  0x9c   :  { %764 = vmatmul.mubr.f32.vlgmr.msra.gmra.mxu1 %v6450_v43  ;;  %847 = vmatprep.mubr.f32.mxu0 %v6450_v43 }
  0x9d   :  { %918 = vmatprep.mubr.f32.mxu1 %v6450_v43 }
 0x117   :  { %v3110_v45 = vpop.f32.mrf.mxu0 }
 0x119   :  { %v3145_v54 = vpop.f32.mrf.mxu1  ;;  %v3111_v57 = vpop.f32.mrf.mxu0 }
 0x11a   :  { %v3112_v55 = vadd.f32 %v3111_v57, %v3110_v45 }
 0x11b   :  { %v3146_v36 = vpop.f32.mrf.mxu1 }
 0x11c   :  { %v416_v7 = vadd.f32 %v3112_v55, %v3076_v62  ;;  %v3147_v9 = vadd.f32 %v3146_v36, %v3145_v54  ;;  %v4757_v54 = vld [vmem:[#allocation8 + $0x2d8] sm:$0xff]  ;;  %v4759_v36 = vld [vmem:[#allocation8 + $0x2d0] sm:$0xff]  ;;  %v4767_v55 = vld [vmem:[#allocation8 + $0x2e0] sm:$0xff] }
 0x11d   :  { %783 = vmatprep.subr.mxu0 %v4757_v54  ;;  %6771 = vst [vmem:[#allocation17_spill] sm:$0xff] %v4767_v55  ;;  %v4769_v62 = vld [vmem:[#allocation8 + $0x2a0] sm:$0xff] }
 0x11e   :  { %v486_v21 = vadd.f32 %v3147_v9, %v416_v7  ;;  %784 = vmatpush1.msra.mxu0 %v4759_v36  ;;  %v4787_v7 = vld [vmem:[#allocation8 + $0x248] sm:$0xff]  ;;  %v4789_v9 = vld [vmem:[#allocation8 + $0x280] sm:$0xff] }
 0x11f   :  { %6775 = vst [vmem:[#allocation23_spill] sm:$0xff] %v4789_v9 }
 0x139   :  { %v3180_v40 = vpop.f32.mrf.mxu0 }
 0x13b   :  { %v3215_v51 = vpop.f32.mrf.mxu1  ;;  %v3181_v0 = vpop.f32.mrf.mxu0 }
 0x13c   :  { %v3182_v15 = vadd.f32 %v3181_v0, %v3180_v40  ;;  %v4761_v40 = vld [vmem:[#allocation8 + $0x2e8] sm:$0xff]  ;;  %v4775_v0 = vld [vmem:[#allocation8 + $0x278] sm:$0xff] }
 0x13d   :  { %v3216_v1 = vpop.f32.mrf.mxu1  ;;  %6770 = vst [vmem:[#allocation16_spill] sm:$0xff] %v4761_v40  ;;  %854 = vmatprep.subr.mxu1 %v4761_v40  ;;  %v4875_v40 = vld [vmem:[#allocation8 + $0xf8] sm:$0xff] }
 0x13e   :  { %v3217_v17 = vadd.f32 %v3216_v1, %v3215_v51  ;;  %v4750_v30 = vadd.f32 %v3182_v15, %v486_v21  ;;  %v4765_v51 = vld [vmem:[#allocation8 + $0x2a8] sm:$0xff]  ;;  %855 = vmatpush1.msra.mxu1 %v4767_v55  ;;  %v4777_v1 = vld [vmem:[#allocation8 + $0x2b0] sm:$0xff] }
 0x13f   :  { %6773 = vst [vmem:[#allocation19_spill] sm:$0xff] %v4777_v1  ;;  %785 = vmatprep.subr.mxu0 %v4765_v51  ;;  %v4797_v15 = vld [vmem:[#allocation8 + $0x250] sm:$0xff] }
 0x140   :  { %6769 = vst [vmem:[#allocation15_spill] sm:$0xff] %v4750_v30  ;;  %786 = vmatpush1.msra.mxu0 %v4769_v62  ;;  %6777 = vst [vmem:[#allocation27_spill] sm:$0xff] %v4797_v15  ;;  %v4807_v21 = vld [vmem:[#allocation8 + $0x210] sm:$0xff] }
 0x141   :  { %787 = vmatprep.subr.mxu0 %v4775_v0  ;;  %v4857_v55 = vld [vmem:[#allocation8 + $0x190] sm:$0xff] }
 0x142   :  { %6785 = vst [vmem:[#allocation57_spill] sm:$0xff] %v4857_v55 }
 0x15b   :  { %v3250_v3 = vpop.f32.mrf.mxu0 }
 0x15c   :  { %v3285_v5 = vpop.f32.mrf.mxu1 }
 0x15d   :  { %v3251_v11 = vpop.f32.mrf.mxu0 }
 0x15e   :  { %v3286_v13 = vpop.f32.mrf.mxu1  ;;  %v3252_v19 = vadd.f32 %v3251_v11, %v3250_v3  ;;  %v4781_v3 = vld [vmem:[#allocation8 + $0x270] sm:$0xff]  ;;  %v4791_v11 = vld [vmem:[#allocation8 + $0x258] sm:$0xff] }
 0x15f   :  { %v3287_v25 = vadd.f32 %v3286_v13, %v3285_v5  ;;  %v4783_v5 = vld [vmem:[#allocation8 + $0x288] sm:$0xff]  ;;  %6776 = vst [vmem:[#allocation26_spill] sm:$0xff] %v4791_v11  ;;  %v4795_v13 = vld [vmem:[#allocation8 + $0x240] sm:$0xff]  ;;  %788 = vmatpush1.msra.mxu0 %v4781_v3 }
 0x160   :  { %v696_v23 = vadd.f32 %v3252_v19, %v3217_v17  ;;  %6774 = vst [vmem:[#allocation21_spill] sm:$0xff] %v4783_v5  ;;  %v4801_v17 = vld [vmem:[#allocation8 + $0x218] sm:$0xff]  ;;  %v4803_v19 = vld [vmem:[#allocation8 + $0x228] sm:$0xff]  ;;  %789 = vmatprep.subr.mxu0 %v4787_v7 }
 0x161   :  { %6778 = vst [vmem:[#allocation28_spill] sm:$0xff] %v4803_v19  ;;  %790 = vmatpush1.msra.mxu0 %v4795_v13 }
 0x162   :  { %v766_v45 = vadd.f32 %v3287_v25, %v696_v23  ;;  %v4809_v23 = vld [vmem:[#allocation8 + $0x220] sm:$0xff]  ;;  %v4813_v25 = vld [vmem:[#allocation8 + $0x1e8] sm:$0xff]  ;;  %791 = vmatprep.subr.mxu0 %v4801_v17 }
 0x163   :  { %6779 = vst [vmem:[#allocation29_spill] sm:$0xff] %v4809_v23  ;;  %792 = vmatpush1.msra.mxu0 %v4807_v21 }
 0x164   :  { %v4753_v57 = vadd.f32 %v766_v45, %v4750_v30  ;;  %v4815_v45 = vld [vmem:[#allocation8 + $0x1f8] sm:$0xff]  ;;  %793 = vmatprep.subr.mxu0 %v4813_v25 }
 0x165   :  { %6780 = vst [vmem:[#allocation33_spill] sm:$0xff] %v4815_v45  ;;  %v4825_v30 = vld [vmem:[#allocation8 + $0x1b8] sm:$0xff]  ;;  %794 = vmatpush1.msra.mxu0 %v4819_v28 }
 0x166   :  { %v771_v43 = vsel %vm770_vm7, %v4753_v57, -inf  ;;  %795 = vmatprep.subr.mxu0 %v4825_v30 }
 0x167   :  { %772 = vmax.xlane.f32.xlu0 %v771_v43  ;;  %v4773_v43 = vld [vmem:[#allocation8 + $0x2b8] sm:$0xff] }
 0x168   :  { %6772 = vst [vmem:[#allocation18_spill] sm:$0xff] %v4773_v43  ;;  %856 = vmatprep.subr.mxu1 %v4773_v43  ;;  %v4849_v43 = vld [vmem:[#allocation8 + $0x180] sm:$0xff] }
 0x169   :  { %857 = vmatpush1.msra.mxu1 %v4777_v1 }
 0x16a   :  { %858 = vmatprep.subr.mxu1 %v4783_v5 }
 0x16b   :  { %859 = vmatpush1.msra.mxu1 %v4789_v9  ;;  %v4833_v9 = vld [vmem:[#allocation8 + $0x1c0] sm:$0xff] }
 0x16c   :  { %860 = vmatprep.subr.mxu1 %v4791_v11  ;;  %v4827_v11 = vld [vmem:[#allocation8 + $0x1c8] sm:$0xff]  ;;  %6783 = vst [vmem:[#allocation55_spill] sm:$0xff] %v4833_v9 }
 0x16d   :  { %861 = vmatpush1.msra.mxu1 %v4797_v15  ;;  %6782 = vst [vmem:[#allocation38_spill] sm:$0xff] %v4827_v11  ;;  %v4831_v15 = vld [vmem:[#allocation8 + $0x1b0] sm:$0xff] }
 0x16e   :  { %862 = vmatprep.subr.mxu1 %v4803_v19  ;;  %v4837_v19 = vld [vmem:[#allocation8 + $0x188] sm:$0xff]  ;;  %796 = vmatpush1.msra.mxu0 %v4831_v15 }
 0x16f   :  { %863 = vmatpush1.msra.mxu1 %v4809_v23  ;;  %797 = vmatprep.subr.mxu0 %v4837_v19 }
 0x170   :  { %864 = vmatprep.subr.mxu1 %v4815_v45  ;;  %798 = vmatpush1.msra.mxu0 %v4849_v43 }
 0x171   :  { %865 = vmatpush1.msra.mxu1 %v4821_v63 }
 0x172   :  { %866 = vmatprep.subr.mxu1 %v4827_v11  ;;  %v4851_v11 = vld [vmem:[#allocation8 + $0x198] sm:$0xff] }
 0x173   :  { %867 = vmatpush1.msra.mxu1 %v4833_v9  ;;  %6784 = vst [vmem:[#allocation56_spill] sm:$0xff] %v4851_v11  ;;  %v4855_v9 = vld [vmem:[#allocation8 + $0x158] sm:$0xff] }
 0x174   :  { %868 = vmatprep.subr.mxu1 %v4851_v11  ;;  %799 = vmatprep.subr.mxu0 %v4855_v9  ;;  %v4873_v11 = vld [vmem:[#allocation8 + $0x138] sm:$0xff] }
 0x175   :  { %869 = vmatpush1.msra.mxu1 %v4857_v55  ;;  %6788 = vst [vmem:[#allocation60_spill] sm:$0xff] %v4873_v11  ;;  %v4879_v55 = vld [vmem:[#allocation8 + $0x130] sm:$0xff] }
 0x176   :  { %6789 = vst [vmem:[#allocation61_spill] sm:$0xff] %v4879_v55 }
 0x1f0   :  { %v773_v45 = vpop.xlane.xlu0 %772 }
 0x1f1   :  { %v774_v23 = vsub.f32 %v4753_v57, %v773_v45  ;;  %v4859_v57 = vld [vmem:[#allocation8 + $0x150] sm:$0xff]  ;;  %v4871_v45 = vld [vmem:[#allocation8 + $0x120] sm:$0xff] }
 0x1f2   :  { %800 = vmatpush1.msra.mxu0 %v4859_v57 }
 0x1f3   :  { %v775_v5 = vmul.f32 1.442695, %v774_v23  ;;  %v4867_v23 = vld [vmem:[#allocation8 + $0x160] sm:$0xff] }
 0x1f4   :  { %6787 = vst [vmem:[#allocation59_spill] sm:$0xff] %v4867_v23 }
 0x1f5   :  { %3721 = vpow2.f32 %v775_v5  ;;  %v4863_v5 = vld [vmem:[#allocation8 + $0x168] sm:$0xff] }
 0x1f6   :  { %6786 = vst [vmem:[#allocation58_spill] sm:$0xff] %v4863_v5  ;;  %870 = vmatprep.subr.mxu1 %v4863_v5  ;;  %v4887_v5 = vld [vmem:[#allocation8 + $0xc8] sm:$0xff] }
 0x1f7   :  { %871 = vmatpush1.msra.mxu1 %v4867_v23  ;;  %6791 = vst [vmem:[#allocation63_spill] sm:$0xff] %v4887_v5  ;;  %v4895_v23 = vld [vmem:[#allocation8 + $0xd8] sm:$0xff] }
 0x1f8   :  { %872 = vmatprep.subr.mxu1 %v4873_v11  ;;  %6794 = vst [vmem:[#allocation66_spill] sm:$0xff] %v4895_v23  ;;  %v4905_v11 = vld [vmem:[#allocation8 + $0x90] sm:$0xff] }
 0x1f9   :  { %873 = vmatpush1.msra.mxu1 %v4879_v55  ;;  %6797 = vst [vmem:[#allocation69_spill] sm:$0xff] %v4905_v11  ;;  %v4911_v55 = vld [vmem:[#allocation8 + $0x68] sm:$0xff] }
 0x1fa   :  { %874 = vmatprep.subr.mxu1 %v4883_v61  ;;  %6799 = vst [vmem:[#allocation71_spill] sm:$0xff] %v4911_v55  ;;  %v4917_v61 = vld [vmem:[#allocation8 + $0x60] sm:$0xff] }
 0x1fb   :  { %875 = vmatpush1.msra.mxu1 %v4889_v49  ;;  %6801 = vst [vmem:[#allocation73_spill] sm:$0xff] %v4917_v61  ;;  %v4923_v49 = vld [vmem:[#allocation8 + $0x38] sm:$0xff] }
 0x1fc   :  { %876 = vmatprep.subr.mxu1 %v4895_v23  ;;  %v4929_v23 = vld [vmem:[#allocation8 + $0x30] sm:$0xff] }
 0x1fd   :  { %877 = vmatpush1.msra.mxu1 %v4901_v48  ;;  %6804 = vst [vmem:[#allocation76_spill] sm:$0xff] %v4929_v23  ;;  %v4935_v48 = vld [vmem:[#allocation8 + $0x8] sm:$0xff] }
 0x1fe   :  { %878 = vmatprep.subr.mxu1 %v4907_v42  ;;  %6806 = vst [vmem:[#allocation78_spill] sm:$0xff] %v4935_v48  ;;  %v4941_v42 = vld [vmem:[#allocation8] sm:$0xff] }
 0x1ff   :  { %879 = vmatpush1.msra.mxu1 %v4913_v39  ;;  %6808 = vst [vmem:[#allocation80_spill] sm:$0xff] %v4941_v42  ;;  %v4947_v39 = vld [vmem:[#allocation8 + $0x10] sm:$0xff] }
 0x200   :  { %6810 = vst [vmem:[#allocation82_spill] sm:$0xff] %v4947_v39 }
 0x202   :  { %v4845_v1 = vpop.eup %3721 }
 0x203   :  { %v777_v63 = vsel %vm770_vm7, %v4845_v1, 0.0 }
 0x204   :  { %778 = vadd.xlane.f32.xlu0 %v777_v63  ;;  %v4865_v63 = vld [vmem:[#allocation8 + $0x128] sm:$0xff] }
 0x205   :  { %801 = vmatprep.subr.mxu0 %v4865_v63 }
 0x206   :  { %802 = vmatpush1.msra.mxu0 %v4871_v45 }
 0x207   :  { %803 = vmatprep.subr.mxu0 %v4875_v40 }
 0x208   :  { %804 = vmatpush1.msra.mxu0 %v4881_v27 }
 0x209   :  { %805 = vmatprep.subr.mxu0 %v4887_v5  ;;  %v4919_v5 = vld [vmem:[#allocation8 + $0x78] sm:$0xff] }
 0x20a   :  { %806 = vmatpush1.msra.mxu0 %v4893_v37  ;;  %6802 = vst [vmem:[#allocation74_spill] sm:$0xff] %v4919_v5  ;;  %v4925_v37 = vld [vmem:[#allocation8 + $0x70] sm:$0xff]  ;;  %880 = vmatprep.subr.mxu1 %v4919_v5 }
 0x20b   :  { %807 = vmatprep.subr.mxu0 %v4899_v34  ;;  %6803 = vst [vmem:[#allocation75_spill] sm:$0xff] %v4925_v37  ;;  %v4931_v34 = vld [vmem:[#allocation8 + $0x48] sm:$0xff]  ;;  %881 = vmatpush1.msra.mxu1 %v4925_v37  ;;  %v4957_v37 = vld [vmem:[#allocation7 + $0xf8] sm:$0xff] }
 0x20c   :  { %808 = vmatpush1.msra.mxu0 %v4905_v11  ;;  %6805 = vst [vmem:[#allocation77_spill] sm:$0xff] %v4931_v34  ;;  %v4937_v11 = vld [vmem:[#allocation8 + $0x40] sm:$0xff]  ;;  %882 = vmatprep.subr.mxu1 %v4931_v34  ;;  %6812 = vst [vmem:[#allocation84_spill] sm:$0xff] %v4957_v37 }
 0x20d   :  { %809 = vmatprep.subr.mxu0 %v4911_v55  ;;  %6807 = vst [vmem:[#allocation79_spill] sm:$0xff] %v4937_v11  ;;  %v4943_v55 = vld [vmem:[#allocation8 + $0x18] sm:$0xff]  ;;  %883 = vmatpush1.msra.mxu1 %v4937_v11 }
 0x20e   :  { %810 = vmatpush1.msra.mxu0 %v4917_v61  ;;  %6809 = vst [vmem:[#allocation81_spill] sm:$0xff] %v4943_v55  ;;  %v4949_v61 = vld [vmem:[#allocation8 + $0x2f8] sm:$0xff]  ;;  %884 = vmatprep.subr.mxu1 %v4943_v55 }
 0x20f   :  { %811 = vmatprep.subr.mxu0 %v4923_v49  ;;  %6811 = vst [vmem:[#allocation83_spill] sm:$0xff] %v4949_v61  ;;  %885 = vmatpush1.msra.mxu1 %v4947_v39  ;;  %v4969_v39 = vld [vmem:[#allocation8 + $0x2f0] sm:$0xff] }
 0x210   :  { %812 = vmatpush1.msra.mxu0 %v4929_v23  ;;  %3288 = vmatprep.subr.mxu1 %v4957_v37  ;;  %6814 = vst [vmem:[#allocation86_spill] sm:$0xff] %v4969_v39  ;;  %v4978_v37 = vld [vmem:[#allocation8 + $0x298] sm:$0xff]  ;;  %v4996_v23 = vld [vmem:[#allocation7 + $0x70] sm:$0xff] }
 0x211   :  { %813 = vmatprep.subr.mxu0 %v4935_v48  ;;  %v4963_v48 = vld [vmem:[%s6415_s5] sm:$0x3]  ;;  %6817 = vst [vmem:[#allocation89_spill] sm:$0xff] %v4978_v37  ;;  %6824 = vst [vmem:[#allocation95_spill] sm:$0xff] %v4996_v23 }
 0x212   :  { %814 = vmatpush1.msra.mxu0 %v4941_v42  ;;  %6813 = vst [vmem:[#allocation85_spill] sm:$0xff] %v4963_v48  ;;  %v6818_v42 = vmov 0.0  }
 0x213   :  { %925 = vmatprep.subr.mxu0 %v4949_v61  ;;  %v4971_v61 = vld [vmem:[#allocation8 + $0x2c8] sm:$0xff] }
 0x214   :  { %6815 = vst [vmem:[#allocation87_spill] sm:$0xff] %v4971_v61 }
 0x28d   :  { %v779_v34 = vpop.xlane.xlu0 %778 }
 0x28e   :  { %3723 = vrcp.f32 %v779_v34  ;;  %v4975_v34 = vld [vmem:[#allocation8 + $0x2c0] sm:$0xff] }
 0x28f   :  { %6816 = vst [vmem:[#allocation88_spill] sm:$0xff] %v4975_v34 }
 0x29b   :  { %v3724_v5 = vpop.eup %3723 }
 0x29c   :  { %v781_v11 = vmul.f32 %v3724_v5, %v4845_v1  ;;  %v4982_v1 = vld [vmem:[#allocation8 + $0x290] sm:$0xff]  ;;  %v4988_v5 = vld [vmem:[#allocation8 + $0x268] sm:$0xff] }
 0x29d   :  { %6819 = vst [vmem:[#allocation90_spill] sm:$0xff] %v4982_v1  ;;  %6821 = vst [vmem:[#allocation92_spill] sm:$0xff] %v4988_v5 }
 0x29e   :  { %v4967_v55 = vsub.f32 %v781_v11, %v4963_v48  ;;  %v4984_v11 = vld [vmem:[#allocation7 + $0x78] sm:$0xff]  ;;  %v4990_v48 = vld [vmem:[#allocation7 + $0xf0] sm:$0xff] }
 0x29f   :  { %6820 = vst [vmem:[#allocation91_spill] sm:$0xff] %v4984_v11  ;;  %6822 = vst [vmem:[#allocation93_spill] sm:$0xff] %v4990_v48 }
 0x2a0   :  { %848 = vmatmul.mubr.f32.vlgmr.msra.gmra.mxu0 %v4967_v55  ;;  %919 = vmatmul.mubr.f32.vlgmr.msra.gmra.mxu1 %v4967_v55 }
 0x2a1   :  { %926 = vmatpush1.msra.mxu0 %v4969_v39  ;;  %989 = vmatprep.mubr.f32.mxu0 %v6818_v42  ;;  %v4994_v39 = vld [vmem:[#allocation8 + $0x260] sm:$0xff] }
 0x2a2   :  { %927 = vmatprep.subr.mxu0 %v4971_v61  ;;  %3289 = vmatpush3.msra.mxu1 %v4984_v11  ;;  %6823 = vst [vmem:[#allocation94_spill] sm:$0xff] %v4994_v39  ;;  %v5000_v61 = vld [vmem:[#allocation8 + $0x238] sm:$0xff]  ;;  %v5002_v11 = vld [vmem:[#allocation7 + $0xe8] sm:$0xff] }
 0x2a3   :  { %928 = vmatpush1.msra.mxu0 %v4975_v34  ;;  %3290 = vmatprep.subr.mxu1 %v4990_v48  ;;  %6825 = vst [vmem:[#allocation96_spill] sm:$0xff] %v5000_v61  ;;  %6826 = vst [vmem:[#allocation97_spill] sm:$0xff] %v5002_v11  ;;  %v5006_v34 = vld [vmem:[#allocation8 + $0x230] sm:$0xff]  ;;  %v5008_v48 = vld [vmem:[#allocation7 + $0x68] sm:$0xff] }
 0x2a4   :  { %929 = vmatprep.subr.mxu0 %v4978_v37  ;;  %3291 = vmatpush3.msra.mxu1 %v4996_v23  ;;  %6827 = vst [vmem:[#allocation98_spill] sm:$0xff] %v5006_v34  ;;  %6828 = vst [vmem:[#allocation99_spill] sm:$0xff] %v5008_v48  ;;  %v5012_v37 = vld [vmem:[#allocation8 + $0x208] sm:$0xff]  ;;  %v5014_v23 = vld [vmem:[#allocation7 + $0xe0] sm:$0xff] }
 0x2a5   :  { %930 = vmatpush1.msra.mxu0 %v4982_v1  ;;  %3292 = vmatprep.subr.mxu1 %v5002_v11  ;;  %6829 = vst [vmem:[#allocation100_spill] sm:$0xff] %v5012_v37  ;;  %6830 = vst [vmem:[#allocation101_spill] sm:$0xff] %v5014_v23  ;;  %v5018_v1 = vld [vmem:[#allocation8 + $0x200] sm:$0xff] }
 0x2a6   :  { %931 = vmatprep.subr.mxu0 %v4988_v5  ;;  %3293 = vmatpush3.msra.mxu1 %v5008_v48  ;;  %6831 = vst [vmem:[#allocation102_spill] sm:$0xff] %v5018_v1  ;;  %v5020_v11 = vld [vmem:[#allocation7 + $0x60] sm:$0xff]  ;;  %v5024_v5 = vld [vmem:[#allocation8 + $0x1d8] sm:$0xff] }
 0x2a7   :  { %932 = vmatpush1.msra.mxu0 %v4994_v39  ;;  %3294 = vmatprep.subr.mxu1 %v5014_v23  ;;  %6832 = vst [vmem:[#allocation103_spill] sm:$0xff] %v5020_v11  ;;  %6833 = vst [vmem:[#allocation104_spill] sm:$0xff] %v5024_v5  ;;  %v5026_v48 = vld [vmem:[#allocation7 + $0xd8] sm:$0xff]  ;;  %v5030_v39 = vld [vmem:[#allocation8 + $0x1d0] sm:$0xff] }
 0x2a8   :  { %933 = vmatprep.subr.mxu0 %v5000_v61  ;;  %3295 = vmatpush3.msra.mxu1 %v5020_v11  ;;  %6834 = vst [vmem:[#allocation105_spill] sm:$0xff] %v5026_v48  ;;  %6835 = vst [vmem:[#allocation106_spill] sm:$0xff] %v5030_v39  ;;  %v5032_v23 = vld [vmem:[#allocation7 + $0x58] sm:$0xff]  ;;  %v5036_v61 = vld [vmem:[#allocation8 + $0x1a8] sm:$0xff] }
 0x2a9   :  { %934 = vmatpush1.msra.mxu0 %v5006_v34  ;;  %3296 = vmatprep.subr.mxu1 %v5026_v48  ;;  %6836 = vst [vmem:[#allocation107_spill] sm:$0xff] %v5032_v23  ;;  %6837 = vst [vmem:[#allocation108_spill] sm:$0xff] %v5036_v61  ;;  %v5038_v11 = vld [vmem:[#allocation7 + $0xd0] sm:$0xff]  ;;  %v5042_v34 = vld [vmem:[#allocation8 + $0x1a0] sm:$0xff] }
 0x2aa   :  { %935 = vmatprep.subr.mxu0 %v5012_v37  ;;  %3297 = vmatpush3.msra.mxu1 %v5032_v23  ;;  %6838 = vst [vmem:[#allocation109_spill] sm:$0xff] %v5038_v11  ;;  %6839 = vst [vmem:[#allocation110_spill] sm:$0xff] %v5042_v34  ;;  %v5044_v48 = vld [vmem:[#allocation7 + $0x50] sm:$0xff]  ;;  %v5048_v37 = vld [vmem:[#allocation8 + $0x178] sm:$0xff] }
 0x2ab   :  { %936 = vmatpush1.msra.mxu0 %v5018_v1  ;;  %3298 = vmatprep.subr.mxu1 %v5038_v11  ;;  %6840 = vst [vmem:[#allocation111_spill] sm:$0xff] %v5044_v48  ;;  %6841 = vst [vmem:[#allocation112_spill] sm:$0xff] %v5048_v37  ;;  %v5050_v23 = vld [vmem:[#allocation7 + $0xc8] sm:$0xff]  ;;  %v5054_v1 = vld [vmem:[#allocation8 + $0x170] sm:$0xff] }
 0x2ac   :  { %937 = vmatprep.subr.mxu0 %v5024_v5  ;;  %3299 = vmatpush3.msra.mxu1 %v5044_v48  ;;  %6842 = vst [vmem:[#allocation113_spill] sm:$0xff] %v5050_v23  ;;  %6843 = vst [vmem:[#allocation114_spill] sm:$0xff] %v5054_v1  ;;  %v5056_v11 = vld [vmem:[#allocation7 + $0x48] sm:$0xff]  ;;  %v5062_v48 = vld [vmem:[#allocation7 + $0xc0] sm:$0xff] }
 0x2ad   :  { %938 = vmatpush1.msra.mxu0 %v5030_v39  ;;  %3300 = vmatprep.subr.mxu1 %v5050_v23  ;;  %6844 = vst [vmem:[#allocation115_spill] sm:$0xff] %v5056_v11  ;;  %v5060_v5 = vld [vmem:[#allocation8 + $0x148] sm:$0xff]  ;;  %6846 = vst [vmem:[#allocation117_spill] sm:$0xff] %v5062_v48  ;;  %v5066_v39 = vld [vmem:[#allocation8 + $0x140] sm:$0xff] }
 0x2ae   :  { %939 = vmatprep.subr.mxu0 %v5036_v61  ;;  %3301 = vmatpush3.msra.mxu1 %v5056_v11  ;;  %6845 = vst [vmem:[#allocation116_spill] sm:$0xff] %v5060_v5  ;;  %6847 = vst [vmem:[#allocation118_spill] sm:$0xff] %v5066_v39  ;;  %v5068_v23 = vld [vmem:[#allocation7 + $0x40] sm:$0xff]  ;;  %v5072_v61 = vld [vmem:[#allocation8 + $0x118] sm:$0xff] }
 0x2af   :  { %940 = vmatpush1.msra.mxu0 %v5042_v34  ;;  %3302 = vmatprep.subr.mxu1 %v5062_v48  ;;  %6848 = vst [vmem:[#allocation119_spill] sm:$0xff] %v5068_v23  ;;  %v5074_v11 = vld [vmem:[#allocation7 + $0xb8] sm:$0xff]  ;;  %v5078_v34 = vld [vmem:[#allocation8 + $0x110] sm:$0xff] }
 0x2b0   :  { %941 = vmatprep.subr.mxu0 %v5048_v37  ;;  %3303 = vmatpush3.msra.mxu1 %v5068_v23  ;;  %6849 = vst [vmem:[#allocation120_spill] sm:$0xff] %v5074_v11  ;;  %v5080_v48 = vld [vmem:[#allocation7 + $0x38] sm:$0xff]  ;;  %v5084_v37 = vld [vmem:[#allocation8 + $0xe8] sm:$0xff] }
 0x2b1   :  { %942 = vmatpush1.msra.mxu0 %v5054_v1  ;;  %3304 = vmatprep.subr.mxu1 %v5074_v11  ;;  %6850 = vst [vmem:[#allocation121_spill] sm:$0xff] %v5080_v48  ;;  %v5088_v1 = vld [vmem:[#allocation8 + $0xe0] sm:$0xff]  ;;  %v6852_v23 = vld [vmem:[#allocation20_spill] sm:$0xff] }
 0x2b2   :  { %943 = vmatprep.subr.mxu0 %v5060_v5  ;;  %3305 = vmatpush3.msra.mxu1 %v5080_v48  ;;  %6851 = vst [vmem:[#allocation122_spill] sm:$0xff] %v5088_v1  ;;  %v5092_v5 = vld [vmem:[#allocation8 + $0xb8] sm:$0xff]  ;;  %v6854_v11 = vld [vmem:[#allocation22_spill] sm:$0xff]  ;;  %v5096_v48 = vld [vmem:[#allocation8 + $0xb0] sm:$0xff] }
 0x2b3   :  { %944 = vmatpush1.msra.mxu0 %v5066_v39  ;;  %3306 = vmatprep.subr.mxu1 %v4400_v41  ;;  %6853 = vst [vmem:[#allocation20_spill] sm:$0xff] %v5092_v5  ;;  %v6855_v39 = vld [vmem:[#allocation25_spill] sm:$0xff]  ;;  %v5100_v41 = vld [vmem:[#allocation8 + $0x88] sm:$0xff] }
 0x2b4   :  { %945 = vmatprep.subr.mxu0 %v5072_v61  ;;  %3307 = vmatpush3.msra.mxu1 %v6852_v23  ;;  %v5104_v23 = vld [vmem:[#allocation8 + $0x80] sm:$0xff] }
 0x2b5   :  { %946 = vmatpush1.msra.mxu0 %v5078_v34  ;;  %3308 = vmatprep.subr.mxu1 %v6854_v11  ;;  %6856 = vst [vmem:[#allocation22_spill] sm:$0xff] %v5104_v23  ;;  %v5108_v11 = vld [vmem:[#allocation8 + $0x58] sm:$0xff] }
 0x2b6   :  { %947 = vmatprep.subr.mxu0 %v5084_v37  ;;  %3309 = vmatpush3.msra.mxu1 %v6855_v39  ;;  %6857 = vst [vmem:[#allocation25_spill] sm:$0xff] %v5108_v11  ;;  %v5112_v39 = vld [vmem:[#allocation8 + $0x50] sm:$0xff] }
 0x2b7   :  { %948 = vmatpush1.msra.mxu0 %v5088_v1  ;;  %3310 = vmatprep.subr.mxu1 %v4427_v50  ;;  %6858 = vst [vmem:[#allocation123_spill] sm:$0xff] %v5112_v39  ;;  %v6859_v1 = vld [vmem:[#allocation32_spill] sm:$0xff]  ;;  %v5116_v50 = vld [vmem:[#allocation8 + $0x28] sm:$0xff] }
 0x2b8   :  { %949 = vmatprep.subr.mxu0 %v5092_v5  ;;  %3311 = vmatpush3.msra.mxu1 %v4431_v52  ;;  %6860 = vst [vmem:[#allocation32_spill] sm:$0xff] %v5116_v50  ;;  %v6861_v5 = vld [vmem:[#allocation36_spill] sm:$0xff]  ;;  %v5120_v52 = vld [vmem:[#allocation8 + $0x20] sm:$0xff] }
 0x2b9   :  { %950 = vmatpush1.msra.mxu0 %v5096_v48  ;;  %3312 = vmatprep.subr.mxu1 %v4443_v60  ;;  %6862 = vst [vmem:[#allocation36_spill] sm:$0xff] %v5120_v52  ;;  %v5130_v60 = vld [vmem:[#allocation7 + $0x1f8] sm:$0xff] }
 0x2ba   :  { %951 = vmatprep.subr.mxu0 %v5100_v41  ;;  %3313 = vmatpush3.msra.mxu1 %v6859_v1  ;;  %6863 = vst [vmem:[#allocation124_spill] sm:$0xff] %v5130_v60  ;;  %v5133_v1 = vld [vmem:[#allocation7 + $0x178] sm:$0xff] }
 0x2bb   :  { %952 = vmatpush1.msra.mxu0 %v5104_v23  ;;  %3314 = vmatprep.subr.mxu1 %v6861_v5  ;;  %6864 = vst [vmem:[#allocation125_spill] sm:$0xff] %v5133_v1  ;;  %v5159_v5 = vld [vmem:[#allocation7 + $0x158] sm:$0xff] }
 0x2bc   :  { %953 = vmatprep.subr.mxu0 %v5108_v11  ;;  %3315 = vmatpush3.msra.mxu1 %v4475_v56  ;;  %v5137_v56 = vld [vmem:[#allocation7 + $0x1f0] sm:$0xff]  ;;  %6872 = vst [vmem:[#allocation133_spill] sm:$0xff] %v5159_v5 }
 0x2bd   :  { %954 = vmatpush1.msra.mxu0 %v5112_v39  ;;  %3316 = vmatprep.subr.mxu1 %v4484_v53  ;;  %6865 = vst [vmem:[#allocation126_spill] sm:$0xff] %v5137_v56  ;;  %v5141_v53 = vld [vmem:[#allocation7 + $0x170] sm:$0xff] }
 0x2be   :  { %955 = vmatprep.subr.mxu0 %v5116_v50  ;;  %3317 = vmatpush3.msra.mxu1 %v4495_v46  ;;  %6866 = vst [vmem:[#allocation127_spill] sm:$0xff] %v5141_v53  ;;  %v5147_v46 = vld [vmem:[#allocation7 + $0x168] sm:$0xff] }
 0x2bf   :  { %956 = vmatpush1.msra.mxu0 %v5120_v52  ;;  %3318 = vmatprep.subr.mxu1 %v4501_v47  ;;  %v5144_v47 = vld [vmem:[#allocation7 + $0x1e8] sm:$0xff]  ;;  %6868 = vst [vmem:[#allocation129_spill] sm:$0xff] %v5147_v46 }
 0x2c0   :  { %990 = vmatmul.mubr.f32.vlgmr.msra.gmra.mxu0 %v4967_v55  ;;  %3323 = vmatprep.subr.mxu0 %v5130_v60  ;;  %6867 = vst [vmem:[#allocation128_spill] sm:$0xff] %v5144_v47  ;;  %v5150_v55 = vld [vmem:[#allocation7 + $0x1e0] sm:$0xff] }
 0x2c1   :  { %3324 = vmatpush3.msra.mxu0 %v5133_v1  ;;  %3319 = vmatpush3.msra.mxu1 %v4511_v26  ;;  %6869 = vst [vmem:[#allocation130_spill] sm:$0xff] %v5150_v55  ;;  %v5153_v26 = vld [vmem:[#allocation7 + $0x160] sm:$0xff] }
 0x2c2   :  { %3325 = vmatprep.subr.mxu0 %v5137_v56  ;;  %3358 = vmatprep.subr.mxu1 %v4527_v32  ;;  %6870 = vst [vmem:[#allocation131_spill] sm:$0xff] %v5153_v26  ;;  %v5156_v32 = vld [vmem:[#allocation7 + $0x1d8] sm:$0xff]  ;;  %v6895_v60 = vld [vmem:[#allocation34_spill] sm:$0xff] }
 0x2c3   :  { %3326 = vmatpush3.msra.mxu0 %v5141_v53  ;;  %6871 = vst [vmem:[#allocation132_spill] sm:$0xff] %v5156_v32  ;;  %v6893_v53 = vld [vmem:[#allocation35_spill] sm:$0xff] }
 0x2c4   :  { %3327 = vmatprep.subr.mxu0 %v5144_v47  ;;  %v5162_v47 = vld [vmem:[#allocation7 + $0x1d0] sm:$0xff] }
 0x2c5   :  { %3328 = vmatpush3.msra.mxu0 %v5147_v46  ;;  %6873 = vst [vmem:[#allocation134_spill] sm:$0xff] %v5162_v47  ;;  %v5165_v46 = vld [vmem:[#allocation7 + $0x150] sm:$0xff] }
 0x2c6   :  { %3329 = vmatprep.subr.mxu0 %v5150_v55  ;;  %6874 = vst [vmem:[#allocation135_spill] sm:$0xff] %v5165_v46  ;;  %v5168_v55 = vld [vmem:[#allocation7 + $0x1c8] sm:$0xff] }
 0x2c7   :  { %3330 = vmatpush3.msra.mxu0 %v5153_v26  ;;  %6875 = vst [vmem:[#allocation136_spill] sm:$0xff] %v5168_v55  ;;  %v5171_v26 = vld [vmem:[#allocation7 + $0x148] sm:$0xff] }
 0x2c8   :  { %3331 = vmatprep.subr.mxu0 %v5156_v32  ;;  %6876 = vst [vmem:[#allocation137_spill] sm:$0xff] %v5171_v26  ;;  %v5174_v32 = vld [vmem:[#allocation7 + $0x1c0] sm:$0xff] }
 0x2c9   :  { %3332 = vmatpush3.msra.mxu0 %v5159_v5  ;;  %6877 = vst [vmem:[#allocation138_spill] sm:$0xff] %v5174_v32  ;;  %v5177_v5 = vld [vmem:[#allocation7 + $0x140] sm:$0xff] }
 0x2ca   :  { %3333 = vmatprep.subr.mxu0 %v5162_v47  ;;  %6878 = vst [vmem:[#allocation139_spill] sm:$0xff] %v5177_v5  ;;  %v5180_v47 = vld [vmem:[#allocation7 + $0x1b8] sm:$0xff] }
 0x2cb   :  { %3334 = vmatpush3.msra.mxu0 %v5165_v46  ;;  %6879 = vst [vmem:[#allocation140_spill] sm:$0xff] %v5180_v47  ;;  %v5183_v46 = vld [vmem:[#allocation7 + $0x138] sm:$0xff] }
 0x2cc   :  { %3335 = vmatprep.subr.mxu0 %v5168_v55  ;;  %6880 = vst [vmem:[#allocation141_spill] sm:$0xff] %v5183_v46  ;;  %v5186_v55 = vld [vmem:[#allocation7 + $0x1b0] sm:$0xff] }
 0x2cd   :  { %3336 = vmatpush3.msra.mxu0 %v5171_v26  ;;  %6881 = vst [vmem:[#allocation142_spill] sm:$0xff] %v5186_v55  ;;  %v5189_v26 = vld [vmem:[#allocation7 + $0x130] sm:$0xff] }
 0x2ce   :  { %3337 = vmatprep.subr.mxu0 %v5174_v32  ;;  %6882 = vst [vmem:[#allocation143_spill] sm:$0xff] %v5189_v26  ;;  %v5192_v32 = vld [vmem:[#allocation7 + $0x1a8] sm:$0xff] }
 0x2cf   :  { %3338 = vmatpush3.msra.mxu0 %v5177_v5  ;;  %6883 = vst [vmem:[#allocation144_spill] sm:$0xff] %v5192_v32  ;;  %v5195_v5 = vld [vmem:[#allocation7 + $0x128] sm:$0xff] }
 0x2d0   :  { %3339 = vmatprep.subr.mxu0 %v5180_v47  ;;  %6884 = vst [vmem:[#allocation145_spill] sm:$0xff] %v5195_v5  ;;  %v5198_v47 = vld [vmem:[#allocation7 + $0x1a0] sm:$0xff] }
 0x2d1   :  { %3340 = vmatpush3.msra.mxu0 %v5183_v46  ;;  %6885 = vst [vmem:[#allocation146_spill] sm:$0xff] %v5198_v47  ;;  %v5201_v46 = vld [vmem:[#allocation7 + $0x120] sm:$0xff] }
 0x2d2   :  { %3341 = vmatprep.subr.mxu0 %v5186_v55  ;;  %6886 = vst [vmem:[#allocation147_spill] sm:$0xff] %v5201_v46  ;;  %v5204_v55 = vld [vmem:[#allocation7 + $0x198] sm:$0xff] }
 0x2d3   :  { %3342 = vmatpush3.msra.mxu0 %v5189_v26  ;;  %6887 = vst [vmem:[#allocation148_spill] sm:$0xff] %v5204_v55  ;;  %v5207_v26 = vld [vmem:[#allocation7 + $0x118] sm:$0xff] }
 0x2d4   :  { %3343 = vmatprep.subr.mxu0 %v5192_v32  ;;  %6888 = vst [vmem:[#allocation149_spill] sm:$0xff] %v5207_v26  ;;  %v5210_v32 = vld [vmem:[#allocation7 + $0x190] sm:$0xff] }
 0x2d5   :  { %3344 = vmatpush3.msra.mxu0 %v5195_v5  ;;  %6889 = vst [vmem:[#allocation150_spill] sm:$0xff] %v5210_v32  ;;  %v5213_v5 = vld [vmem:[#allocation7 + $0x110] sm:$0xff] }
 0x2d6   :  { %3345 = vmatprep.subr.mxu0 %v5198_v47  ;;  %6890 = vst [vmem:[#allocation151_spill] sm:$0xff] %v5213_v5  ;;  %v5216_v47 = vld [vmem:[#allocation7 + $0x188] sm:$0xff] }
 0x2d7   :  { %3346 = vmatpush3.msra.mxu0 %v5201_v46  ;;  %6891 = vst [vmem:[#allocation152_spill] sm:$0xff] %v5216_v47  ;;  %v6892_v46 = vld [vmem:[#allocation31_spill] sm:$0xff] }
 0x2d8   :  { %3347 = vmatprep.subr.mxu0 %v5204_v55 }
 0x2d9   :  { %3348 = vmatpush3.msra.mxu0 %v5207_v26 }
 0x2da   :  { %3349 = vmatprep.subr.mxu0 %v5210_v32 }
 0x2db   :  { %3350 = vmatpush3.msra.mxu0 %v5213_v5 }
 0x2dc   :  { %3351 = vmatprep.subr.mxu0 %v5216_v47  ;;  %v6894_v47 = vld [vmem:[#allocation30_spill] sm:$0xff] }
 0x2dd   :  { %3352 = vmatpush3.msra.mxu0 %v4497_v58 }
 0x2de   :  { %3353 = vmatprep.subr.mxu0 %v4503_v38 }
 0x2df   :  { %3354 = vmatpush3.msra.mxu0 %v4518_v44 }
 0x2e0   :  { %1298 = vmatprep.subr.mxu0 %v4757_v54 }
 0x360   :  { %v849_v26 = vpop.f32.mrf.mxu0  ;;  %v920_v55 = vpop.f32.mrf.mxu1 }
 0x361   :  { %v1027_v32 = vmul.f32 %v6892_v46, %v849_v26  ;;  %v1029_v56 = vmul.f32 %v6893_v53, %v920_v55 }
 0x362   :  { %v851_v1 = vpop.f32.mrf.mxu0  ;;  %v922_v5 = vpop.f32.mrf.mxu1 }
 0x363   :  { %vm1033_vm8 = vcmp.gt.f32.partialorder %v1027_v32, 0.0  ;;  %vm1039_vm9 = vcmp.lt.f32.partialorder %v1027_v32, 0.0  ;;  %vm1035_vm10 = vcmp.gt.f32.partialorder %v1029_v56, 0.0  ;;  %vm1041_vm11 = vcmp.lt.f32.partialorder %v1029_v56, 0.0 }
 0x364   :  { %v1045_v58 = vsel %vm1039_vm9, -0.05, %v6818_v42  ;;  %v1047_v38 = vsel %vm1041_vm11, -0.05, %v6818_v42  ;;  %v1028_v44 = vmul.f32 %v6894_v47, %v851_v1  ;;  %v1030_v54 = vmul.f32 %v6895_v60, %v922_v5 }
 0x365   :  { %v1051_v52 = vsel %vm1033_vm8, 0.05, %v1045_v58  ;;  %v1053_v26 = vsel %vm1035_vm10, 0.05, %v1047_v38  ;;  %v6923_v38 = vld [vmem:[#allocation27_spill] sm:$0xff] }
 0x366   :  { %vm1034_vm12 = vcmp.gt.f32.partialorder %v1028_v44, 0.0  ;;  %vm1040_vm13 = vcmp.lt.f32.partialorder %v1028_v44, 0.0  ;;  %vm1036_vm14 = vcmp.gt.f32.partialorder %v1030_v54, 0.0  ;;  %vm1042_vm15 = vcmp.lt.f32.partialorder %v1030_v54, 0.0  ;;  %v6924_v44 = vld [vmem:[#allocation28_spill] sm:$0xff]  ;;  %v6925_v54 = vld [vmem:[#allocation29_spill] sm:$0xff] }
 0x367   :  { %v1046_v55 = vsel %vm1040_vm13, -0.05, %v6818_v42  ;;  %v1063_v53 = vmax.f32 %v1051_v52, 0.0  ;;  %v1048_v56 = vsel %vm1042_vm15, -0.05, %v6818_v42  ;;  %v1065_v50 = vmax.f32 %v1053_v26, 0.0 }
 0x368   :  { %v1052_v32 = vsel %vm1034_vm12, 0.05, %v1046_v55  ;;  %v1054_v39 = vsel %vm1036_vm14, 0.05, %v1048_v56  ;;  %v5242_v52 = vld [vmem:[#allocation7 + $0x278] sm:$0xff]  ;;  %v6929_v56 = vld [vmem:[#allocation55_spill] sm:$0xff] }
 0x369   :  { %v1064_v46 = vmax.f32 %v1052_v32, 0.0  ;;  %v1066_v11 = vmax.f32 %v1054_v39, 0.0  ;;  %v5233_v1 = vmin.f32 %v1063_v53, 0.1  ;;  %v5238_v58 = vmin.f32 %v1065_v50, 0.1 }
 0x36a   :  { %v5246_v39 = vld [vmem:[#allocation7 + $0x2f0] sm:$0xff]  ;;  %v5257_v50 = vld [vmem:[#allocation7 + $0x268] sm:$0xff]  ;;  %v6926_v26 = vld [vmem:[#allocation33_spill] sm:$0xff] }
 0x36b   :  { %v5231_v23 = vmin.f32 %v1064_v46, 0.1  ;;  %v5236_v5 = vmin.f32 %v1066_v11, 0.1  ;;  %v5249_v53 = vld [vmem:[#allocation7 + $0x270] sm:$0xff]  ;;  %v5253_v11 = vld [vmem:[#allocation7 + $0x2e8] sm:$0xff] }
 0x36c   :  { %v5261_v46 = vld [vmem:[#allocation7 + $0x2e0] sm:$0xff] }
 0x36d   :  { %1139 = vmatprep.mubr.f32.mxu1 %v5231_v23  ;;  %1209 = vmatprep.mubr.f32.mxu0 %v5236_v5  ;;  %v6927_v55 = vld [vmem:[#allocation37_spill] sm:$0xff]  ;;  %v6928_v32 = vld [vmem:[#allocation38_spill] sm:$0xff] }
 0x36e   :  { %1140 = vmatmul.mubr.f32.vlgmr.msra.gmra.mxu1 %v5233_v1  ;;  %1210 = vmatmul.mubr.f32.vlgmr.msra.gmra.mxu0 %v5238_v58 }
 0x36f   :  { %3359 = vmatpush3.msra.mxu1 %v5242_v52  ;;  %1299 = vmatpush1.msra.mxu0 %v4759_v36  ;;  %v6906_v36 = vld [vmem:[#allocation49_spill] sm:$0xff] }
 0x370   :  { %3360 = vmatprep.subr.mxu1 %v5246_v39  ;;  %1300 = vmatprep.subr.mxu0 %v4765_v51  ;;  %v6907_v51 = vld [vmem:[#allocation71_spill] sm:$0xff] }
 0x371   :  { %3361 = vmatpush3.msra.mxu1 %v5249_v53  ;;  %1301 = vmatpush1.msra.mxu0 %v4769_v62  ;;  %v6908_v62 = vld [vmem:[#allocation50_spill] sm:$0xff] }
 0x372   :  { %3362 = vmatprep.subr.mxu1 %v5253_v11  ;;  %1302 = vmatprep.subr.mxu0 %v4775_v0 }
 0x373   :  { %3363 = vmatpush3.msra.mxu1 %v5257_v50  ;;  %1303 = vmatpush1.msra.mxu0 %v4781_v3  ;;  %v6910_v3 = vld [vmem:[#allocation51_spill] sm:$0xff] }
 0x374   :  { %3364 = vmatprep.subr.mxu1 %v5261_v46  ;;  %1304 = vmatprep.subr.mxu0 %v4787_v7  ;;  %v6911_v7 = vld [vmem:[#allocation52_spill] sm:$0xff] }
 0x375   :  { %3365 = vmatpush3.msra.mxu1 %v4559_v59  ;;  %1305 = vmatpush1.msra.mxu0 %v4795_v13  ;;  %v6913_v13 = vld [vmem:[#allocation17_spill] sm:$0xff] }
 0x376   :  { %3366 = vmatprep.subr.mxu1 %v4563_v2  ;;  %1306 = vmatprep.subr.mxu0 %v4801_v17  ;;  %v6896_v2 = vld [vmem:[#allocation40_spill] sm:$0xff]  ;;  %v6915_v17 = vld [vmem:[#allocation18_spill] sm:$0xff] }
 0x377   :  { %3367 = vmatpush3.msra.mxu1 %v4567_v4  ;;  %1307 = vmatpush1.msra.mxu0 %v4807_v21  ;;  %v6917_v21 = vld [vmem:[#allocation19_spill] sm:$0xff] }
 0x378   :  { %3368 = vmatprep.subr.mxu1 %v4571_v6  ;;  %1308 = vmatprep.subr.mxu0 %v4813_v25  ;;  %v6918_v25 = vld [vmem:[#allocation80_spill] sm:$0xff] }
 0x379   :  { %3369 = vmatpush3.msra.mxu1 %v4575_v8  ;;  %1309 = vmatpush1.msra.mxu0 %v4819_v28  ;;  %v6897_v8 = vld [vmem:[#allocation39_spill] sm:$0xff] }
 0x37a   :  { %3370 = vmatprep.subr.mxu1 %v4579_v10  ;;  %1310 = vmatprep.subr.mxu0 %v4825_v30  ;;  %v6902_v28 = vld [vmem:[#allocation47_spill] sm:$0xff] }
 0x37b   :  { %3371 = vmatpush3.msra.mxu1 %v4583_v12  ;;  %1311 = vmatpush1.msra.mxu0 %v4831_v15  ;;  %v6903_v30 = vld [vmem:[#allocation67_spill] sm:$0xff]  ;;  %v6914_v15 = vld [vmem:[#allocation76_spill] sm:$0xff] }
 0x37c   :  { %3372 = vmatprep.subr.mxu1 %v4587_v14  ;;  %1312 = vmatprep.subr.mxu0 %v4837_v19  ;;  %v6916_v19 = vld [vmem:[#allocation78_spill] sm:$0xff] }
 0x37d   :  { %3373 = vmatpush3.msra.mxu1 %v4591_v16  ;;  %1313 = vmatpush1.msra.mxu0 %v4849_v43  ;;  %v6909_v43 = vld [vmem:[#allocation73_spill] sm:$0xff] }
 0x37e   :  { %3374 = vmatprep.subr.mxu1 %v4595_v18  ;;  %1314 = vmatprep.subr.mxu0 %v4855_v9  ;;  %v6898_v18 = vld [vmem:[#allocation45_spill] sm:$0xff]  ;;  %v6912_v9 = vld [vmem:[#allocation16_spill] sm:$0xff] }
 0x37f   :  { %3375 = vmatpush3.msra.mxu1 %v4599_v20  ;;  %1315 = vmatpush1.msra.mxu0 %v4859_v57  ;;  %v6899_v20 = vld [vmem:[#allocation63_spill] sm:$0xff]  ;;  %v6919_v57 = vld [vmem:[#allocation21_spill] sm:$0xff] }
 0x380   :  { %3376 = vmatprep.subr.mxu1 %v4603_v22  ;;  %v991_v59 = vpop.f32.mrf.mxu0  ;;  %1316 = vmatprep.subr.mxu0 %v4865_v63  ;;  %v6921_v63 = vld [vmem:[#allocation26_spill] sm:$0xff] }
 0x381   :  { %v1031_v4 = vmul.f32 %v6896_v2, %v991_v59  ;;  %3377 = vmatpush3.msra.mxu1 %v4607_v24  ;;  %1317 = vmatpush1.msra.mxu0 %v4871_v45  ;;  %v6900_v24 = vld [vmem:[#allocation46_spill] sm:$0xff]  ;;  %v6922_v45 = vld [vmem:[#allocation83_spill] sm:$0xff]  ;;  %v6930_v59 = vld [vmem:[#allocation56_spill] sm:$0xff] }
 0x382   :  { %3378 = vmatprep.subr.mxu1 %v4611_v29  ;;  %v993_v6 = vpop.f32.mrf.mxu0  ;;  %1318 = vmatprep.subr.mxu0 %v4875_v40  ;;  %v6901_v29 = vld [vmem:[#allocation65_spill] sm:$0xff] }
 0x383   :  { %vm1037_vm0 = vcmp.gt.f32.partialorder %v1031_v4, 0.0  ;;  %vm1043_vm1 = vcmp.lt.f32.partialorder %v1031_v4, 0.0  ;;  %v1032_v10 = vmul.f32 %v6897_v8, %v993_v6  ;;  %3379 = vmatpush3.msra.mxu1 %v4615_v31  ;;  %1319 = vmatpush1.msra.mxu0 %v4881_v27  ;;  %v6905_v27 = vld [vmem:[#allocation69_spill] sm:$0xff]  ;;  %v6932_v6 = vld [vmem:[#allocation58_spill] sm:$0xff] }
 0x384   :  { %v1049_v12 = vsel %vm1043_vm1, -0.05, %v6818_v42  ;;  %3380 = vmatprep.subr.mxu1 %v4619_v33  ;;  %1320 = vmatprep.subr.mxu0 %v6899_v20  ;;  %v6931_v4 = vld [vmem:[#allocation57_spill] sm:$0xff]  ;;  %v6938_v20 = vld [vmem:[#allocation66_spill] sm:$0xff] }
 0x385   :  { %v1055_v14 = vsel %vm1037_vm0, 0.05, %v1049_v12  ;;  %vm1038_vm2 = vcmp.gt.f32.partialorder %v1032_v10, 0.0  ;;  %vm1044_vm3 = vcmp.lt.f32.partialorder %v1032_v10, 0.0  ;;  %3381 = vmatpush3.msra.mxu1 %v4623_v35  ;;  %1321 = vmatpush1.msra.mxu0 %v6901_v29  ;;  %v6904_v35 = vld [vmem:[#allocation48_spill] sm:$0xff]  ;;  %v6933_v10 = vld [vmem:[#allocation59_spill] sm:$0xff] }
 0x386   :  { %v1050_v16 = vsel %vm1044_vm3, -0.05, %v6818_v42  ;;  %3382 = vmatprep.subr.mxu1 %v6898_v18  ;;  %v1067_v31 = vmax.f32 %v1055_v14, 0.0  ;;  %1322 = vmatprep.subr.mxu0 %v6903_v30  ;;  %v6934_v12 = vld [vmem:[#allocation60_spill] sm:$0xff]  ;;  %v6935_v14 = vld [vmem:[#allocation61_spill] sm:$0xff]  ;;  %v6945_v30 = vld [vmem:[#allocation79_spill] sm:$0xff] }
 0x387   :  { %v1056_v22 = vsel %vm1038_vm2, 0.05, %v1050_v16  ;;  %3383 = vmatpush3.msra.mxu1 %v6900_v24  ;;  %1323 = vmatpush1.msra.mxu0 %v6905_v27  ;;  %v6936_v16 = vld [vmem:[#allocation62_spill] sm:$0xff]  ;;  %v6937_v18 = vld [vmem:[#allocation64_spill] sm:$0xff] }
 0x388   :  { %v1068_v33 = vmax.f32 %v1056_v22, 0.0  ;;  %3384 = vmatprep.subr.mxu1 %v6902_v28  ;;  %1324 = vmatprep.subr.mxu0 %v6907_v51  ;;  %v5317_v0 = vmin.f32 %v1067_v31, 0.1  ;;  %v6939_v22 = vld [vmem:[#allocation68_spill] sm:$0xff]  ;;  %v6940_v24 = vld [vmem:[#allocation70_spill] sm:$0xff]  ;;  %v6944_v28 = vld [vmem:[#allocation77_spill] sm:$0xff] }
 0x389   :  { %3385 = vmatpush3.msra.mxu1 %v6904_v35  ;;  %1325 = vmatpush1.msra.mxu0 %v6909_v43  ;;  %v6941_v29 = vld [vmem:[#allocation72_spill] sm:$0xff]  ;;  %v6942_v31 = vld [vmem:[#allocation74_spill] sm:$0xff]  ;;  %v6946_v35 = vld [vmem:[#allocation81_spill] sm:$0xff] }
 0x38a   :  { %3386 = vmatprep.subr.mxu1 %v6906_v36  ;;  %v5312_v40 = vmin.f32 %v1068_v33, 0.1  ;;  %1326 = vmatprep.subr.mxu0 %v4923_v49  ;;  %v6920_v49 = vld [vmem:[#allocation23_spill] sm:$0xff]  ;;  %v6947_v27 = vld [vmem:[#allocation82_spill] sm:$0xff]  ;;  %v6948_v36 = vld [vmem:[#allocation84_spill] sm:$0xff] }
 0x38b   :  { %3387 = vmatpush3.msra.mxu1 %v6908_v62  ;;  %1327 = vmatpush1.msra.mxu0 %v6914_v15  ;;  %v6943_v33 = vld [vmem:[#allocation75_spill] sm:$0xff] }
 0x38c   :  { %3388 = vmatprep.subr.mxu1 %v6910_v3  ;;  %1279 = vmatprep.mubr.f32.mxu1 %v5312_v40 }
 0x38d   :  { %3389 = vmatpush3.msra.mxu1 %v6911_v7  ;;  %1328 = vmatprep.subr.mxu0 %v6916_v19 }
 0x38e   :  { %1280 = vmatmul.mubr.f32.vlgmr.msra.gmra.mxu1 %v5317_v0  ;;  %1369 = vmatprep.subr.mxu1 %v6912_v9 }
 0x38f   :  { %1370 = vmatpush1.msra.mxu1 %v6913_v13  ;;  %1329 = vmatpush1.msra.mxu0 %v6918_v25  ;;  %v6949_v25 = vld [vmem:[#allocation15_spill] sm:$0xff] }
 0x390   :  { %1371 = vmatprep.subr.mxu1 %v6915_v17  ;;  %1362 = vmatprep.mubr.f32.mxu0 %v6818_v42 }
 0x391   :  { %1372 = vmatpush1.msra.mxu1 %v6917_v21  ;;  %1433 = vmatprep.mubr.f32.mxu1 %v6818_v42 }
 0x392   :  { %1373 = vmatprep.subr.mxu1 %v6919_v57  ;;  %1440 = vmatprep.subr.mxu0 %v6922_v45 }
 0x393   :  { %1374 = vmatpush1.msra.mxu1 %v6920_v49 }
 0x394   :  { %1375 = vmatprep.subr.mxu1 %v6921_v63 }
 0x395   :  { %1376 = vmatpush1.msra.mxu1 %v6923_v38 }
 0x396   :  { %1377 = vmatprep.subr.mxu1 %v6924_v44 }
 0x397   :  { %1378 = vmatpush1.msra.mxu1 %v6925_v54 }
 0x398   :  { %1379 = vmatprep.subr.mxu1 %v6926_v26 }
 0x399   :  { %1380 = vmatpush1.msra.mxu1 %v6927_v55 }
 0x39a   :  { %1381 = vmatprep.subr.mxu1 %v6928_v32 }
 0x39b   :  { %1382 = vmatpush1.msra.mxu1 %v6929_v56  ;;  %v6950_v56 = vld [vmem:[#allocation85_spill] sm:$0xff] }
 0x39c   :  { %1383 = vmatprep.subr.mxu1 %v6930_v59 }
 0x39d   :  { %1384 = vmatpush1.msra.mxu1 %v6931_v4  ;;  %v6951_v4 = vld [vmem:[#allocation86_spill] sm:$0xff] }
 0x39e   :  { %1385 = vmatprep.subr.mxu1 %v6932_v6  ;;  %v6952_v6 = vld [vmem:[#allocation87_spill] sm:$0xff] }
 0x39f   :  { %1386 = vmatpush1.msra.mxu1 %v6933_v10  ;;  %v6953_v10 = vld [vmem:[#allocation91_spill] sm:$0xff] }
 0x3a0   :  { %1387 = vmatprep.subr.mxu1 %v6934_v12  ;;  %v6954_v12 = vld [vmem:[#allocation88_spill] sm:$0xff] }
 0x3a1   :  { %1388 = vmatpush1.msra.mxu1 %v6935_v14  ;;  %v6955_v14 = vld [vmem:[#allocation93_spill] sm:$0xff] }
 0x3a2   :  { %1389 = vmatprep.subr.mxu1 %v6936_v16  ;;  %v6956_v16 = vld [vmem:[#allocation89_spill] sm:$0xff] }
 0x3a3   :  { %1390 = vmatpush1.msra.mxu1 %v6937_v18  ;;  %v6957_v18 = vld [vmem:[#allocation95_spill] sm:$0xff] }
 0x3a4   :  { %1391 = vmatprep.subr.mxu1 %v6938_v20  ;;  %v6958_v20 = vld [vmem:[#allocation90_spill] sm:$0xff] }
 0x3a5   :  { %1392 = vmatpush1.msra.mxu1 %v6939_v22  ;;  %v6959_v22 = vld [vmem:[#allocation97_spill] sm:$0xff] }
 0x3a6   :  { %1393 = vmatprep.subr.mxu1 %v6940_v24  ;;  %v6960_v24 = vld [vmem:[#allocation92_spill] sm:$0xff] }
 0x3a7   :  { %1394 = vmatpush1.msra.mxu1 %v6941_v29  ;;  %v6961_v29 = vld [vmem:[#allocation99_spill] sm:$0xff] }
 0x3a8   :  { %1395 = vmatprep.subr.mxu1 %v6942_v31  ;;  %v6962_v31 = vld [vmem:[#allocation94_spill] sm:$0xff] }
 0x3a9   :  { %1396 = vmatpush1.msra.mxu1 %v6943_v33  ;;  %v6963_v33 = vld [vmem:[#allocation101_spill] sm:$0xff] }
 0x3aa   :  { %1397 = vmatprep.subr.mxu1 %v6944_v28  ;;  %v6964_v28 = vld [vmem:[#allocation96_spill] sm:$0xff] }
 0x3ab   :  { %1398 = vmatpush1.msra.mxu1 %v6945_v30  ;;  %v6965_v30 = vld [vmem:[#allocation103_spill] sm:$0xff] }
 0x3ac   :  { %1399 = vmatprep.subr.mxu1 %v6946_v35  ;;  %v6966_v35 = vld [vmem:[#allocation98_spill] sm:$0xff] }
 0x3ad   :  { %1400 = vmatpush1.msra.mxu1 %v6947_v27  ;;  %v6967_v27 = vld [vmem:[#allocation105_spill] sm:$0xff] }
 0x3ae   :  { %3393 = vmatprep.subr.mxu1 %v6948_v36  ;;  %v6968_v36 = vld [vmem:[#allocation100_spill] sm:$0xff] }
 0x42e   :  { %v3320_v51 = vpop.f32.mrf.mxu1  ;;  %v3355_v62 = vpop.f32.mrf.mxu0 }
 0x430   :  { %v3321_v43 = vpop.f32.mrf.mxu1  ;;  %v3356_v3 = vpop.f32.mrf.mxu0 }
 0x431   :  { %v3322_v7 = vadd.f32 %v3321_v43, %v3320_v51  ;;  %v3357_v9 = vadd.f32 %v3356_v3, %v3355_v62  ;;  %v6969_v51 = vld [vmem:[#allocation107_spill] sm:$0xff]  ;;  %v6970_v62 = vld [vmem:[#allocation102_spill] sm:$0xff]  ;;  %v6971_v43 = vld [vmem:[#allocation109_spill] sm:$0xff] }
 0x432   :  { %v6972_v3 = vld [vmem:[#allocation104_spill] sm:$0xff] }
 0x433   :  { %v1212_v17 = vadd.f32 %v3357_v9, %v3322_v7  ;;  %v6973_v7 = vld [vmem:[#allocation111_spill] sm:$0xff]  ;;  %v6974_v9 = vld [vmem:[#allocation106_spill] sm:$0xff] }
 0x44e   :  { %v3390_v13 = vpop.f32.mrf.mxu1 }
 0x450   :  { %v3391_v15 = vpop.f32.mrf.mxu1 }
 0x451   :  { %v3392_v19 = vadd.f32 %v3391_v15, %v3390_v13  ;;  %v6975_v13 = vld [vmem:[#allocation113_spill] sm:$0xff]  ;;  %v6976_v15 = vld [vmem:[#allocation108_spill] sm:$0xff] }
 0x453   :  { %v1282_v21 = vadd.f32 %v3392_v19, %v1212_v17  ;;  %v6977_v17 = vld [vmem:[#allocation115_spill] sm:$0xff]  ;;  %v6978_v19 = vld [vmem:[#allocation110_spill] sm:$0xff] }
 0x455   :  { %v1285_v57 = vadd.f32 %v1282_v21, %v6949_v25  ;;  %v6979_v21 = vld [vmem:[#allocation117_spill] sm:$0xff] }
 0x457   :  { %v1286_v49 = vsel %vm770_vm7, %v1285_v57, -inf }
 0x458   :  { %1287 = vmax.xlane.f32.xlu1 %v1286_v49  ;;  %v6981_v49 = vld [vmem:[#allocation119_spill] sm:$0xff] }
 0x4e1   :  { %v1288_v63 = vpop.xlane.xlu1 %1287 }
 0x4e2   :  { %v1289_v45 = vsub.f32 %v1285_v57, %v1288_v63  ;;  %v6980_v57 = vld [vmem:[#allocation112_spill] sm:$0xff]  ;;  %v6982_v63 = vld [vmem:[#allocation114_spill] sm:$0xff] }
 0x4e4   :  { %v1290_v38 = vmul.f32 1.442695, %v1289_v45  ;;  %v6983_v45 = vld [vmem:[#allocation120_spill] sm:$0xff] }
 0x4e6   :  { %3725 = vpow2.f32 %v1290_v38  ;;  %v6984_v38 = vld [vmem:[#allocation116_spill] sm:$0xff] }
 0x4f3   :  { %v3726_v44 = vpop.eup %3725 }
 0x4f4   :  { %v1292_v54 = vsel %vm770_vm7, %v3726_v44, 0.0 }
 0x4f5   :  { %1293 = vadd.xlane.f32.xlu1 %v1292_v54  ;;  %v6986_v54 = vld [vmem:[#allocation118_spill] sm:$0xff] }
 0x57e   :  { %v1294_v26 = vpop.xlane.xlu1 %1293 }
 0x57f   :  { %3727 = vrcp.f32 %v1294_v26  ;;  %v5408_v26 = vld [vmem:[#allocation7 + $0xb0] sm:$0xff] }
 0x58c   :  { %v3728_v55 = vpop.eup %3727 }
 0x58d   :  { %v1296_v32 = vmul.f32 %v3728_v55, %v3726_v44  ;;  %v6985_v44 = vld [vmem:[#allocation121_spill] sm:$0xff]  ;;  %v5412_v55 = vld [vmem:[#allocation7 + $0x30] sm:$0xff] }
 0x58f   :  { %v5367_v59 = vsub.f32 %v1296_v32, %v6950_v56  ;;  %v5416_v32 = vld [vmem:[#allocation7 + $0xa8] sm:$0xff] }
 0x590   :  { %v5420_v56 = vld [vmem:[#allocation7 + $0x28] sm:$0xff] }
 0x591   :  { %1363 = vmatmul.mubr.f32.vlgmr.msra.gmra.mxu0 %v5367_v59  ;;  %1434 = vmatmul.mubr.f32.vlgmr.msra.gmra.mxu1 %v5367_v59 }
 0x592   :  { %1441 = vmatpush1.msra.mxu0 %v6951_v4  ;;  %1504 = vmatprep.mubr.f32.mxu0 %v6818_v42  ;;  %v6987_v4 = vld [vmem:[#allocation122_spill] sm:$0xff] }
 0x593   :  { %1442 = vmatprep.subr.mxu0 %v6952_v6  ;;  %3394 = vmatpush3.msra.mxu1 %v6953_v10  ;;  %v5424_v6 = vld [vmem:[#allocation7 + $0xa0] sm:$0xff] }
 0x594   :  { %1443 = vmatpush1.msra.mxu0 %v6954_v12  ;;  %3395 = vmatprep.subr.mxu1 %v6955_v14  ;;  %v5428_v10 = vld [vmem:[#allocation7 + $0x20] sm:$0xff]  ;;  %v5440_v14 = vld [vmem:[#allocation7 + $0x90] sm:$0xff] }
 0x595   :  { %1444 = vmatprep.subr.mxu0 %v6956_v16  ;;  %3396 = vmatpush3.msra.mxu1 %v6957_v18  ;;  %v6989_v12 = vld [vmem:[#allocation22_spill] sm:$0xff]  ;;  %v6990_v16 = vld [vmem:[#allocation25_spill] sm:$0xff]  ;;  %v5444_v18 = vld [vmem:[#allocation7 + $0x10] sm:$0xff] }
 0x596   :  { %1445 = vmatpush1.msra.mxu0 %v6958_v20  ;;  %3397 = vmatprep.subr.mxu1 %v6959_v22  ;;  %v5448_v20 = vld [vmem:[#allocation7 + $0x88] sm:$0xff] }
 0x597   :  { %1446 = vmatprep.subr.mxu0 %v6960_v24  ;;  %3398 = vmatpush3.msra.mxu1 %v6961_v29  ;;  %v5452_v22 = vld [vmem:[#allocation7 + $0x8] sm:$0xff]  ;;  %v6993_v24 = vld [vmem:[#allocation36_spill] sm:$0xff]  ;;  %v5456_v29 = vld [vmem:[#allocation7 + $0x80] sm:$0xff] }
 0x598   :  { %1447 = vmatpush1.msra.mxu0 %v6962_v31  ;;  %3399 = vmatprep.subr.mxu1 %v6963_v33  ;;  %v6994_v31 = vld [vmem:[#allocation124_spill] sm:$0xff]  ;;  %v6995_v33 = vld [vmem:[#allocation125_spill] sm:$0xff] }
 0x599   :  { %1448 = vmatprep.subr.mxu0 %v6964_v28  ;;  %3400 = vmatpush3.msra.mxu1 %v6965_v30  ;;  %v5462_v28 = vld [vmem:[#allocation7] sm:$0xff] }
 0x59a   :  { %1449 = vmatpush1.msra.mxu0 %v6966_v35  ;;  %3401 = vmatprep.subr.mxu1 %v6967_v27  ;;  %v6996_v30 = vld [vmem:[#allocation126_spill] sm:$0xff]  ;;  %v5466_v35 = vld [vmem:[#allocation7 + $0x2f8] sm:$0xff]  ;;  %v6997_v27 = vld [vmem:[#allocation127_spill] sm:$0xff] }
 0x59b   :  { %1450 = vmatprep.subr.mxu0 %v6968_v36  ;;  %3402 = vmatpush3.msra.mxu1 %v6969_v51  ;;  %v6998_v36 = vld [vmem:[#allocation128_spill] sm:$0xff]  ;;  %v6999_v51 = vld [vmem:[#allocation129_spill] sm:$0xff] }
 0x59c   :  { %1451 = vmatpush1.msra.mxu0 %v6970_v62  ;;  %3403 = vmatprep.subr.mxu1 %v6971_v43  ;;  %v7001_v62 = vld [vmem:[#allocation131_spill] sm:$0xff]  ;;  %v7002_v43 = vld [vmem:[#allocation132_spill] sm:$0xff] }
 0x59d   :  { %1452 = vmatprep.subr.mxu0 %v6972_v3  ;;  %3404 = vmatpush3.msra.mxu1 %v6973_v7  ;;  %v7003_v3 = vld [vmem:[#allocation133_spill] sm:$0xff]  ;;  %v7004_v7 = vld [vmem:[#allocation134_spill] sm:$0xff] }
 0x59e   :  { %1453 = vmatpush1.msra.mxu0 %v6974_v9  ;;  %3405 = vmatprep.subr.mxu1 %v6975_v13  ;;  %v7005_v9 = vld [vmem:[#allocation135_spill] sm:$0xff]  ;;  %v7006_v13 = vld [vmem:[#allocation136_spill] sm:$0xff] }
 0x59f   :  { %1454 = vmatprep.subr.mxu0 %v6976_v15  ;;  %3406 = vmatpush3.msra.mxu1 %v6977_v17  ;;  %v7007_v15 = vld [vmem:[#allocation137_spill] sm:$0xff]  ;;  %v7008_v17 = vld [vmem:[#allocation138_spill] sm:$0xff] }
 0x5a0   :  { %1455 = vmatpush1.msra.mxu0 %v6978_v19  ;;  %3407 = vmatprep.subr.mxu1 %v6979_v21  ;;  %v7009_v19 = vld [vmem:[#allocation139_spill] sm:$0xff]  ;;  %v7010_v21 = vld [vmem:[#allocation140_spill] sm:$0xff] }
 0x5a1   :  { %1456 = vmatprep.subr.mxu0 %v6980_v57  ;;  %3408 = vmatpush3.msra.mxu1 %v6981_v49  ;;  %v7011_v57 = vld [vmem:[#allocation141_spill] sm:$0xff]  ;;  %v7012_v49 = vld [vmem:[#allocation142_spill] sm:$0xff] }
 0x5a2   :  { %1457 = vmatpush1.msra.mxu0 %v6982_v63  ;;  %3409 = vmatprep.subr.mxu1 %v6983_v45  ;;  %v7013_v63 = vld [vmem:[#allocation143_spill] sm:$0xff]  ;;  %v7014_v45 = vld [vmem:[#allocation144_spill] sm:$0xff] }
 0x5a3   :  { %1458 = vmatprep.subr.mxu0 %v6984_v38  ;;  %3410 = vmatpush3.msra.mxu1 %v6985_v44  ;;  %v7015_v38 = vld [vmem:[#allocation145_spill] sm:$0xff]  ;;  %v7016_v44 = vld [vmem:[#allocation146_spill] sm:$0xff] }
 0x5a4   :  { %1459 = vmatpush1.msra.mxu0 %v6986_v54  ;;  %3411 = vmatprep.subr.mxu1 %v5408_v26  ;;  %v7017_v54 = vld [vmem:[#allocation147_spill] sm:$0xff] }
 0x5a5   :  { %1460 = vmatprep.subr.mxu0 %v5072_v61  ;;  %3412 = vmatpush3.msra.mxu1 %v5412_v55  ;;  %v6988_v61 = vld [vmem:[#allocation20_spill] sm:$0xff] }
 0x5a6   :  { %1461 = vmatpush1.msra.mxu0 %v5078_v34  ;;  %3413 = vmatprep.subr.mxu1 %v5416_v32  ;;  %v5432_v34 = vld [vmem:[#allocation7 + $0x98] sm:$0xff] }
 0x5a7   :  { %1462 = vmatprep.subr.mxu0 %v5084_v37  ;;  %3414 = vmatpush3.msra.mxu1 %v5420_v56  ;;  %v5436_v37 = vld [vmem:[#allocation7 + $0x18] sm:$0xff] }
 0x5a8   :  { %1463 = vmatpush1.msra.mxu0 %v6987_v4  ;;  %3415 = vmatprep.subr.mxu1 %v5424_v6  ;;  %v7018_v4 = vld [vmem:[#allocation148_spill] sm:$0xff] }
 0x5a9   :  { %1464 = vmatprep.subr.mxu0 %v6988_v61  ;;  %3416 = vmatpush3.msra.mxu1 %v5428_v10  ;;  %v7019_v61 = vld [vmem:[#allocation149_spill] sm:$0xff] }
 0x5aa   :  { %1465 = vmatpush1.msra.mxu0 %v5096_v48  ;;  %3417 = vmatprep.subr.mxu1 %v5432_v34  ;;  %v6991_v48 = vld [vmem:[#allocation123_spill] sm:$0xff] }
 0x5ab   :  { %1466 = vmatprep.subr.mxu0 %v5100_v41  ;;  %3418 = vmatpush3.msra.mxu1 %v5436_v37  ;;  %v6992_v41 = vld [vmem:[#allocation32_spill] sm:$0xff] }
 0x5ac   :  { %1467 = vmatpush1.msra.mxu0 %v6989_v12  ;;  %3419 = vmatprep.subr.mxu1 %v5440_v14  ;;  %v7020_v12 = vld [vmem:[#allocation150_spill] sm:$0xff] }
 0x5ad   :  { %1468 = vmatprep.subr.mxu0 %v6990_v16  ;;  %3420 = vmatpush3.msra.mxu1 %v5444_v18  ;;  %v7021_v16 = vld [vmem:[#allocation151_spill] sm:$0xff] }
 0x5ae   :  { %1469 = vmatpush1.msra.mxu0 %v6991_v48  ;;  %3421 = vmatprep.subr.mxu1 %v5448_v20  ;;  %v7022_v48 = vld [vmem:[#allocation152_spill] sm:$0xff] }
 0x5af   :  { %1470 = vmatprep.subr.mxu0 %v6992_v41  ;;  %3422 = vmatpush3.msra.mxu1 %v5452_v22  ;;  %v5495_v41 = vld [vmem:[#allocation7 + $0x108] sm:$0xff] }
 0x5b0   :  { %1471 = vmatpush1.msra.mxu0 %v6993_v24  ;;  %3423 = vmatprep.subr.mxu1 %v5456_v29  ;;  %v5498_v24 = vld [vmem:[#allocation7 + $0x180] sm:$0xff] }
 0x5b1   :  { %1505 = vmatmul.mubr.f32.vlgmr.msra.gmra.mxu0 %v5367_v59  ;;  %3428 = vmatprep.subr.mxu0 %v6994_v31  ;;  %v7000_v59 = vld [vmem:[#allocation130_spill] sm:$0xff] }
 0x5b2   :  { %3429 = vmatpush3.msra.mxu0 %v6995_v33  ;;  %3424 = vmatpush3.msra.mxu1 %v5462_v28  ;;  %v5501_v31 = vld [vmem:[#allocation7 + $0x100] sm:$0xff]  ;;  %v5504_v33 = vld [vmem:[#allocation8 + $0x2d8] sm:$0xff] }
 0x5b3   :  { %3430 = vmatprep.subr.mxu0 %v6996_v30  ;;  %3463 = vmatprep.subr.mxu1 %v5466_v35 }
 0x5b4   :  { %3431 = vmatpush3.msra.mxu0 %v6997_v27 }
 0x5b5   :  { %3432 = vmatprep.subr.mxu0 %v6998_v36  ;;  %v7023_v36 = vld [vmem:[#allocation31_spill] sm:$0xff] }
 0x5b6   :  { %3433 = vmatpush3.msra.mxu0 %v6999_v51 }
 0x5b7   :  { %3434 = vmatprep.subr.mxu0 %v7000_v59  ;;  %v7024_v59 = vld [vmem:[#allocation35_spill] sm:$0xff] }
 0x5b8   :  { %3435 = vmatpush3.msra.mxu0 %v7001_v62 }
 0x5b9   :  { %3436 = vmatprep.subr.mxu0 %v7002_v43 }
 0x5ba   :  { %3437 = vmatpush3.msra.mxu0 %v7003_v3 }
 0x5bb   :  { %3438 = vmatprep.subr.mxu0 %v7004_v7 }
 0x5bc   :  { %3439 = vmatpush3.msra.mxu0 %v7005_v9 }
 0x5bd   :  { %3440 = vmatprep.subr.mxu0 %v7006_v13 }
 0x5be   :  { %3441 = vmatpush3.msra.mxu0 %v7007_v15 }
 0x5bf   :  { %3442 = vmatprep.subr.mxu0 %v7008_v17 }
 0x5c0   :  { %3443 = vmatpush3.msra.mxu0 %v7009_v19 }
 0x5c1   :  { %3444 = vmatprep.subr.mxu0 %v7010_v21 }
 0x5c2   :  { %3445 = vmatpush3.msra.mxu0 %v7011_v57 }
 0x5c3   :  { %3446 = vmatprep.subr.mxu0 %v7012_v49 }
 0x5c4   :  { %3447 = vmatpush3.msra.mxu0 %v7013_v63 }
 0x5c5   :  { %3448 = vmatprep.subr.mxu0 %v7014_v45 }
 0x5c6   :  { %3449 = vmatpush3.msra.mxu0 %v7015_v38 }
 0x5c7   :  { %3450 = vmatprep.subr.mxu0 %v7016_v44 }
 0x5c8   :  { %3451 = vmatpush3.msra.mxu0 %v7017_v54 }
 0x5c9   :  { %3452 = vmatprep.subr.mxu0 %v7018_v4 }
 0x5ca   :  { %3453 = vmatpush3.msra.mxu0 %v7019_v61 }
 0x5cb   :  { %3454 = vmatprep.subr.mxu0 %v7020_v12 }
 0x5cc   :  { %3455 = vmatpush3.msra.mxu0 %v7021_v16 }
 0x5cd   :  { %3456 = vmatprep.subr.mxu0 %v7022_v48 }
 0x5ce   :  { %3457 = vmatpush3.msra.mxu0 %v5495_v41 }
 0x5cf   :  { %3458 = vmatprep.subr.mxu0 %v5498_v24 }
 0x5d0   :  { %3459 = vmatpush3.msra.mxu0 %v5501_v31 }
 0x5d1   :  { %1782 = vmatprep.subr.mxu0 %v5504_v33 }
 0x651   :  { %v1364_v30 = vpop.f32.mrf.mxu0  ;;  %v1435_v27 = vpop.f32.mrf.mxu1 }
 0x652   :  { %v1511_v51 = vmul.f32 %v1364_v30, %v7023_v36  ;;  %v1513_v62 = vmul.f32 %v1435_v27, %v7024_v59  ;;  %v5541_v27 = vld [vmem:[#allocation8 + $0x2a0] sm:$0xff] }
 0x653   :  { %v1366_v43 = vpop.f32.mrf.mxu0  ;;  %v1437_v3 = vpop.f32.mrf.mxu1 }
 0x654   :  { %vm1517_vm4 = vcmp.gt.f32.partialorder %v1511_v51, 0.0  ;;  %vm1523_vm5 = vcmp.lt.f32.partialorder %v1511_v51, 0.0  ;;  %vm1519_vm6 = vcmp.gt.f32.partialorder %v1513_v62, 0.0  ;;  %vm1525_vm8 = vcmp.lt.f32.partialorder %v1513_v62, 0.0  ;;  %v5558_v51 = vld [vmem:[#allocation7 + $0x2d8] sm:$0xff] }
 0x655   :  { %v1529_v7 = vsel %vm1523_vm5, -0.05, %v6818_v42  ;;  %v1531_v9 = vsel %vm1525_vm8, -0.05, %v6818_v42  ;;  %v1512_v13 = vmul.f32 %v1366_v43, %v6894_v47  ;;  %v1514_v15 = vmul.f32 %v1437_v3, %v6895_v60  ;;  %v5567_v62 = vld [vmem:[#allocation8 + $0x218] sm:$0xff]  ;;  %v5570_v43 = vld [vmem:[#allocation7 + $0x2d0] sm:$0xff] }
 0x656   :  { %v1535_v17 = vsel %vm1517_vm4, 0.05, %v1529_v7  ;;  %v1537_v19 = vsel %vm1519_vm6, 0.05, %v1531_v9  ;;  %v5573_v3 = vld [vmem:[#allocation8 + $0x210] sm:$0xff]  ;;  %v5579_v9 = vld [vmem:[#allocation8 + $0x1e8] sm:$0xff] }
 0x657   :  { %v1541_v21 = vadd.f32 %v1535_v17, %v5233_v1  ;;  %vm1518_vm9 = vcmp.gt.f32.partialorder %v1512_v13, 0.0  ;;  %vm1524_vm10 = vcmp.lt.f32.partialorder %v1512_v13, 0.0  ;;  %v1543_v57 = vadd.f32 %v1537_v19, %v5238_v58  ;;  %v5576_v7 = vld [vmem:[#allocation7 + $0x250] sm:$0xff]  ;;  %v5582_v13 = vld [vmem:[#allocation7 + $0x2c8] sm:$0xff]  ;;  %v5591_v19 = vld [vmem:[#allocation8 + $0x1b8] sm:$0xff] }
 0x658   :  { %v1530_v49 = vsel %vm1524_vm10, -0.05, %v6818_v42  ;;  %vm1520_vm11 = vcmp.gt.f32.partialorder %v1514_v15, 0.0  ;;  %vm1526_vm12 = vcmp.lt.f32.partialorder %v1514_v15, 0.0  ;;  %v5585_v15 = vld [vmem:[#allocation8 + $0x1e0] sm:$0xff]  ;;  %v5588_v17 = vld [vmem:[#allocation7 + $0x248] sm:$0xff] }
 0x659   :  { %v1536_v63 = vsel %vm1518_vm9, 0.05, %v1530_v49  ;;  %v1532_v45 = vsel %vm1526_vm12, -0.05, %v6818_v42  ;;  %v1547_v54 = vmax.f32 %v1541_v21, 0.0  ;;  %v1549_v61 = vmax.f32 %v1543_v57, 0.0 }
 0x65a   :  { %v1542_v38 = vadd.f32 %v1536_v63, %v5231_v23  ;;  %v1538_v44 = vsel %vm1520_vm11, 0.05, %v1532_v45  ;;  %v5533_v23 = vld [vmem:[#allocation8 + $0x2d0] sm:$0xff]  ;;  %7025 = vst [vmem:[#allocation34_spill] sm:$0xff] %v5588_v17  ;;  %7026 = vst [vmem:[#allocation45_spill] sm:$0xff] %v5591_v19  ;;  %v5594_v21 = vld [vmem:[#allocation7 + $0x2c0] sm:$0xff] }
 0x65b   :  { %v1544_v4 = vadd.f32 %v1538_v44, %v5236_v5  ;;  %v5521_v48 = vmin.f32 %v1547_v54, 0.1  ;;  %v5525_v30 = vmin.f32 %v1549_v61, 0.1  ;;  %v5537_v5 = vld [vmem:[#allocation8 + $0x2a8] sm:$0xff]  ;;  %7027 = vst [vmem:[#allocation63_spill] sm:$0xff] %v5594_v21 }
 0x65c   :  { %v1548_v12 = vmax.f32 %v1542_v38, 0.0  ;;  %v5597_v57 = vld [vmem:[#allocation8 + $0x1b0] sm:$0xff]  ;;  %v5600_v49 = vld [vmem:[#allocation7 + $0x240] sm:$0xff]  ;;  %v5603_v63 = vld [vmem:[#allocation8 + $0x188] sm:$0xff] }
 0x65d   :  { %v1550_v1 = vmax.f32 %v1544_v4, 0.0  ;;  %7028 = vst [vmem:[#allocation46_spill] sm:$0xff] %v5597_v57  ;;  %7029 = vst [vmem:[#allocation65_spill] sm:$0xff] %v5600_v49  ;;  %v5606_v45 = vld [vmem:[#allocation7 + $0x2b8] sm:$0xff]  ;;  %v5609_v44 = vld [vmem:[#allocation8 + $0x180] sm:$0xff] }
 0x65e   :  { %v5519_v16 = vmin.f32 %v1548_v12, 0.1  ;;  %7030 = vst [vmem:[#allocation47_spill] sm:$0xff] %v5603_v63  ;;  %7031 = vst [vmem:[#allocation67_spill] sm:$0xff] %v5606_v45  ;;  %v5613_v4 = vld [vmem:[#allocation7 + $0x238] sm:$0xff]  ;;  %v5619_v12 = vld [vmem:[#allocation7 + $0x2b0] sm:$0xff] }
 0x65f   :  { %v5523_v58 = vmin.f32 %v1550_v1, 0.1  ;;  %7032 = vst [vmem:[#allocation48_spill] sm:$0xff] %v5609_v44  ;;  %7033 = vst [vmem:[#allocation69_spill] sm:$0xff] %v5613_v4  ;;  %v5616_v61 = vld [vmem:[#allocation8 + $0x158] sm:$0xff] }
 0x660   :  { %1623 = vmatprep.mubr.f32.mxu1 %v5519_v16  ;;  %7034 = vst [vmem:[#allocation49_spill] sm:$0xff] %v5616_v61  ;;  %7035 = vst [vmem:[#allocation71_spill] sm:$0xff] %v5619_v12 }
 0x661   :  { %1693 = vmatprep.mubr.f32.mxu0 %v5523_v58  ;;  %1624 = vmatmul.mubr.f32.vlgmr.msra.gmra.mxu1 %v5521_v48 }
 0x662   :  { %1694 = vmatmul.mubr.f32.vlgmr.msra.gmra.mxu0 %v5525_v30  ;;  %3464 = vmatpush3.msra.mxu1 %v5242_v52  ;;  %v5545_v52 = vld [vmem:[#allocation8 + $0x278] sm:$0xff] }
 0x663   :  { %3465 = vmatprep.subr.mxu1 %v5246_v39  ;;  %1783 = vmatpush1.msra.mxu0 %v5533_v23  ;;  %v5549_v39 = vld [vmem:[#allocation8 + $0x270] sm:$0xff] }
 0x664   :  { %3466 = vmatpush3.msra.mxu1 %v5249_v53  ;;  %1784 = vmatprep.subr.mxu0 %v5537_v5  ;;  %v5552_v53 = vld [vmem:[#allocation7 + $0x260] sm:$0xff] }
 0x665   :  { %3467 = vmatprep.subr.mxu1 %v5253_v11  ;;  %1785 = vmatpush1.msra.mxu0 %v5541_v27  ;;  %v5555_v11 = vld [vmem:[#allocation8 + $0x248] sm:$0xff] }
 0x666   :  { %3468 = vmatpush3.msra.mxu1 %v5257_v50  ;;  %1786 = vmatprep.subr.mxu0 %v5545_v52  ;;  %v5561_v50 = vld [vmem:[#allocation8 + $0x240] sm:$0xff] }
 0x667   :  { %3469 = vmatprep.subr.mxu1 %v5261_v46  ;;  %1787 = vmatpush1.msra.mxu0 %v5549_v39  ;;  %v5564_v46 = vld [vmem:[#allocation7 + $0x258] sm:$0xff] }
 0x668   :  { %3470 = vmatpush3.msra.mxu1 %v5552_v53  ;;  %1788 = vmatprep.subr.mxu0 %v5555_v11 }
 0x669   :  { %3471 = vmatprep.subr.mxu1 %v5558_v51  ;;  %1789 = vmatpush1.msra.mxu0 %v5561_v50 }
 0x66a   :  { %3472 = vmatpush3.msra.mxu1 %v5564_v46  ;;  %1790 = vmatprep.subr.mxu0 %v5567_v62 }
 0x66b   :  { %3473 = vmatprep.subr.mxu1 %v5570_v43  ;;  %1791 = vmatpush1.msra.mxu0 %v5573_v3 }
 0x66c   :  { %3474 = vmatpush3.msra.mxu1 %v5576_v7  ;;  %1792 = vmatprep.subr.mxu0 %v5579_v9 }
 0x66d   :  { %3475 = vmatprep.subr.mxu1 %v5582_v13  ;;  %1793 = vmatpush1.msra.mxu0 %v5585_v15 }
 0x66e   :  { %3476 = vmatpush3.msra.mxu1 %v5588_v17  ;;  %1794 = vmatprep.subr.mxu0 %v5591_v19 }
 0x66f   :  { %3477 = vmatprep.subr.mxu1 %v5594_v21  ;;  %1795 = vmatpush1.msra.mxu0 %v5597_v57 }
 0x670   :  { %3478 = vmatpush3.msra.mxu1 %v5600_v49  ;;  %1796 = vmatprep.subr.mxu0 %v5603_v63 }
 0x671   :  { %3479 = vmatprep.subr.mxu1 %v5606_v45  ;;  %v1506_v38 = vpop.f32.mrf.mxu0  ;;  %1797 = vmatpush1.msra.mxu0 %v5609_v44  ;;  %v5622_v45 = vld [vmem:[#allocation8 + $0x150] sm:$0xff]  ;;  %v5636_v44 = vld [vmem:[#allocation8 + $0x120] sm:$0xff] }
 0x672   :  { %v1515_v54 = vmul.f32 %v1506_v38, %v6896_v2  ;;  %3480 = vmatpush3.msra.mxu1 %v5613_v4  ;;  %1798 = vmatprep.subr.mxu0 %v5616_v61  ;;  %7036 = vst [vmem:[#allocation50_spill] sm:$0xff] %v5622_v45  ;;  %v5626_v2 = vld [vmem:[#allocation7 + $0x230] sm:$0xff]  ;;  %v5629_v4 = vld [vmem:[#allocation8 + $0x128] sm:$0xff]  ;;  %7040 = vst [vmem:[#allocation16_spill] sm:$0xff] %v5636_v44 }
 0x673   :  { %3481 = vmatprep.subr.mxu1 %v5619_v12  ;;  %v1508_v1 = vpop.f32.mrf.mxu0  ;;  %1799 = vmatpush1.msra.mxu0 %v5622_v45  ;;  %7037 = vst [vmem:[#allocation73_spill] sm:$0xff] %v5626_v2  ;;  %7038 = vst [vmem:[#allocation51_spill] sm:$0xff] %v5629_v4  ;;  %v5633_v12 = vld [vmem:[#allocation7 + $0x2a8] sm:$0xff] }
 0x674   :  { %vm1521_vm13 = vcmp.gt.f32.partialorder %v1515_v54, 0.0  ;;  %vm1527_vm14 = vcmp.lt.f32.partialorder %v1515_v54, 0.0  ;;  %v1516_v38 = vmul.f32 %v1508_v1, %v6897_v8  ;;  %3482 = vmatpush3.msra.mxu1 %v5626_v2  ;;  %1800 = vmatprep.subr.mxu0 %v5629_v4  ;;  %7039 = vst [vmem:[#allocation52_spill] sm:$0xff] %v5633_v12  ;;  %v5639_v1 = vld [vmem:[#allocation7 + $0x228] sm:$0xff]  ;;  %v5642_v2 = vld [vmem:[#allocation8 + $0xf8] sm:$0xff] }
 0x675   :  { %v1533_v61 = vsel %vm1527_vm14, -0.05, %v6818_v42  ;;  %3483 = vmatprep.subr.mxu1 %v5633_v12  ;;  %1801 = vmatpush1.msra.mxu0 %v5636_v44  ;;  %7041 = vst [vmem:[#allocation17_spill] sm:$0xff] %v5639_v1  ;;  %7042 = vst [vmem:[#allocation76_spill] sm:$0xff] %v5642_v2  ;;  %v5647_v12 = vld [vmem:[#allocation7 + $0x2a0] sm:$0xff]  ;;  %v5650_v44 = vld [vmem:[#allocation8 + $0xf0] sm:$0xff] }
 0x676   :  { %v1539_v54 = vsel %vm1521_vm13, 0.05, %v1533_v61  ;;  %vm1522_vm15 = vcmp.gt.f32.partialorder %v1516_v38, 0.0  ;;  %vm1528_vm0 = vcmp.lt.f32.partialorder %v1516_v38, 0.0  ;;  %3484 = vmatpush3.msra.mxu1 %v5639_v1  ;;  %1802 = vmatprep.subr.mxu0 %v5642_v2  ;;  %7043 = vst [vmem:[#allocation18_spill] sm:$0xff] %v5647_v12  ;;  %7044 = vst [vmem:[#allocation78_spill] sm:$0xff] %v5650_v44 }
 0x677   :  { %v1545_v4 = vadd.f32 %v1539_v54, %v5317_v0  ;;  %v1534_v8 = vsel %vm1528_vm0, -0.05, %v6818_v42  ;;  %3485 = vmatprep.subr.mxu1 %v5647_v12  ;;  %1803 = vmatpush1.msra.mxu0 %v5650_v44  ;;  %v5653_v38 = vld [vmem:[#allocation7 + $0x220] sm:$0xff]  ;;  %v5656_v1 = vld [vmem:[#allocation8 + $0xc8] sm:$0xff]  ;;  %v5660_v54 = vld [vmem:[#allocation7 + $0x298] sm:$0xff] }
 0x678   :  { %v1540_v61 = vsel %vm1522_vm15, 0.05, %v1534_v8  ;;  %7045 = vst [vmem:[#allocation19_spill] sm:$0xff] %v5653_v38  ;;  %3486 = vmatpush3.msra.mxu1 %v5653_v38  ;;  %7046 = vst [vmem:[#allocation80_spill] sm:$0xff] %v5656_v1  ;;  %1804 = vmatprep.subr.mxu0 %v5656_v1  ;;  %v5663_v12 = vld [vmem:[#allocation8 + $0xc0] sm:$0xff]  ;;  %v5666_v44 = vld [vmem:[#allocation7 + $0x218] sm:$0xff] }
 0x679   :  { %v1546_v0 = vadd.f32 %v1540_v61, %v5312_v40  ;;  %7047 = vst [vmem:[#allocation21_spill] sm:$0xff] %v5660_v54  ;;  %3487 = vmatprep.subr.mxu1 %v5660_v54  ;;  %7048 = vst [vmem:[#allocation23_spill] sm:$0xff] %v5663_v12  ;;  %1805 = vmatpush1.msra.mxu0 %v5663_v12  ;;  %v5669_v8 = vld [vmem:[#allocation8 + $0x98] sm:$0xff]  ;;  %v1551_v38 = vmax.f32 %v1545_v4, 0.0  ;;  %v5672_v1 = vld [vmem:[#allocation7 + $0x290] sm:$0xff] }
 0x67a   :  { %7049 = vst [vmem:[#allocation26_spill] sm:$0xff] %v5666_v44  ;;  %3488 = vmatpush3.msra.mxu1 %v5666_v44  ;;  %7050 = vst [vmem:[#allocation83_spill] sm:$0xff] %v5669_v8  ;;  %1806 = vmatprep.subr.mxu0 %v5669_v8  ;;  %v5675_v61 = vld [vmem:[#allocation8 + $0x90] sm:$0xff]  ;;  %v5681_v12 = vld [vmem:[#allocation8 + $0x68] sm:$0xff] }
 0x67b   :  { %7051 = vst [vmem:[#allocation27_spill] sm:$0xff] %v5672_v1  ;;  %3489 = vmatprep.subr.mxu1 %v5672_v1  ;;  %v1552_v40 = vmax.f32 %v1546_v0, 0.0  ;;  %7052 = vst [vmem:[#allocation28_spill] sm:$0xff] %v5675_v61  ;;  %1807 = vmatpush1.msra.mxu0 %v5675_v61  ;;  %v5678_v54 = vld [vmem:[#allocation7 + $0x210] sm:$0xff]  ;;  %v5684_v44 = vld [vmem:[#allocation7 + $0x288] sm:$0xff] }
 0x67c   :  { %7053 = vst [vmem:[#allocation29_spill] sm:$0xff] %v5678_v54  ;;  %3490 = vmatpush3.msra.mxu1 %v5678_v54  ;;  %7054 = vst [vmem:[#allocation33_spill] sm:$0xff] %v5681_v12  ;;  %1808 = vmatprep.subr.mxu0 %v5681_v12  ;;  %v5689_v1 = vld [vmem:[#allocation8 + $0x60] sm:$0xff]  ;;  %v5692_v0 = vld [vmem:[#allocation7 + $0x208] sm:$0xff]  ;;  %v5698_v54 = vmin.f32 %v1551_v38, 0.1 }
 0x67d   :  { %7055 = vst [vmem:[#allocation37_spill] sm:$0xff] %v5684_v44  ;;  %3491 = vmatprep.subr.mxu1 %v5684_v44  ;;  %v5687_v4 = vmin.f32 %v1552_v40, 0.1  ;;  %7057 = vst [vmem:[#allocation55_spill] sm:$0xff] %v5689_v1  ;;  %1809 = vmatpush1.msra.mxu0 %v5689_v1  ;;  %v5695_v61 = vld [vmem:[#allocation8 + $0x38] sm:$0xff]  ;;  %v5700_v12 = vld [vmem:[#allocation7 + $0x280] sm:$0xff] }
 0x67e   :  { %7058 = vst [vmem:[#allocation56_spill] sm:$0xff] %v5692_v0  ;;  %3492 = vmatpush3.msra.mxu1 %v5692_v0  ;;  %7059 = vst [vmem:[#allocation57_spill] sm:$0xff] %v5695_v61  ;;  %1810 = vmatprep.subr.mxu0 %v5695_v61  ;;  %v5704_v40 = vld [vmem:[#allocation7 + $0x200] sm:$0xff]  ;;  %v5707_v1 = vld [vmem:[#allocation8 + $0x30] sm:$0xff] }
 0x67f   :  { %7056 = vst [vmem:[#allocation38_spill] sm:$0xff] %v5687_v4  ;;  %7060 = vst [vmem:[#allocation58_spill] sm:$0xff] %v5698_v54  ;;  %3493 = vmatprep.subr.mxu1 %v5700_v12  ;;  %1763 = vmatprep.mubr.f32.mxu1 %v5687_v4  ;;  %v5711_v0 = vld [vmem:[#allocation8 + $0x2e8] sm:$0xff]  ;;  %v5714_v38 = vld [vmem:[#allocation8 + $0x2e0] sm:$0xff] }
 0x680   :  { %7061 = vst [vmem:[#allocation59_spill] sm:$0xff] %v5700_v12  ;;  %7062 = vst [vmem:[#allocation60_spill] sm:$0xff] %v5704_v40  ;;  %3494 = vmatpush3.msra.mxu1 %v5704_v40  ;;  %1811 = vmatpush1.msra.mxu0 %v5707_v1  ;;  %v5717_v12 = vld [vmem:[#allocation8 + $0x8] sm:$0xff]  ;;  %v5720_v61 = vld [vmem:[#allocation8 + $0x2b8] sm:$0xff] }
 0x681   :  { %7063 = vst [vmem:[#allocation61_spill] sm:$0xff] %v5707_v1  ;;  %1764 = vmatmul.mubr.f32.vlgmr.msra.gmra.mxu1 %v5698_v54  ;;  %7064 = vst [vmem:[#allocation62_spill] sm:$0xff] %v5711_v0  ;;  %1853 = vmatprep.subr.mxu1 %v5711_v0  ;;  %v5723_v40 = vld [vmem:[#allocation8] sm:$0xff]  ;;  %v5726_v1 = vld [vmem:[#allocation8 + $0x2b0] sm:$0xff] }
 0x682   :  { %7065 = vst [vmem:[#allocation64_spill] sm:$0xff] %v5714_v38  ;;  %1854 = vmatpush1.msra.mxu1 %v5714_v38  ;;  %7066 = vst [vmem:[#allocation66_spill] sm:$0xff] %v5717_v12  ;;  %1812 = vmatprep.subr.mxu0 %v5717_v12  ;;  %v5730_v0 = vld [vmem:[#allocation8 + $0x288] sm:$0xff]  ;;  %v5734_v12 = vld [vmem:[#allocation8 + $0x280] sm:$0xff] }
 0x683   :  { %7067 = vst [vmem:[#allocation68_spill] sm:$0xff] %v5720_v61  ;;  %1855 = vmatprep.subr.mxu1 %v5720_v61  ;;  %7068 = vst [vmem:[#allocation70_spill] sm:$0xff] %v5723_v40  ;;  %1813 = vmatpush1.msra.mxu0 %v5723_v40  ;;  %v5737_v61 = vld [vmem:[#allocation8 + $0x2f8] sm:$0xff]  ;;  %v5746_v38 = vld [vmem:[#allocation8 + $0x228] sm:$0xff] }
 0x684   :  { %7069 = vst [vmem:[#allocation72_spill] sm:$0xff] %v5726_v1  ;;  %1856 = vmatpush1.msra.mxu1 %v5726_v1  ;;  %1846 = vmatprep.mubr.f32.mxu0 %v6818_v42  ;;  %7070 = vst [vmem:[#allocation74_spill] sm:$0xff] %v5730_v0  ;;  %v5740_v40 = vld [vmem:[#allocation8 + $0x258] sm:$0xff]  ;;  %v5743_v1 = vld [vmem:[#allocation8 + $0x250] sm:$0xff] }
 0x685   :  { %1857 = vmatprep.subr.mxu1 %v5730_v0  ;;  %1917 = vmatprep.mubr.f32.mxu1 %v6818_v42  ;;  %7071 = vst [vmem:[#allocation75_spill] sm:$0xff] %v5734_v12  ;;  %7072 = vst [vmem:[#allocation77_spill] sm:$0xff] %v5737_v61  ;;  %v5749_v0 = vld [vmem:[#allocation8 + $0x220] sm:$0xff] }
 0x686   :  { %1858 = vmatpush1.msra.mxu1 %v5734_v12  ;;  %1924 = vmatprep.subr.mxu0 %v5737_v61  ;;  %7073 = vst [vmem:[#allocation79_spill] sm:$0xff] %v5740_v40  ;;  %7074 = vst [vmem:[#allocation81_spill] sm:$0xff] %v5743_v1  ;;  %v5752_v12 = vld [vmem:[#allocation8 + $0x1f8] sm:$0xff]  ;;  %v5755_v61 = vld [vmem:[#allocation8 + $0x1f0] sm:$0xff] }
 0x687   :  { %1859 = vmatprep.subr.mxu1 %v5740_v40  ;;  %7075 = vst [vmem:[#allocation82_spill] sm:$0xff] %v5746_v38  ;;  %7076 = vst [vmem:[#allocation84_spill] sm:$0xff] %v5749_v0  ;;  %v5758_v40 = vld [vmem:[#allocation8 + $0x1c8] sm:$0xff] }
 0x688   :  { %1860 = vmatpush1.msra.mxu1 %v5743_v1  ;;  %7077 = vst [vmem:[#allocation15_spill] sm:$0xff] %v5752_v12  ;;  %7078 = vst [vmem:[#allocation85_spill] sm:$0xff] %v5755_v61  ;;  %v5761_v1 = vld [vmem:[#allocation8 + $0x1c0] sm:$0xff] }
 0x689   :  { %1861 = vmatprep.subr.mxu1 %v5746_v38  ;;  %7079 = vst [vmem:[#allocation86_spill] sm:$0xff] %v5758_v40  ;;  %7080 = vst [vmem:[#allocation87_spill] sm:$0xff] %v5761_v1  ;;  %v5764_v38 = vld [vmem:[#allocation8 + $0x198] sm:$0xff] }
 0x68a   :  { %1862 = vmatpush1.msra.mxu1 %v5749_v0  ;;  %7081 = vst [vmem:[#allocation91_spill] sm:$0xff] %v5764_v38  ;;  %v5767_v0 = vld [vmem:[#allocation8 + $0x190] sm:$0xff] }
 0x68b   :  { %1863 = vmatprep.subr.mxu1 %v5752_v12  ;;  %7082 = vst [vmem:[#allocation88_spill] sm:$0xff] %v5767_v0  ;;  %v5770_v12 = vld [vmem:[#allocation8 + $0x168] sm:$0xff] }
 0x68c   :  { %1864 = vmatpush1.msra.mxu1 %v5755_v61  ;;  %7083 = vst [vmem:[#allocation93_spill] sm:$0xff] %v5770_v12  ;;  %v5773_v61 = vld [vmem:[#allocation8 + $0x160] sm:$0xff] }
 0x68d   :  { %1865 = vmatprep.subr.mxu1 %v5758_v40  ;;  %7084 = vst [vmem:[#allocation89_spill] sm:$0xff] %v5773_v61  ;;  %v5776_v40 = vld [vmem:[#allocation8 + $0x138] sm:$0xff] }
 0x68e   :  { %1866 = vmatpush1.msra.mxu1 %v5761_v1  ;;  %7085 = vst [vmem:[#allocation95_spill] sm:$0xff] %v5776_v40  ;;  %v5779_v1 = vld [vmem:[#allocation8 + $0x130] sm:$0xff] }
 0x68f   :  { %1867 = vmatprep.subr.mxu1 %v5764_v38  ;;  %7086 = vst [vmem:[#allocation90_spill] sm:$0xff] %v5779_v1  ;;  %v5782_v38 = vld [vmem:[#allocation8 + $0x108] sm:$0xff] }
 0x690   :  { %1868 = vmatpush1.msra.mxu1 %v5767_v0  ;;  %7087 = vst [vmem:[#allocation97_spill] sm:$0xff] %v5782_v38  ;;  %v5785_v0 = vld [vmem:[#allocation8 + $0x100] sm:$0xff] }
 0x691   :  { %1869 = vmatprep.subr.mxu1 %v5770_v12  ;;  %7088 = vst [vmem:[#allocation92_spill] sm:$0xff] %v5785_v0  ;;  %v5788_v12 = vld [vmem:[#allocation8 + $0xd8] sm:$0xff] }
 0x692   :  { %1870 = vmatpush1.msra.mxu1 %v5773_v61  ;;  %7089 = vst [vmem:[#allocation99_spill] sm:$0xff] %v5788_v12  ;;  %v5791_v61 = vld [vmem:[#allocation8 + $0xd0] sm:$0xff] }
 0x693   :  { %1871 = vmatprep.subr.mxu1 %v5776_v40  ;;  %7090 = vst [vmem:[#allocation94_spill] sm:$0xff] %v5791_v61  ;;  %v5794_v40 = vld [vmem:[#allocation8 + $0xa8] sm:$0xff] }
 0x694   :  { %1872 = vmatpush1.msra.mxu1 %v5779_v1  ;;  %7091 = vst [vmem:[#allocation101_spill] sm:$0xff] %v5794_v40  ;;  %v5797_v1 = vld [vmem:[#allocation8 + $0xa0] sm:$0xff] }
 0x695   :  { %1873 = vmatprep.subr.mxu1 %v5782_v38  ;;  %7092 = vst [vmem:[#allocation96_spill] sm:$0xff] %v5797_v1  ;;  %v5800_v38 = vld [vmem:[#allocation8 + $0x78] sm:$0xff] }
 0x696   :  { %1874 = vmatpush1.msra.mxu1 %v5785_v0  ;;  %7093 = vst [vmem:[#allocation103_spill] sm:$0xff] %v5800_v38  ;;  %v5803_v0 = vld [vmem:[#allocation8 + $0x70] sm:$0xff] }
 0x697   :  { %1875 = vmatprep.subr.mxu1 %v5788_v12  ;;  %7094 = vst [vmem:[#allocation98_spill] sm:$0xff] %v5803_v0  ;;  %v5806_v12 = vld [vmem:[#allocation8 + $0x48] sm:$0xff] }
 0x698   :  { %1876 = vmatpush1.msra.mxu1 %v5791_v61  ;;  %7095 = vst [vmem:[#allocation105_spill] sm:$0xff] %v5806_v12  ;;  %v5809_v61 = vld [vmem:[#allocation8 + $0x40] sm:$0xff] }
 0x699   :  { %1877 = vmatprep.subr.mxu1 %v5794_v40  ;;  %7096 = vst [vmem:[#allocation100_spill] sm:$0xff] %v5809_v61  ;;  %v5812_v40 = vld [vmem:[#allocation8 + $0x18] sm:$0xff] }
 0x69a   :  { %1878 = vmatpush1.msra.mxu1 %v5797_v1  ;;  %7097 = vst [vmem:[#allocation107_spill] sm:$0xff] %v5812_v40  ;;  %v5815_v1 = vld [vmem:[#allocation8 + $0x10] sm:$0xff] }
 0x69b   :  { %1879 = vmatprep.subr.mxu1 %v5800_v38  ;;  %7098 = vst [vmem:[#allocation102_spill] sm:$0xff] %v5815_v1  ;;  %v5818_v38 = vld [vmem:[#allocation7 + $0xf8] sm:$0xff] }
 0x69c   :  { %1880 = vmatpush1.msra.mxu1 %v5803_v0  ;;  %7099 = vst [vmem:[#allocation109_spill] sm:$0xff] %v5818_v38 }
 0x69d   :  { %1881 = vmatprep.subr.mxu1 %v5806_v12 }
 0x69e   :  { %1882 = vmatpush1.msra.mxu1 %v5809_v61 }
 0x69f   :  { %1883 = vmatprep.subr.mxu1 %v5812_v40 }
 0x6a0   :  { %1884 = vmatpush1.msra.mxu1 %v5815_v1 }
 0x6a1   :  { %3498 = vmatprep.subr.mxu1 %v5818_v38 }
 0x721   :  { %v3425_v0 = vpop.f32.mrf.mxu1 }
 0x722   :  { %v3460_v44 = vpop.f32.mrf.mxu0 }
 0x723   :  { %v3426_v8 = vpop.f32.mrf.mxu1 }
 0x724   :  { %v3461_v12 = vpop.f32.mrf.mxu0  ;;  %v3427_v4 = vadd.f32 %v3426_v8, %v3425_v0  ;;  %v5865_v0 = vld [vmem:[#allocation7 + $0x68] sm:$0xff] }
 0x725   :  { %v3462_v54 = vadd.f32 %v3461_v12, %v3460_v44  ;;  %7100 = vst [vmem:[#allocation104_spill] sm:$0xff] %v5865_v0 }
 0x727   :  { %v1696_v45 = vadd.f32 %v3462_v54, %v3427_v4  ;;  %v5856_v54 = vld [vmem:[#allocation8 + $0x290] sm:$0xff]  ;;  %v5862_v4 = vld [vmem:[#allocation8 + $0x268] sm:$0xff] }
 0x741   :  { %v3495_v2 = vpop.f32.mrf.mxu1 }
 0x743   :  { %v3496_v61 = vpop.f32.mrf.mxu1 }
 0x744   :  { %v3497_v63 = vadd.f32 %v3496_v61, %v3495_v2  ;;  %v5827_v2 = vld [vmem:[%s6415_s5] sm:$0x3] }
 0x745   :  { %v5859_v61 = vld [vmem:[#allocation7 + $0xe8] sm:$0xff] }
 0x746   :  { %v1766_v49 = vadd.f32 %v3497_v63, %v1696_v45  ;;  %v5847_v63 = vld [vmem:[#allocation7 + $0xf0] sm:$0xff]  ;;  %v5850_v45 = vld [vmem:[#allocation8 + $0x298] sm:$0xff] }
 0x748   :  { %v1769_v40 = vadd.f32 %v1766_v49, %v6949_v25 }
 0x74a   :  { %v1770_v57 = vsel %vm770_vm7, %v1769_v40, -inf }
 0x74b   :  { %1771 = vmax.xlane.f32.xlu0 %v1770_v57  ;;  %v5844_v57 = vld [vmem:[#allocation8 + $0x2c0] sm:$0xff] }
 0x7d4   :  { %v1772_v1 = vpop.xlane.xlu0 %1771 }
 0x7d5   :  { %v1773_v21 = vsub.f32 %v1769_v40, %v1772_v1  ;;  %v5853_v1 = vld [vmem:[#allocation7 + $0x70] sm:$0xff]  ;;  %v5868_v40 = vld [vmem:[#allocation8 + $0x260] sm:$0xff] }
 0x7d6   :  { %7101 = vst [vmem:[#allocation111_spill] sm:$0xff] %v5868_v40 }
 0x7d7   :  { %v1774_v19 = vmul.f32 1.442695, %v1773_v21  ;;  %v5841_v21 = vld [vmem:[#allocation7 + $0x78] sm:$0xff] }
 0x7d9   :  { %3729 = vpow2.f32 %v1774_v19  ;;  %v5834_v19 = vld [vmem:[#allocation8 + $0x2f0] sm:$0xff] }
 0x7e6   :  { %v3730_v38 = vpop.eup %3729 }
 0x7e7   :  { %v1776_v17 = vsel %vm770_vm7, %v3730_v38, 0.0 }
 0x7e8   :  { %1777 = vadd.xlane.f32.xlu1 %v1776_v17  ;;  %v5838_v17 = vld [vmem:[#allocation8 + $0x2c8] sm:$0xff] }
 0x871   :  { %v1778_v8 = vpop.xlane.xlu1 %1777 }
 0x872   :  { %3731 = vrcp.f32 %v1778_v8  ;;  %v5874_v8 = vld [vmem:[#allocation8 + $0x238] sm:$0xff] }
 0x873   :  { %7103 = vst [vmem:[#allocation113_spill] sm:$0xff] %v5874_v8 }
 0x87f   :  { %v3732_v44 = vpop.eup %3731 }
 0x880   :  { %v1780_v12 = vmul.f32 %v3732_v44, %v3730_v38  ;;  %v5871_v38 = vld [vmem:[#allocation7 + $0xe0] sm:$0xff] }
 0x881   :  { %7102 = vst [vmem:[#allocation106_spill] sm:$0xff] %v5871_v38  ;;  %v5877_v44 = vld [vmem:[#allocation7 + $0x60] sm:$0xff] }
 0x882   :  { %v5830_v49 = vsub.f32 %v1780_v12, %v5827_v2  ;;  %7104 = vst [vmem:[#allocation108_spill] sm:$0xff] %v5877_v44  ;;  %v5880_v12 = vld [vmem:[#allocation8 + $0x230] sm:$0xff] }
 0x883   :  { %7105 = vst [vmem:[#allocation115_spill] sm:$0xff] %v5880_v12 }
 0x884   :  { %1847 = vmatmul.mubr.f32.vlgmr.msra.gmra.mxu0 %v5830_v49  ;;  %1918 = vmatmul.mubr.f32.vlgmr.msra.gmra.mxu1 %v5830_v49 }
 0x885   :  { %1925 = vmatpush1.msra.mxu0 %v5834_v19  ;;  %1988 = vmatprep.mubr.f32.mxu0 %v6818_v42 }
 0x886   :  { %1926 = vmatprep.subr.mxu0 %v5838_v17  ;;  %3499 = vmatpush3.msra.mxu1 %v5841_v21 }
 0x887   :  { %1927 = vmatpush1.msra.mxu0 %v5844_v57  ;;  %3500 = vmatprep.subr.mxu1 %v5847_v63 }
 0x888   :  { %1928 = vmatprep.subr.mxu0 %v5850_v45  ;;  %3501 = vmatpush3.msra.mxu1 %v5853_v1 }
 0x889   :  { %1929 = vmatpush1.msra.mxu0 %v5856_v54  ;;  %3502 = vmatprep.subr.mxu1 %v5859_v61 }
 0x88a   :  { %1930 = vmatprep.subr.mxu0 %v5862_v4  ;;  %3503 = vmatpush3.msra.mxu1 %v5865_v0  ;;  %v5883_v0 = vld [vmem:[#allocation7 + $0xd8] sm:$0xff] }
 0x88b   :  { %1931 = vmatpush1.msra.mxu0 %v5868_v40  ;;  %3504 = vmatprep.subr.mxu1 %v5871_v38  ;;  %7106 = vst [vmem:[#allocation110_spill] sm:$0xff] %v5883_v0  ;;  %v5886_v40 = vld [vmem:[#allocation8 + $0x208] sm:$0xff]  ;;  %v5889_v38 = vld [vmem:[#allocation7 + $0x58] sm:$0xff] }
 0x88c   :  { %1932 = vmatprep.subr.mxu0 %v5874_v8  ;;  %3505 = vmatpush3.msra.mxu1 %v5877_v44  ;;  %7107 = vst [vmem:[#allocation117_spill] sm:$0xff] %v5886_v40  ;;  %7108 = vst [vmem:[#allocation112_spill] sm:$0xff] %v5889_v38  ;;  %v5892_v8 = vld [vmem:[#allocation8 + $0x200] sm:$0xff]  ;;  %v5895_v44 = vld [vmem:[#allocation7 + $0xd0] sm:$0xff] }
 0x88d   :  { %1933 = vmatpush1.msra.mxu0 %v5880_v12  ;;  %3506 = vmatprep.subr.mxu1 %v5883_v0  ;;  %7109 = vst [vmem:[#allocation119_spill] sm:$0xff] %v5892_v8  ;;  %7110 = vst [vmem:[#allocation114_spill] sm:$0xff] %v5895_v44  ;;  %v5898_v12 = vld [vmem:[#allocation8 + $0x1d8] sm:$0xff]  ;;  %v5901_v0 = vld [vmem:[#allocation7 + $0x50] sm:$0xff] }
 0x88e   :  { %1934 = vmatprep.subr.mxu0 %v5886_v40  ;;  %3507 = vmatpush3.msra.mxu1 %v5889_v38  ;;  %7111 = vst [vmem:[#allocation120_spill] sm:$0xff] %v5898_v12  ;;  %7112 = vst [vmem:[#allocation116_spill] sm:$0xff] %v5901_v0  ;;  %v5904_v40 = vld [vmem:[#allocation8 + $0x1d0] sm:$0xff]  ;;  %v5907_v38 = vld [vmem:[#allocation7 + $0xc8] sm:$0xff] }
 0x88f   :  { %1935 = vmatpush1.msra.mxu0 %v5892_v8  ;;  %3508 = vmatprep.subr.mxu1 %v5895_v44  ;;  %7113 = vst [vmem:[#allocation121_spill] sm:$0xff] %v5904_v40  ;;  %7114 = vst [vmem:[#allocation118_spill] sm:$0xff] %v5907_v38  ;;  %v5910_v8 = vld [vmem:[#allocation8 + $0x1a8] sm:$0xff] }
 0x890   :  { %1936 = vmatprep.subr.mxu0 %v5898_v12  ;;  %3509 = vmatpush3.msra.mxu1 %v5901_v0  ;;  %7115 = vst [vmem:[#allocation122_spill] sm:$0xff] %v5910_v8  ;;  %v5913_v44 = vld [vmem:[#allocation7 + $0x48] sm:$0xff]  ;;  %v5916_v12 = vld [vmem:[#allocation8 + $0x1a0] sm:$0xff] }
 0x891   :  { %1937 = vmatpush1.msra.mxu0 %v5904_v40  ;;  %3510 = vmatprep.subr.mxu1 %v5907_v38  ;;  %7116 = vst [vmem:[#allocation20_spill] sm:$0xff] %v5913_v44  ;;  %7117 = vst [vmem:[#allocation22_spill] sm:$0xff] %v5916_v12  ;;  %v5919_v0 = vld [vmem:[#allocation7 + $0xc0] sm:$0xff]  ;;  %v5922_v40 = vld [vmem:[#allocation8 + $0x178] sm:$0xff] }
 0x892   :  { %1938 = vmatprep.subr.mxu0 %v5910_v8  ;;  %3511 = vmatpush3.msra.mxu1 %v5913_v44  ;;  %7118 = vst [vmem:[#allocation25_spill] sm:$0xff] %v5919_v0  ;;  %7119 = vst [vmem:[#allocation123_spill] sm:$0xff] %v5922_v40  ;;  %v5925_v38 = vld [vmem:[#allocation7 + $0x40] sm:$0xff]  ;;  %v5928_v8 = vld [vmem:[#allocation8 + $0x170] sm:$0xff] }
 0x893   :  { %1939 = vmatpush1.msra.mxu0 %v5916_v12  ;;  %3512 = vmatprep.subr.mxu1 %v5919_v0  ;;  %7120 = vst [vmem:[#allocation32_spill] sm:$0xff] %v5925_v38  ;;  %v5931_v44 = vld [vmem:[#allocation7 + $0xb8] sm:$0xff]  ;;  %v5934_v12 = vld [vmem:[#allocation8 + $0x148] sm:$0xff] }
 0x894   :  { %1940 = vmatprep.subr.mxu0 %v5922_v40  ;;  %3513 = vmatpush3.msra.mxu1 %v5925_v38  ;;  %7121 = vst [vmem:[#allocation36_spill] sm:$0xff] %v5931_v44  ;;  %7122 = vst [vmem:[#allocation124_spill] sm:$0xff] %v5934_v12  ;;  %v5937_v0 = vld [vmem:[#allocation7 + $0x38] sm:$0xff]  ;;  %v5940_v40 = vld [vmem:[#allocation8 + $0x140] sm:$0xff] }
 0x895   :  { %1941 = vmatpush1.msra.mxu0 %v5928_v8  ;;  %3514 = vmatprep.subr.mxu1 %v5931_v44  ;;  %7123 = vst [vmem:[#allocation125_spill] sm:$0xff] %v5940_v40  ;;  %v5944_v38 = vld [vmem:[#allocation8 + $0x118] sm:$0xff]  ;;  %v5948_v44 = vld [vmem:[#allocation8 + $0x110] sm:$0xff] }
 0x896   :  { %1942 = vmatprep.subr.mxu0 %v5934_v12  ;;  %3515 = vmatpush3.msra.mxu1 %v5937_v0  ;;  %v5952_v12 = vld [vmem:[#allocation8 + $0xe8] sm:$0xff] }
 0x897   :  { %1943 = vmatpush1.msra.mxu0 %v5940_v40  ;;  %3516 = vmatprep.subr.mxu1 %v5408_v26  ;;  %v5956_v40 = vld [vmem:[#allocation8 + $0xe0] sm:$0xff]  ;;  %v5960_v26 = vld [vmem:[#allocation8 + $0xb8] sm:$0xff] }
 0x898   :  { %1944 = vmatprep.subr.mxu0 %v5944_v38  ;;  %3517 = vmatpush3.msra.mxu1 %v5412_v55  ;;  %v5964_v55 = vld [vmem:[#allocation8 + $0xb0] sm:$0xff] }
 0x899   :  { %1945 = vmatpush1.msra.mxu0 %v5948_v44  ;;  %3518 = vmatprep.subr.mxu1 %v5416_v32  ;;  %v5968_v32 = vld [vmem:[#allocation8 + $0x88] sm:$0xff] }
 0x89a   :  { %1946 = vmatprep.subr.mxu0 %v5952_v12  ;;  %3519 = vmatpush3.msra.mxu1 %v5420_v56  ;;  %v5972_v56 = vld [vmem:[#allocation8 + $0x80] sm:$0xff] }
 0x89b   :  { %1947 = vmatpush1.msra.mxu0 %v5956_v40  ;;  %3520 = vmatprep.subr.mxu1 %v5424_v6  ;;  %v5976_v6 = vld [vmem:[#allocation8 + $0x58] sm:$0xff] }
 0x89c   :  { %1948 = vmatprep.subr.mxu0 %v5960_v26  ;;  %3521 = vmatpush3.msra.mxu1 %v5428_v10  ;;  %v5980_v10 = vld [vmem:[#allocation8 + $0x50] sm:$0xff] }
 0x89d   :  { %1949 = vmatpush1.msra.mxu0 %v5964_v55  ;;  %3522 = vmatprep.subr.mxu1 %v5432_v34  ;;  %v5984_v34 = vld [vmem:[#allocation8 + $0x28] sm:$0xff] }
 0x89e   :  { %1950 = vmatprep.subr.mxu0 %v5968_v32  ;;  %3523 = vmatpush3.msra.mxu1 %v5436_v37  ;;  %v5988_v37 = vld [vmem:[#allocation8 + $0x20] sm:$0xff] }
 0x89f   :  { %1951 = vmatpush1.msra.mxu0 %v5972_v56  ;;  %3524 = vmatprep.subr.mxu1 %v5440_v14  ;;  %v5993_v14 = vld [vmem:[#allocation7 + $0x1f8] sm:$0xff] }
 0x8a0   :  { %1952 = vmatprep.subr.mxu0 %v5976_v6  ;;  %3525 = vmatpush3.msra.mxu1 %v5444_v18  ;;  %7124 = vst [vmem:[#allocation126_spill] sm:$0xff] %v5993_v14  ;;  %v5996_v18 = vld [vmem:[#allocation7 + $0x178] sm:$0xff] }
 0x8a1   :  { %1953 = vmatpush1.msra.mxu0 %v5980_v10  ;;  %3526 = vmatprep.subr.mxu1 %v5448_v20  ;;  %7125 = vst [vmem:[#allocation127_spill] sm:$0xff] %v5996_v18  ;;  %v6000_v20 = vld [vmem:[#allocation7 + $0x1f0] sm:$0xff] }
 0x8a2   :  { %1954 = vmatprep.subr.mxu0 %v5984_v34  ;;  %3527 = vmatpush3.msra.mxu1 %v5452_v22  ;;  %7126 = vst [vmem:[#allocation128_spill] sm:$0xff] %v6000_v20  ;;  %v6004_v22 = vld [vmem:[#allocation7 + $0x170] sm:$0xff] }
 0x8a3   :  { %1955 = vmatpush1.msra.mxu0 %v5988_v37  ;;  %3528 = vmatprep.subr.mxu1 %v5456_v29  ;;  %7127 = vst [vmem:[#allocation129_spill] sm:$0xff] %v6004_v22  ;;  %v6007_v29 = vld [vmem:[#allocation7 + $0x1e8] sm:$0xff] }
 0x8a4   :  { %1989 = vmatmul.mubr.f32.vlgmr.msra.gmra.mxu0 %v5830_v49  ;;  %3533 = vmatprep.subr.mxu0 %v5993_v14  ;;  %7128 = vst [vmem:[#allocation130_spill] sm:$0xff] %v6007_v29  ;;  %v6010_v49 = vld [vmem:[#allocation7 + $0x168] sm:$0xff] }
 0x8a5   :  { %3534 = vmatpush3.msra.mxu0 %v5996_v18  ;;  %3529 = vmatpush3.msra.mxu1 %v5462_v28  ;;  %7129 = vst [vmem:[#allocation131_spill] sm:$0xff] %v6010_v49  ;;  %v6013_v18 = vld [vmem:[#allocation7 + $0x1e0] sm:$0xff] }
 0x8a6   :  { %3535 = vmatprep.subr.mxu0 %v6000_v20  ;;  %3568 = vmatprep.subr.mxu1 %v5466_v35  ;;  %7130 = vst [vmem:[#allocation132_spill] sm:$0xff] %v6013_v18  ;;  %v6016_v28 = vld [vmem:[#allocation7 + $0x160] sm:$0xff]  ;;  %v6019_v35 = vld [vmem:[#allocation7 + $0x1d8] sm:$0xff] }
 0x8a7   :  { %3536 = vmatpush3.msra.mxu0 %v6004_v22  ;;  %7131 = vst [vmem:[#allocation133_spill] sm:$0xff] %v6016_v28  ;;  %7132 = vst [vmem:[#allocation134_spill] sm:$0xff] %v6019_v35  ;;  %v6022_v22 = vld [vmem:[#allocation7 + $0x158] sm:$0xff] }
 0x8a8   :  { %3537 = vmatprep.subr.mxu0 %v6007_v29  ;;  %7133 = vst [vmem:[#allocation135_spill] sm:$0xff] %v6022_v22  ;;  %v6025_v29 = vld [vmem:[#allocation7 + $0x1d0] sm:$0xff] }
 0x8a9   :  { %3538 = vmatpush3.msra.mxu0 %v6010_v49  ;;  %7134 = vst [vmem:[#allocation136_spill] sm:$0xff] %v6025_v29  ;;  %v6028_v49 = vld [vmem:[#allocation7 + $0x150] sm:$0xff] }
 0x8aa   :  { %3539 = vmatprep.subr.mxu0 %v6013_v18  ;;  %7135 = vst [vmem:[#allocation137_spill] sm:$0xff] %v6028_v49  ;;  %v6031_v18 = vld [vmem:[#allocation7 + $0x1c8] sm:$0xff] }
 0x8ab   :  { %3540 = vmatpush3.msra.mxu0 %v6016_v28  ;;  %7136 = vst [vmem:[#allocation138_spill] sm:$0xff] %v6031_v18  ;;  %v6034_v28 = vld [vmem:[#allocation7 + $0x148] sm:$0xff] }
 0x8ac   :  { %3541 = vmatprep.subr.mxu0 %v6019_v35  ;;  %7137 = vst [vmem:[#allocation139_spill] sm:$0xff] %v6034_v28  ;;  %v6037_v35 = vld [vmem:[#allocation7 + $0x1c0] sm:$0xff] }
 0x8ad   :  { %3542 = vmatpush3.msra.mxu0 %v6022_v22  ;;  %7138 = vst [vmem:[#allocation140_spill] sm:$0xff] %v6037_v35  ;;  %v6040_v22 = vld [vmem:[#allocation7 + $0x140] sm:$0xff] }
 0x8ae   :  { %3543 = vmatprep.subr.mxu0 %v6025_v29  ;;  %7139 = vst [vmem:[#allocation141_spill] sm:$0xff] %v6040_v22  ;;  %v6043_v29 = vld [vmem:[#allocation7 + $0x1b8] sm:$0xff] }
 0x8af   :  { %3544 = vmatpush3.msra.mxu0 %v6028_v49  ;;  %7140 = vst [vmem:[#allocation142_spill] sm:$0xff] %v6043_v29  ;;  %v6046_v49 = vld [vmem:[#allocation7 + $0x138] sm:$0xff] }
 0x8b0   :  { %3545 = vmatprep.subr.mxu0 %v6031_v18  ;;  %7141 = vst [vmem:[#allocation143_spill] sm:$0xff] %v6046_v49  ;;  %v6049_v18 = vld [vmem:[#allocation7 + $0x1b0] sm:$0xff] }
 0x8b1   :  { %3546 = vmatpush3.msra.mxu0 %v6034_v28  ;;  %7142 = vst [vmem:[#allocation144_spill] sm:$0xff] %v6049_v18  ;;  %v6052_v28 = vld [vmem:[#allocation7 + $0x130] sm:$0xff] }
 0x8b2   :  { %3547 = vmatprep.subr.mxu0 %v6037_v35  ;;  %7143 = vst [vmem:[#allocation145_spill] sm:$0xff] %v6052_v28  ;;  %v6055_v35 = vld [vmem:[#allocation7 + $0x1a8] sm:$0xff] }
 0x8b3   :  { %3548 = vmatpush3.msra.mxu0 %v6040_v22  ;;  %7144 = vst [vmem:[#allocation146_spill] sm:$0xff] %v6055_v35  ;;  %v6058_v22 = vld [vmem:[#allocation7 + $0x128] sm:$0xff] }
 0x8b4   :  { %3549 = vmatprep.subr.mxu0 %v6043_v29  ;;  %7145 = vst [vmem:[#allocation147_spill] sm:$0xff] %v6058_v22  ;;  %v6061_v29 = vld [vmem:[#allocation7 + $0x1a0] sm:$0xff] }
 0x8b5   :  { %3550 = vmatpush3.msra.mxu0 %v6046_v49  ;;  %7146 = vst [vmem:[#allocation148_spill] sm:$0xff] %v6061_v29  ;;  %v6064_v49 = vld [vmem:[#allocation7 + $0x120] sm:$0xff] }
 0x8b6   :  { %3551 = vmatprep.subr.mxu0 %v6049_v18  ;;  %7147 = vst [vmem:[#allocation149_spill] sm:$0xff] %v6064_v49  ;;  %v6067_v18 = vld [vmem:[#allocation7 + $0x198] sm:$0xff] }
 0x8b7   :  { %3552 = vmatpush3.msra.mxu0 %v6052_v28  ;;  %7148 = vst [vmem:[#allocation150_spill] sm:$0xff] %v6067_v18  ;;  %v6070_v28 = vld [vmem:[#allocation7 + $0x118] sm:$0xff] }
 0x8b8   :  { %3553 = vmatprep.subr.mxu0 %v6055_v35  ;;  %7149 = vst [vmem:[#allocation151_spill] sm:$0xff] %v6070_v28  ;;  %v6073_v35 = vld [vmem:[#allocation7 + $0x190] sm:$0xff] }
 0x8b9   :  { %3554 = vmatpush3.msra.mxu0 %v6058_v22  ;;  %7150 = vst [vmem:[#allocation152_spill] sm:$0xff] %v6073_v35  ;;  %v6076_v22 = vld [vmem:[#allocation7 + $0x110] sm:$0xff] }
 0x8ba   :  { %3555 = vmatprep.subr.mxu0 %v6061_v29  ;;  %7151 = vst [vmem:[#allocation153_spill] sm:$0xff] %v6076_v22  ;;  %v6079_v29 = vld [vmem:[#allocation7 + $0x188] sm:$0xff] }
 0x8bb   :  { %3556 = vmatpush3.msra.mxu0 %v6064_v49  ;;  %7152 = vst [vmem:[#allocation154_spill] sm:$0xff] %v6079_v29 }
 0x8bc   :  { %3557 = vmatprep.subr.mxu0 %v6067_v18 }
 0x8bd   :  { %3558 = vmatpush3.msra.mxu0 %v6070_v28 }
 0x8be   :  { %3559 = vmatprep.subr.mxu0 %v6073_v35 }
 0x8bf   :  { %3560 = vmatpush3.msra.mxu0 %v6076_v22 }
 0x8c0   :  { %3561 = vmatprep.subr.mxu0 %v6079_v29 }
 0x8c1   :  { %3562 = vmatpush3.msra.mxu0 %v5495_v41 }
 0x8c2   :  { %3563 = vmatprep.subr.mxu0 %v5498_v24 }
 0x8c3   :  { %3564 = vmatpush3.msra.mxu0 %v5501_v31 }
 0x8c4   :  { %2266 = vmatprep.subr.mxu0 %v5504_v33 }
 0x944   :  { %v1848_v28 = vpop.f32.mrf.mxu0  ;;  %v1919_v18 = vpop.f32.mrf.mxu1 }
 0x945   :  { %v1995_v35 = vmul.f32 %v1848_v28, %v7023_v36  ;;  %v1997_v49 = vmul.f32 %v1919_v18, %v7024_v59 }
 0x946   :  { %v1850_v20 = vpop.f32.mrf.mxu0  ;;  %v1921_v22 = vpop.f32.mrf.mxu1 }
 0x947   :  { %vm2001_vm1 = vcmp.gt.f32.partialorder %v1995_v35, 0.0  ;;  %vm2007_vm2 = vcmp.lt.f32.partialorder %v1995_v35, 0.0  ;;  %vm2003_vm3 = vcmp.gt.f32.partialorder %v1997_v49, 0.0  ;;  %vm2009_vm4 = vcmp.lt.f32.partialorder %v1997_v49, 0.0 }
 0x948   :  { %v2013_v41 = vsel %vm2007_vm2, -0.05, %v6818_v42  ;;  %v2015_v24 = vsel %vm2009_vm4, -0.05, %v6818_v42  ;;  %v1996_v31 = vmul.f32 %v1850_v20, %v6894_v47  ;;  %v1998_v33 = vmul.f32 %v1921_v22, %v6895_v60 }
 0x949   :  { %v2019_v29 = vsel %vm2001_vm1, 0.05, %v2013_v41  ;;  %v2021_v14 = vsel %vm2003_vm3, 0.05, %v2015_v24 }
 0x94a   :  { %v2025_v28 = vadd.f32 %v2019_v29, %v5521_v48  ;;  %vm2002_vm5 = vcmp.gt.f32.partialorder %v1996_v31, 0.0  ;;  %vm2008_vm6 = vcmp.lt.f32.partialorder %v1996_v31, 0.0  ;;  %v2027_v18 = vadd.f32 %v2021_v14, %v5525_v30 }
 0x94b   :  { %v2014_v35 = vsel %vm2008_vm6, -0.05, %v6818_v42  ;;  %vm2004_vm8 = vcmp.gt.f32.partialorder %v1998_v33, 0.0  ;;  %vm2010_vm9 = vcmp.lt.f32.partialorder %v1998_v33, 0.0  ;;  %v6129_v33 = vld [vmem:[#allocation7 + $0x2e0] sm:$0xff] }
 0x94c   :  { %v2020_v49 = vsel %vm2002_vm5, 0.05, %v2014_v35  ;;  %v2016_v59 = vsel %vm2010_vm9, -0.05, %v6818_v42  ;;  %v2031_v47 = vmax.f32 %v2025_v28, 0.0  ;;  %v2033_v41 = vmax.f32 %v2027_v18, 0.0 }
 0x94d   :  { %v2026_v36 = vadd.f32 %v2020_v49, %v5519_v16  ;;  %v2022_v20 = vsel %vm2004_vm8, 0.05, %v2016_v59  ;;  %v6110_v59 = vld [vmem:[#allocation7 + $0x278] sm:$0xff]  ;;  %v6121_v16 = vld [vmem:[#allocation7 + $0x2e8] sm:$0xff] }
 0x94e   :  { %v2028_v22 = vadd.f32 %v2022_v20, %v5523_v58  ;;  %v6100_v31 = vmin.f32 %v2031_v47, 0.1  ;;  %v6104_v14 = vmin.f32 %v2033_v41, 0.1  ;;  %v6117_v47 = vld [vmem:[#allocation7 + $0x270] sm:$0xff]  ;;  %v6125_v58 = vld [vmem:[#allocation7 + $0x268] sm:$0xff] }
 0x94f   :  { %v2032_v24 = vmax.f32 %v2026_v36, 0.0  ;;  %v6113_v36 = vld [vmem:[#allocation7 + $0x2f0] sm:$0xff]  ;;  %v7167_v18 = vld [vmem:[#allocation73_spill] sm:$0xff] }
 0x950   :  { %v2034_v48 = vmax.f32 %v2028_v22, 0.0  ;;  %v7168_v35 = vld [vmem:[#allocation51_spill] sm:$0xff]  ;;  %v7169_v20 = vld [vmem:[#allocation52_spill] sm:$0xff] }
 0x951   :  { %v6098_v29 = vmin.f32 %v2032_v24, 0.1  ;;  %v7170_v22 = vld [vmem:[#allocation16_spill] sm:$0xff]  ;;  %v7171_v24 = vld [vmem:[#allocation17_spill] sm:$0xff] }
 0x952   :  { %v6102_v30 = vmin.f32 %v2034_v48, 0.1  ;;  %v7172_v48 = vld [vmem:[#allocation76_spill] sm:$0xff] }
 0x953   :  { %2107 = vmatprep.mubr.f32.mxu1 %v6098_v29 }
 0x954   :  { %2177 = vmatprep.mubr.f32.mxu0 %v6102_v30  ;;  %2108 = vmatmul.mubr.f32.vlgmr.msra.gmra.mxu1 %v6100_v31 }
 0x955   :  { %2178 = vmatmul.mubr.f32.vlgmr.msra.gmra.mxu0 %v6104_v14  ;;  %3569 = vmatpush3.msra.mxu1 %v6110_v59 }
 0x956   :  { %3570 = vmatprep.subr.mxu1 %v6113_v36  ;;  %2267 = vmatpush1.msra.mxu0 %v5533_v23  ;;  %v7153_v23 = vld [vmem:[#allocation34_spill] sm:$0xff] }
 0x957   :  { %3571 = vmatpush3.msra.mxu1 %v6117_v47  ;;  %2268 = vmatprep.subr.mxu0 %v5537_v5  ;;  %v7154_v5 = vld [vmem:[#allocation45_spill] sm:$0xff] }
 0x958   :  { %3572 = vmatprep.subr.mxu1 %v6121_v16  ;;  %2269 = vmatpush1.msra.mxu0 %v5541_v27  ;;  %v7155_v27 = vld [vmem:[#allocation63_spill] sm:$0xff] }
 0x959   :  { %3573 = vmatpush3.msra.mxu1 %v6125_v58  ;;  %2270 = vmatprep.subr.mxu0 %v5545_v52  ;;  %v7156_v52 = vld [vmem:[#allocation46_spill] sm:$0xff] }
 0x95a   :  { %3574 = vmatprep.subr.mxu1 %v6129_v33  ;;  %2271 = vmatpush1.msra.mxu0 %v5549_v39  ;;  %v7157_v39 = vld [vmem:[#allocation65_spill] sm:$0xff] }
 0x95b   :  { %3575 = vmatpush3.msra.mxu1 %v5552_v53  ;;  %2272 = vmatprep.subr.mxu0 %v5555_v11  ;;  %v7158_v53 = vld [vmem:[#allocation47_spill] sm:$0xff] }
 0x95c   :  { %3576 = vmatprep.subr.mxu1 %v5558_v51  ;;  %2273 = vmatpush1.msra.mxu0 %v5561_v50  ;;  %v7159_v11 = vld [vmem:[#allocation67_spill] sm:$0xff]  ;;  %v7160_v50 = vld [vmem:[#allocation48_spill] sm:$0xff] }
 0x95d   :  { %3577 = vmatpush3.msra.mxu1 %v5564_v46  ;;  %2274 = vmatprep.subr.mxu0 %v5567_v62  ;;  %v7161_v46 = vld [vmem:[#allocation40_spill] sm:$0xff] }
 0x95e   :  { %3578 = vmatprep.subr.mxu1 %v5570_v43  ;;  %2275 = vmatpush1.msra.mxu0 %v5573_v3  ;;  %v7162_v43 = vld [vmem:[#allocation69_spill] sm:$0xff] }
 0x95f   :  { %3579 = vmatpush3.msra.mxu1 %v5576_v7  ;;  %2276 = vmatprep.subr.mxu0 %v5579_v9  ;;  %v7163_v3 = vld [vmem:[#allocation49_spill] sm:$0xff]  ;;  %v7164_v7 = vld [vmem:[#allocation71_spill] sm:$0xff] }
 0x960   :  { %3580 = vmatprep.subr.mxu1 %v5582_v13  ;;  %2277 = vmatpush1.msra.mxu0 %v5585_v15  ;;  %v7165_v13 = vld [vmem:[#allocation50_spill] sm:$0xff]  ;;  %v7166_v15 = vld [vmem:[#allocation39_spill] sm:$0xff] }
 0x961   :  { %3581 = vmatpush3.msra.mxu1 %v7153_v23  ;;  %2278 = vmatprep.subr.mxu0 %v7154_v5  ;;  %v7173_v23 = vld [vmem:[#allocation58_spill] sm:$0xff] }
 0x962   :  { %3582 = vmatprep.subr.mxu1 %v7155_v27  ;;  %2279 = vmatpush1.msra.mxu0 %v7156_v52  ;;  %v7174_v52 = vld [vmem:[#allocation18_spill] sm:$0xff] }
 0x963   :  { %3583 = vmatpush3.msra.mxu1 %v7157_v39  ;;  %2280 = vmatprep.subr.mxu0 %v7158_v53  ;;  %v7175_v39 = vld [vmem:[#allocation78_spill] sm:$0xff] }
 0x964   :  { %3584 = vmatprep.subr.mxu1 %v7159_v11  ;;  %v1990_v51 = vpop.f32.mrf.mxu0  ;;  %2281 = vmatpush1.msra.mxu0 %v7160_v50  ;;  %v7176_v11 = vld [vmem:[#allocation19_spill] sm:$0xff]  ;;  %v7178_v50 = vld [vmem:[#allocation38_spill] sm:$0xff] }
 0x965   :  { %v1999_v62 = vmul.f32 %v1990_v51, %v7161_v46  ;;  %3585 = vmatpush3.msra.mxu1 %v7162_v43  ;;  %2282 = vmatprep.subr.mxu0 %v7163_v3  ;;  %v7177_v51 = vld [vmem:[#allocation80_spill] sm:$0xff]  ;;  %v7179_v43 = vld [vmem:[#allocation21_spill] sm:$0xff]  ;;  %v7180_v3 = vld [vmem:[#allocation23_spill] sm:$0xff] }
 0x966   :  { %3586 = vmatprep.subr.mxu1 %v7164_v7  ;;  %v1992_v9 = vpop.f32.mrf.mxu0  ;;  %2283 = vmatpush1.msra.mxu0 %v7165_v13  ;;  %v7181_v7 = vld [vmem:[#allocation26_spill] sm:$0xff] }
 0x967   :  { %vm2005_vm10 = vcmp.gt.f32.partialorder %v1999_v62, 0.0  ;;  %vm2011_vm11 = vcmp.lt.f32.partialorder %v1999_v62, 0.0  ;;  %v2000_v28 = vmul.f32 %v1992_v9, %v7166_v15  ;;  %3587 = vmatpush3.msra.mxu1 %v7167_v18  ;;  %2284 = vmatprep.subr.mxu0 %v7168_v35  ;;  %v7182_v9 = vld [vmem:[#allocation83_spill] sm:$0xff]  ;;  %v7184_v35 = vld [vmem:[#allocation28_spill] sm:$0xff] }
 0x968   :  { %v2017_v49 = vsel %vm2011_vm11, -0.05, %v6818_v42  ;;  %3588 = vmatprep.subr.mxu1 %v7169_v20  ;;  %2285 = vmatpush1.msra.mxu0 %v7170_v22  ;;  %v7186_v20 = vld [vmem:[#allocation33_spill] sm:$0xff] }
 0x969   :  { %v2023_v41 = vsel %vm2005_vm10, 0.05, %v2017_v49  ;;  %vm2006_vm12 = vcmp.gt.f32.partialorder %v2000_v28, 0.0  ;;  %vm2012_vm13 = vcmp.lt.f32.partialorder %v2000_v28, 0.0  ;;  %3589 = vmatpush3.msra.mxu1 %v7171_v24  ;;  %2286 = vmatprep.subr.mxu0 %v7172_v48  ;;  %v7183_v28 = vld [vmem:[#allocation27_spill] sm:$0xff]  ;;  %v7185_v49 = vld [vmem:[#allocation29_spill] sm:$0xff] }
 0x96a   :  { %v2029_v5 = vadd.f32 %v2023_v41, %v7173_v23  ;;  %v2018_v27 = vsel %vm2012_vm13, -0.05, %v6818_v42  ;;  %3590 = vmatprep.subr.mxu1 %v7174_v52  ;;  %2287 = vmatpush1.msra.mxu0 %v7175_v39  ;;  %v7187_v22 = vld [vmem:[#allocation37_spill] sm:$0xff]  ;;  %v7188_v24 = vld [vmem:[#allocation55_spill] sm:$0xff]  ;;  %v7189_v48 = vld [vmem:[#allocation56_spill] sm:$0xff] }
 0x96b   :  { %v2024_v53 = vsel %vm2006_vm12, 0.05, %v2018_v27  ;;  %3591 = vmatpush3.msra.mxu1 %v7176_v11  ;;  %2288 = vmatprep.subr.mxu0 %v7177_v51  ;;  %v7190_v23 = vld [vmem:[#allocation57_spill] sm:$0xff]  ;;  %v7191_v27 = vld [vmem:[#allocation59_spill] sm:$0xff]  ;;  %v7192_v52 = vld [vmem:[#allocation60_spill] sm:$0xff] }
 0x96c   :  { %v2030_v62 = vadd.f32 %v2024_v53, %v7178_v50  ;;  %3592 = vmatprep.subr.mxu1 %v7179_v43  ;;  %2289 = vmatpush1.msra.mxu0 %v7180_v3  ;;  %v2035_v13 = vmax.f32 %v2029_v5, 0.0  ;;  %v7193_v39 = vld [vmem:[#allocation61_spill] sm:$0xff]  ;;  %v7194_v53 = vld [vmem:[#allocation62_spill] sm:$0xff]  ;;  %v7195_v11 = vld [vmem:[#allocation64_spill] sm:$0xff] }
 0x96d   :  { %3593 = vmatpush3.msra.mxu1 %v7181_v7  ;;  %2290 = vmatprep.subr.mxu0 %v7182_v9  ;;  %v7196_v51 = vld [vmem:[#allocation66_spill] sm:$0xff]  ;;  %v7197_v50 = vld [vmem:[#allocation68_spill] sm:$0xff]  ;;  %v7201_v7 = vld [vmem:[#allocation75_spill] sm:$0xff] }
 0x96e   :  { %3594 = vmatprep.subr.mxu1 %v7183_v28  ;;  %v2036_v18 = vmax.f32 %v2030_v62, 0.0  ;;  %2291 = vmatpush1.msra.mxu0 %v7184_v35  ;;  %v6187_v5 = vmin.f32 %v2035_v13, 0.1  ;;  %v7198_v62 = vld [vmem:[#allocation70_spill] sm:$0xff]  ;;  %v7199_v43 = vld [vmem:[#allocation72_spill] sm:$0xff]  ;;  %v7202_v9 = vld [vmem:[#allocation77_spill] sm:$0xff] }
 0x96f   :  { %3595 = vmatpush3.msra.mxu1 %v7185_v49  ;;  %2292 = vmatprep.subr.mxu0 %v7186_v20  ;;  %v7200_v3 = vld [vmem:[#allocation74_spill] sm:$0xff]  ;;  %v7203_v13 = vld [vmem:[#allocation79_spill] sm:$0xff]  ;;  %v7204_v28 = vld [vmem:[#allocation81_spill] sm:$0xff] }
 0x970   :  { %3596 = vmatprep.subr.mxu1 %v7187_v22  ;;  %v6182_v41 = vmin.f32 %v2036_v18, 0.1  ;;  %2293 = vmatpush1.msra.mxu0 %v7188_v24  ;;  %v7205_v18 = vld [vmem:[#allocation82_spill] sm:$0xff]  ;;  %v7206_v35 = vld [vmem:[#allocation84_spill] sm:$0xff]  ;;  %v7207_v49 = vld [vmem:[#allocation15_spill] sm:$0xff] }
 0x971   :  { %3597 = vmatpush3.msra.mxu1 %v7189_v48  ;;  %2294 = vmatprep.subr.mxu0 %v7190_v23  ;;  %v7208_v20 = vld [vmem:[#allocation85_spill] sm:$0xff]  ;;  %v7209_v22 = vld [vmem:[#allocation86_spill] sm:$0xff]  ;;  %v7210_v24 = vld [vmem:[#allocation87_spill] sm:$0xff] }
 0x972   :  { %3598 = vmatprep.subr.mxu1 %v7191_v27  ;;  %2247 = vmatprep.mubr.f32.mxu1 %v6182_v41  ;;  %v7211_v48 = vld [vmem:[#allocation91_spill] sm:$0xff]  ;;  %v7212_v23 = vld [vmem:[#allocation88_spill] sm:$0xff]  ;;  %v7213_v27 = vld [vmem:[#allocation93_spill] sm:$0xff] }
 0x973   :  { %3599 = vmatpush3.msra.mxu1 %v7192_v52  ;;  %2295 = vmatpush1.msra.mxu0 %v7193_v39  ;;  %v7214_v52 = vld [vmem:[#allocation89_spill] sm:$0xff]  ;;  %v7215_v39 = vld [vmem:[#allocation95_spill] sm:$0xff] }
 0x974   :  { %2248 = vmatmul.mubr.f32.vlgmr.msra.gmra.mxu1 %v6187_v5  ;;  %2337 = vmatprep.subr.mxu1 %v7194_v53  ;;  %v7216_v53 = vld [vmem:[#allocation90_spill] sm:$0xff] }
 0x975   :  { %2338 = vmatpush1.msra.mxu1 %v7195_v11  ;;  %2296 = vmatprep.subr.mxu0 %v7196_v51  ;;  %v7217_v11 = vld [vmem:[#allocation97_spill] sm:$0xff]  ;;  %v7218_v51 = vld [vmem:[#allocation92_spill] sm:$0xff] }
 0x976   :  { %2339 = vmatprep.subr.mxu1 %v7197_v50  ;;  %2297 = vmatpush1.msra.mxu0 %v7198_v62  ;;  %v7219_v50 = vld [vmem:[#allocation99_spill] sm:$0xff]  ;;  %v7220_v62 = vld [vmem:[#allocation94_spill] sm:$0xff] }
 0x977   :  { %2340 = vmatpush1.msra.mxu1 %v7199_v43  ;;  %2330 = vmatprep.mubr.f32.mxu0 %v6818_v42  ;;  %v7221_v43 = vld [vmem:[#allocation101_spill] sm:$0xff] }
 0x978   :  { %2341 = vmatprep.subr.mxu1 %v7200_v3  ;;  %2401 = vmatprep.mubr.f32.mxu1 %v6818_v42  ;;  %v7222_v3 = vld [vmem:[#allocation96_spill] sm:$0xff] }
 0x979   :  { %2342 = vmatpush1.msra.mxu1 %v7201_v7  ;;  %2408 = vmatprep.subr.mxu0 %v7202_v9  ;;  %v7223_v7 = vld [vmem:[#allocation103_spill] sm:$0xff]  ;;  %v7224_v9 = vld [vmem:[#allocation98_spill] sm:$0xff] }
 0x97a   :  { %2343 = vmatprep.subr.mxu1 %v7203_v13  ;;  %v7225_v13 = vld [vmem:[#allocation105_spill] sm:$0xff] }
 0x97b   :  { %2344 = vmatpush1.msra.mxu1 %v7204_v28  ;;  %v7226_v28 = vld [vmem:[#allocation100_spill] sm:$0xff] }
 0x97c   :  { %2345 = vmatprep.subr.mxu1 %v7205_v18  ;;  %v7227_v18 = vld [vmem:[#allocation107_spill] sm:$0xff] }
 0x97d   :  { %2346 = vmatpush1.msra.mxu1 %v7206_v35  ;;  %v7228_v35 = vld [vmem:[#allocation102_spill] sm:$0xff] }
 0x97e   :  { %2347 = vmatprep.subr.mxu1 %v7207_v49  ;;  %v7229_v49 = vld [vmem:[#allocation109_spill] sm:$0xff] }
 0x97f   :  { %2348 = vmatpush1.msra.mxu1 %v7208_v20 }
 0x980   :  { %2349 = vmatprep.subr.mxu1 %v7209_v22 }
 0x981   :  { %2350 = vmatpush1.msra.mxu1 %v7210_v24 }
 0x982   :  { %2351 = vmatprep.subr.mxu1 %v7211_v48 }
 0x983   :  { %2352 = vmatpush1.msra.mxu1 %v7212_v23 }
 0x984   :  { %2353 = vmatprep.subr.mxu1 %v7213_v27 }
 0x985   :  { %2354 = vmatpush1.msra.mxu1 %v7214_v52 }
 0x986   :  { %2355 = vmatprep.subr.mxu1 %v7215_v39 }
 0x987   :  { %2356 = vmatpush1.msra.mxu1 %v7216_v53 }
 0x988   :  { %2357 = vmatprep.subr.mxu1 %v7217_v11 }
 0x989   :  { %2358 = vmatpush1.msra.mxu1 %v7218_v51 }
 0x98a   :  { %2359 = vmatprep.subr.mxu1 %v7219_v50 }
 0x98b   :  { %2360 = vmatpush1.msra.mxu1 %v7220_v62 }
 0x98c   :  { %2361 = vmatprep.subr.mxu1 %v7221_v43 }
 0x98d   :  { %2362 = vmatpush1.msra.mxu1 %v7222_v3 }
 0x98e   :  { %2363 = vmatprep.subr.mxu1 %v7223_v7 }
 0x98f   :  { %2364 = vmatpush1.msra.mxu1 %v7224_v9 }
 0x990   :  { %2365 = vmatprep.subr.mxu1 %v7225_v13 }
 0x991   :  { %2366 = vmatpush1.msra.mxu1 %v7226_v28 }
 0x992   :  { %2367 = vmatprep.subr.mxu1 %v7227_v18 }
 0x993   :  { %2368 = vmatpush1.msra.mxu1 %v7228_v35 }
 0x994   :  { %3603 = vmatprep.subr.mxu1 %v7229_v49 }
 0xa14   :  { %v3530_v20 = vpop.f32.mrf.mxu1 }
 0xa15   :  { %v3565_v22 = vpop.f32.mrf.mxu0 }
 0xa16   :  { %v3531_v24 = vpop.f32.mrf.mxu1 }
 0xa17   :  { %v3566_v48 = vpop.f32.mrf.mxu0  ;;  %v3532_v23 = vadd.f32 %v3531_v24, %v3530_v20  ;;  %v7241_v20 = vld [vmem:[#allocation120_spill] sm:$0xff]  ;;  %v7243_v24 = vld [vmem:[#allocation121_spill] sm:$0xff] }
 0xa18   :  { %v3567_v27 = vadd.f32 %v3566_v48, %v3565_v22  ;;  %v7242_v22 = vld [vmem:[#allocation116_spill] sm:$0xff]  ;;  %v7244_v48 = vld [vmem:[#allocation118_spill] sm:$0xff] }
 0xa1a   :  { %v2180_v53 = vadd.f32 %v3567_v27, %v3532_v23  ;;  %v7245_v23 = vld [vmem:[#allocation122_spill] sm:$0xff]  ;;  %v7246_v27 = vld [vmem:[#allocation20_spill] sm:$0xff] }
 0xa34   :  { %v3600_v52 = vpop.f32.mrf.mxu1 }
 0xa36   :  { %v3601_v39 = vpop.f32.mrf.mxu1 }
 0xa37   :  { %v3602_v11 = vadd.f32 %v3601_v39, %v3600_v52  ;;  %v7247_v52 = vld [vmem:[#allocation22_spill] sm:$0xff]  ;;  %v7248_v39 = vld [vmem:[#allocation25_spill] sm:$0xff] }
 0xa39   :  { %v2250_v51 = vadd.f32 %v3602_v11, %v2180_v53  ;;  %v7249_v53 = vld [vmem:[#allocation123_spill] sm:$0xff]  ;;  %v7250_v11 = vld [vmem:[#allocation32_spill] sm:$0xff] }
 0xa3b   :  { %v2253_v50 = vadd.f32 %v2250_v51, %v6949_v25  ;;  %v7251_v51 = vld [vmem:[#allocation36_spill] sm:$0xff] }
 0xa3d   :  { %v2254_v62 = vsel %vm770_vm7, %v2253_v50, -inf }
 0xa3e   :  { %2255 = vmax.xlane.f32.xlu0 %v2254_v62  ;;  %v7253_v62 = vld [vmem:[#allocation125_spill] sm:$0xff] }
 0xac7   :  { %v2256_v43 = vpop.xlane.xlu0 %2255 }
 0xac8   :  { %v2257_v3 = vsub.f32 %v2253_v50, %v2256_v43  ;;  %v7252_v50 = vld [vmem:[#allocation124_spill] sm:$0xff] }
 0xac9   :  { %v3987_v43 = vld [vmem:[#allocation7 + $0xb0] sm:$0xff] }
 0xaca   :  { %v2258_v7 = vmul.f32 1.442695, %v2257_v3  ;;  %v3988_v3 = vld [vmem:[#allocation7 + $0x30] sm:$0xff] }
 0xacc   :  { %3733 = vpow2.f32 %v2258_v7  ;;  %v3989_v7 = vld [vmem:[#allocation7 + $0xa8] sm:$0xff] }
 0xad9   :  { %v3734_v9 = vpop.eup %3733 }
 0xada   :  { %v2260_v13 = vsel %vm770_vm7, %v3734_v9, 0.0 }
 0xadb   :  { %2261 = vadd.xlane.f32.xlu1 %v2260_v13  ;;  %v7255_v13 = vld [vmem:[#allocation127_spill] sm:$0xff] }
 0xb64   :  { %v2262_v28 = vpop.xlane.xlu1 %2261 }
 0xb65   :  { %3735 = vrcp.f32 %v2262_v28  ;;  %v7256_v28 = vld [vmem:[#allocation128_spill] sm:$0xff] }
 0xb72   :  { %v3736_v18 = vpop.eup %3735 }
 0xb73   :  { %v2264_v35 = vmul.f32 %v3736_v18, %v3734_v9  ;;  %v3991_v9 = vld [vmem:[#allocation7 + $0xa0] sm:$0xff] }
 0xb74   :  { %v7257_v18 = vld [vmem:[#allocation129_spill] sm:$0xff] }
 0xb75   :  { %v6236_v49 = vsub.f32 %v2264_v35, %v5827_v2  ;;  %v7230_v2 = vld [vmem:[#allocation104_spill] sm:$0xff]  ;;  %v7259_v35 = vld [vmem:[#allocation131_spill] sm:$0xff] }
 0xb77   :  { %2331 = vmatmul.mubr.f32.vlgmr.msra.gmra.mxu0 %v6236_v49  ;;  %2402 = vmatmul.mubr.f32.vlgmr.msra.gmra.mxu1 %v6236_v49 }
 0xb78   :  { %2409 = vmatpush1.msra.mxu0 %v5834_v19  ;;  %2472 = vmatprep.mubr.f32.mxu0 %v6818_v42  ;;  %v7231_v19 = vld [vmem:[#allocation111_spill] sm:$0xff] }
 0xb79   :  { %2410 = vmatprep.subr.mxu0 %v5838_v17  ;;  %3604 = vmatpush3.msra.mxu1 %v5841_v21  ;;  %v7232_v17 = vld [vmem:[#allocation106_spill] sm:$0xff]  ;;  %v7233_v21 = vld [vmem:[#allocation113_spill] sm:$0xff] }
 0xb7a   :  { %2411 = vmatpush1.msra.mxu0 %v5844_v57  ;;  %3605 = vmatprep.subr.mxu1 %v5847_v63  ;;  %v7234_v57 = vld [vmem:[#allocation108_spill] sm:$0xff]  ;;  %v7235_v63 = vld [vmem:[#allocation115_spill] sm:$0xff] }
 0xb7b   :  { %2412 = vmatprep.subr.mxu0 %v5850_v45  ;;  %3606 = vmatpush3.msra.mxu1 %v5853_v1  ;;  %v7236_v45 = vld [vmem:[#allocation110_spill] sm:$0xff]  ;;  %v7237_v1 = vld [vmem:[#allocation117_spill] sm:$0xff] }
 0xb7c   :  { %2413 = vmatpush1.msra.mxu0 %v5856_v54  ;;  %3607 = vmatprep.subr.mxu1 %v5859_v61  ;;  %v7238_v54 = vld [vmem:[#allocation112_spill] sm:$0xff]  ;;  %v7239_v61 = vld [vmem:[#allocation119_spill] sm:$0xff] }
 0xb7d   :  { %2414 = vmatprep.subr.mxu0 %v5862_v4  ;;  %3608 = vmatpush3.msra.mxu1 %v7230_v2  ;;  %v7240_v4 = vld [vmem:[#allocation114_spill] sm:$0xff]  ;;  %v7261_v2 = vld [vmem:[#allocation133_spill] sm:$0xff] }
 0xb7e   :  { %2415 = vmatpush1.msra.mxu0 %v7231_v19  ;;  %3609 = vmatprep.subr.mxu1 %v7232_v17  ;;  %v7263_v19 = vld [vmem:[#allocation135_spill] sm:$0xff]  ;;  %v7264_v17 = vld [vmem:[#allocation136_spill] sm:$0xff] }
 0xb7f   :  { %2416 = vmatprep.subr.mxu0 %v7233_v21  ;;  %3610 = vmatpush3.msra.mxu1 %v7234_v57  ;;  %v7265_v21 = vld [vmem:[#allocation137_spill] sm:$0xff]  ;;  %v7266_v57 = vld [vmem:[#allocation138_spill] sm:$0xff] }
 0xb80   :  { %2417 = vmatpush1.msra.mxu0 %v7235_v63  ;;  %3611 = vmatprep.subr.mxu1 %v7236_v45  ;;  %v7267_v63 = vld [vmem:[#allocation139_spill] sm:$0xff]  ;;  %v7268_v45 = vld [vmem:[#allocation140_spill] sm:$0xff] }
 0xb81   :  { %2418 = vmatprep.subr.mxu0 %v7237_v1  ;;  %3612 = vmatpush3.msra.mxu1 %v7238_v54  ;;  %v7269_v1 = vld [vmem:[#allocation141_spill] sm:$0xff]  ;;  %v7270_v54 = vld [vmem:[#allocation142_spill] sm:$0xff] }
 0xb82   :  { %2419 = vmatpush1.msra.mxu0 %v7239_v61  ;;  %3613 = vmatprep.subr.mxu1 %v7240_v4  ;;  %v7271_v61 = vld [vmem:[#allocation143_spill] sm:$0xff]  ;;  %v7272_v4 = vld [vmem:[#allocation144_spill] sm:$0xff] }
 0xb83   :  { %2420 = vmatprep.subr.mxu0 %v7241_v20  ;;  %3614 = vmatpush3.msra.mxu1 %v7242_v22  ;;  %v7273_v20 = vld [vmem:[#allocation145_spill] sm:$0xff]  ;;  %v7274_v22 = vld [vmem:[#allocation146_spill] sm:$0xff] }
 0xb84   :  { %2421 = vmatpush1.msra.mxu0 %v7243_v24  ;;  %3615 = vmatprep.subr.mxu1 %v7244_v48  ;;  %v7275_v24 = vld [vmem:[#allocation147_spill] sm:$0xff]  ;;  %v7276_v48 = vld [vmem:[#allocation148_spill] sm:$0xff] }
 0xb85   :  { %2422 = vmatprep.subr.mxu0 %v7245_v23  ;;  %3616 = vmatpush3.msra.mxu1 %v7246_v27  ;;  %v7277_v23 = vld [vmem:[#allocation149_spill] sm:$0xff]  ;;  %v7278_v27 = vld [vmem:[#allocation150_spill] sm:$0xff] }
 0xb86   :  { %2423 = vmatpush1.msra.mxu0 %v7247_v52  ;;  %3617 = vmatprep.subr.mxu1 %v7248_v39  ;;  %v7279_v52 = vld [vmem:[#allocation151_spill] sm:$0xff]  ;;  %v7280_v39 = vld [vmem:[#allocation152_spill] sm:$0xff] }
 0xb87   :  { %2424 = vmatprep.subr.mxu0 %v7249_v53  ;;  %3618 = vmatpush3.msra.mxu1 %v7250_v11  ;;  %v7281_v53 = vld [vmem:[#allocation153_spill] sm:$0xff]  ;;  %v7282_v11 = vld [vmem:[#allocation154_spill] sm:$0xff] }
 0xb88   :  { %2425 = vmatpush1.msra.mxu0 %v5928_v8  ;;  %3619 = vmatprep.subr.mxu1 %v7251_v51  ;;  %v3990_v8 = vld [vmem:[#allocation7 + $0x28] sm:$0xff] }
 0xb89   :  { %2426 = vmatprep.subr.mxu0 %v7252_v50  ;;  %3620 = vmatpush3.msra.mxu1 %v5937_v0  ;;  %v3992_v0 = vld [vmem:[#allocation7 + $0x20] sm:$0xff]  ;;  %v4002_v51 = vld [vmem:[#allocation7 + $0x108] sm:$0xff] }
 0xb8a   :  { %2427 = vmatpush1.msra.mxu0 %v7253_v62  ;;  %3621 = vmatprep.subr.mxu1 %v3987_v43  ;;  %v4003_v50 = vld [vmem:[#allocation7 + $0x180] sm:$0xff]  ;;  %v4005_v43 = vld [vmem:[#allocation8 + $0x2d8] sm:$0xff] }
 0xb8b   :  { %2428 = vmatprep.subr.mxu0 %v5944_v38  ;;  %3622 = vmatpush3.msra.mxu1 %v3988_v3  ;;  %v3993_v38 = vld [vmem:[#allocation7 + $0x98] sm:$0xff]  ;;  %v4004_v62 = vld [vmem:[#allocation7 + $0x100] sm:$0xff] }
 0xb8c   :  { %2429 = vmatpush1.msra.mxu0 %v5948_v44  ;;  %3623 = vmatprep.subr.mxu1 %v3989_v7  ;;  %v3994_v44 = vld [vmem:[#allocation7 + $0x18] sm:$0xff] }
 0xb8d   :  { %2430 = vmatprep.subr.mxu0 %v5952_v12  ;;  %3624 = vmatpush3.msra.mxu1 %v3990_v8  ;;  %v3995_v12 = vld [vmem:[#allocation7 + $0x90] sm:$0xff] }
 0xb8e   :  { %2431 = vmatpush1.msra.mxu0 %v5956_v40  ;;  %3625 = vmatprep.subr.mxu1 %v3991_v9  ;;  %v3996_v40 = vld [vmem:[#allocation7 + $0x10] sm:$0xff] }
 0xb8f   :  { %2432 = vmatprep.subr.mxu0 %v5960_v26  ;;  %3626 = vmatpush3.msra.mxu1 %v3992_v0  ;;  %v3997_v26 = vld [vmem:[#allocation7 + $0x88] sm:$0xff] }
 0xb90   :  { %2433 = vmatpush1.msra.mxu0 %v5964_v55  ;;  %3627 = vmatprep.subr.mxu1 %v3993_v38  ;;  %v3998_v55 = vld [vmem:[#allocation7 + $0x8] sm:$0xff] }
 0xb91   :  { %2434 = vmatprep.subr.mxu0 %v5968_v32  ;;  %3628 = vmatpush3.msra.mxu1 %v3994_v44  ;;  %v3999_v32 = vld [vmem:[#allocation7 + $0x80] sm:$0xff]  ;;  %v7283_v8 = vld [vmem:[#allocation31_spill] sm:$0xff] }
 0xb92   :  { %2435 = vmatpush1.msra.mxu0 %v5972_v56  ;;  %3629 = vmatprep.subr.mxu1 %v3995_v12  ;;  %v7254_v56 = vld [vmem:[#allocation126_spill] sm:$0xff]  ;;  %v7284_v0 = vld [vmem:[#allocation35_spill] sm:$0xff] }
 0xb93   :  { %2436 = vmatprep.subr.mxu0 %v5976_v6  ;;  %3630 = vmatpush3.msra.mxu1 %v3996_v40  ;;  %v4000_v6 = vld [vmem:[#allocation7] sm:$0xff] }
 0xb94   :  { %2437 = vmatpush1.msra.mxu0 %v5980_v10  ;;  %3631 = vmatprep.subr.mxu1 %v3997_v26  ;;  %v4001_v10 = vld [vmem:[#allocation7 + $0x2f8] sm:$0xff] }
 0xb95   :  { %2438 = vmatprep.subr.mxu0 %v5984_v34  ;;  %3632 = vmatpush3.msra.mxu1 %v3998_v55  ;;  %v7258_v34 = vld [vmem:[#allocation130_spill] sm:$0xff] }
 0xb96   :  { %2439 = vmatpush1.msra.mxu0 %v5988_v37  ;;  %3633 = vmatprep.subr.mxu1 %v3999_v32  ;;  %v7260_v37 = vld [vmem:[#allocation132_spill] sm:$0xff]  ;;  %v7285_v55 = vld [vmem:[#allocation30_spill] sm:$0xff] }
 0xb97   :  { %2473 = vmatmul.mubr.f32.vlgmr.msra.gmra.mxu0 %v6236_v49  ;;  %3638 = vmatprep.subr.mxu0 %v7254_v56  ;;  %v7262_v49 = vld [vmem:[#allocation134_spill] sm:$0xff] }
 0xb98   :  { %3639 = vmatpush3.msra.mxu0 %v7255_v13  ;;  %3634 = vmatpush3.msra.mxu1 %v4000_v6 }
 0xb99   :  { %3640 = vmatprep.subr.mxu0 %v7256_v28  ;;  %3673 = vmatprep.subr.mxu1 %v4001_v10 }
 0xb9a   :  { %3641 = vmatpush3.msra.mxu0 %v7257_v18 }
 0xb9b   :  { %3642 = vmatprep.subr.mxu0 %v7258_v34 }
 0xb9c   :  { %3643 = vmatpush3.msra.mxu0 %v7259_v35 }
 0xb9d   :  { %3644 = vmatprep.subr.mxu0 %v7260_v37 }
 0xb9e   :  { %3645 = vmatpush3.msra.mxu0 %v7261_v2 }
 0xb9f   :  { %3646 = vmatprep.subr.mxu0 %v7262_v49 }
 0xba0   :  { %3647 = vmatpush3.msra.mxu0 %v7263_v19 }
 0xba1   :  { %3648 = vmatprep.subr.mxu0 %v7264_v17 }
 0xba2   :  { %3649 = vmatpush3.msra.mxu0 %v7265_v21 }
 0xba3   :  { %3650 = vmatprep.subr.mxu0 %v7266_v57 }
 0xba4   :  { %3651 = vmatpush3.msra.mxu0 %v7267_v63 }
 0xba5   :  { %3652 = vmatprep.subr.mxu0 %v7268_v45 }
 0xba6   :  { %3653 = vmatpush3.msra.mxu0 %v7269_v1  ;;  %v4008_v1 = vld [vmem:[#allocation8 + $0x2a0] sm:$0xff] }
 0xba7   :  { %3654 = vmatprep.subr.mxu0 %v7270_v54  ;;  %v4009_v54 = vld [vmem:[#allocation8 + $0x278] sm:$0xff] }
 0xba8   :  { %3655 = vmatpush3.msra.mxu0 %v7271_v61  ;;  %v4010_v61 = vld [vmem:[#allocation8 + $0x270] sm:$0xff] }
 0xba9   :  { %3656 = vmatprep.subr.mxu0 %v7272_v4  ;;  %v4013_v4 = vld [vmem:[#allocation7 + $0x2d8] sm:$0xff] }
 0xbaa   :  { %3657 = vmatpush3.msra.mxu0 %v7273_v20  ;;  %v4015_v20 = vld [vmem:[#allocation7 + $0x258] sm:$0xff] }
 0xbab   :  { %3658 = vmatprep.subr.mxu0 %v7274_v22  ;;  %v4017_v22 = vld [vmem:[#allocation7 + $0x2d0] sm:$0xff] }
 0xbac   :  { %3659 = vmatpush3.msra.mxu0 %v7275_v24  ;;  %v4019_v24 = vld [vmem:[#allocation7 + $0x250] sm:$0xff] }
 0xbad   :  { %3660 = vmatprep.subr.mxu0 %v7276_v48  ;;  %v4021_v48 = vld [vmem:[#allocation7 + $0x2c8] sm:$0xff] }
 0xbae   :  { %3661 = vmatpush3.msra.mxu0 %v7277_v23  ;;  %v4022_v23 = vld [vmem:[#allocation8 + $0x1e0] sm:$0xff] }
 0xbaf   :  { %3662 = vmatprep.subr.mxu0 %v7278_v27  ;;  %v4023_v27 = vld [vmem:[#allocation7 + $0x248] sm:$0xff] }
 0xbb0   :  { %3663 = vmatpush3.msra.mxu0 %v7279_v52  ;;  %v4024_v52 = vld [vmem:[#allocation8 + $0x1b8] sm:$0xff] }
 0xbb1   :  { %3664 = vmatprep.subr.mxu0 %v7280_v39  ;;  %v4025_v39 = vld [vmem:[#allocation7 + $0x2c0] sm:$0xff] }
 0xbb2   :  { %3665 = vmatpush3.msra.mxu0 %v7281_v53  ;;  %v4026_v53 = vld [vmem:[#allocation8 + $0x1b0] sm:$0xff] }
 0xbb3   :  { %3666 = vmatprep.subr.mxu0 %v7282_v11  ;;  %v4027_v11 = vld [vmem:[#allocation7 + $0x240] sm:$0xff] }
 0xbb4   :  { %3667 = vmatpush3.msra.mxu0 %v4002_v51  ;;  %v4028_v51 = vld [vmem:[#allocation8 + $0x188] sm:$0xff] }
 0xbb5   :  { %3668 = vmatprep.subr.mxu0 %v4003_v50  ;;  %v4029_v50 = vld [vmem:[#allocation7 + $0x2b8] sm:$0xff] }
 0xbb6   :  { %3669 = vmatpush3.msra.mxu0 %v4004_v62 }
 0xbb7   :  { %2750 = vmatprep.subr.mxu0 %v4005_v43  ;;  %v4030_v43 = vld [vmem:[#allocation8 + $0x180] sm:$0xff] }
 0xc37   :  { %v2332_v3 = vpop.f32.mrf.mxu0  ;;  %v2403_v7 = vpop.f32.mrf.mxu1 }
 0xc38   :  { %v2479_v9 = vmul.f32 %v2332_v3, %v7283_v8  ;;  %v2481_v38 = vmul.f32 %v2403_v7, %v7284_v0  ;;  %v4031_v7 = vld [vmem:[#allocation7 + $0x238] sm:$0xff] }
 0xc39   :  { %v2334_v44 = vpop.f32.mrf.mxu0  ;;  %v2405_v12 = vpop.f32.mrf.mxu1 }
 0xc3a   :  { %vm2485_vm14 = vcmp.gt.f32.partialorder %v2479_v9, 0.0  ;;  %vm2491_vm15 = vcmp.lt.f32.partialorder %v2479_v9, 0.0  ;;  %vm2487_vm0 = vcmp.gt.f32.partialorder %v2481_v38, 0.0  ;;  %vm2493_vm1 = vcmp.lt.f32.partialorder %v2481_v38, 0.0  ;;  %v4032_v9 = vld [vmem:[#allocation8 + $0x158] sm:$0xff]  ;;  %v4033_v38 = vld [vmem:[#allocation7 + $0x2b0] sm:$0xff] }
 0xc3b   :  { %v2497_v40 = vsel %vm2491_vm15, -0.05, %v6818_v42  ;;  %v2499_v26 = vsel %vm2493_vm1, -0.05, %v6818_v42  ;;  %v2480_v32 = vmul.f32 %v2334_v44, %v7285_v55  ;;  %v2482_v56 = vmul.f32 %v2405_v12, %v6895_v60  ;;  %v4034_v12 = vld [vmem:[#allocation8 + $0x150] sm:$0xff] }
 0xc3c   :  { %v2503_v13 = vsel %vm2485_vm14, 0.05, %v2497_v40  ;;  %v2505_v6 = vsel %vm2487_vm0, 0.05, %v2499_v26  ;;  %v4035_v26 = vld [vmem:[#allocation7 + $0x230] sm:$0xff] }
 0xc3d   :  { %v2509_v28 = vadd.f32 %v2503_v13, %v6100_v31  ;;  %vm2486_vm2 = vcmp.gt.f32.partialorder %v2480_v32, 0.0  ;;  %vm2492_vm3 = vcmp.lt.f32.partialorder %v2480_v32, 0.0  ;;  %v2511_v10 = vadd.f32 %v2505_v6, %v6104_v14  ;;  %v4036_v32 = vld [vmem:[#allocation8 + $0x128] sm:$0xff]  ;;  %v4038_v6 = vld [vmem:[#allocation8 + $0x120] sm:$0xff] }
 0xc3e   :  { %v2498_v18 = vsel %vm2492_vm3, -0.05, %v6818_v42  ;;  %vm2488_vm4 = vcmp.gt.f32.partialorder %v2482_v56, 0.0  ;;  %vm2494_vm5 = vcmp.lt.f32.partialorder %v2482_v56, 0.0  ;;  %v4037_v13 = vld [vmem:[#allocation7 + $0x2a8] sm:$0xff] }
 0xc3f   :  { %v2504_v34 = vsel %vm2486_vm2, 0.05, %v2498_v18  ;;  %v2500_v35 = vsel %vm2494_vm5, -0.05, %v6818_v42  ;;  %v2515_v49 = vmax.f32 %v2509_v28, 0.0  ;;  %v2517_v17 = vmax.f32 %v2511_v10, 0.0 }
 0xc40   :  { %v2510_v37 = vadd.f32 %v2504_v34, %v6098_v29  ;;  %v2506_v2 = vsel %vm2488_vm4, 0.05, %v2500_v35  ;;  %v4006_v29 = vld [vmem:[#allocation8 + $0x2d0] sm:$0xff]  ;;  %v4039_v10 = vld [vmem:[#allocation7 + $0x228] sm:$0xff]  ;;  %v4040_v18 = vld [vmem:[#allocation8 + $0xf8] sm:$0xff] }
 0xc41   :  { %v2512_v19 = vadd.f32 %v2506_v2, %v6102_v30  ;;  %v6333_v63 = vmin.f32 %v2515_v49, 0.1  ;;  %v6337_v45 = vmin.f32 %v2517_v17, 0.1  ;;  %v4007_v30 = vld [vmem:[#allocation8 + $0x2a8] sm:$0xff]  ;;  %v4042_v2 = vld [vmem:[#allocation8 + $0xf0] sm:$0xff] }
 0xc42   :  { %v2516_v21 = vmax.f32 %v2510_v37, 0.0  ;;  %v4041_v37 = vld [vmem:[#allocation7 + $0x2a0] sm:$0xff]  ;;  %v4044_v17 = vld [vmem:[#allocation8 + $0xc8] sm:$0xff] }
 0xc43   :  { %v2518_v31 = vmax.f32 %v2512_v19, 0.0  ;;  %v4043_v19 = vld [vmem:[#allocation7 + $0x220] sm:$0xff] }
 0xc44   :  { %v6331_v57 = vmin.f32 %v2516_v21, 0.1 }
 0xc45   :  { %v6335_v14 = vmin.f32 %v2518_v31, 0.1  ;;  %v4045_v31 = vld [vmem:[#allocation7 + $0x298] sm:$0xff] }
 0xc46   :  { %2591 = vmatprep.mubr.f32.mxu1 %v6331_v57 }
 0xc47   :  { %2661 = vmatprep.mubr.f32.mxu0 %v6335_v14  ;;  %2592 = vmatmul.mubr.f32.vlgmr.msra.gmra.mxu1 %v6333_v63 }
 0xc48   :  { %2662 = vmatmul.mubr.f32.vlgmr.msra.gmra.mxu0 %v6337_v45  ;;  %3674 = vmatpush3.msra.mxu1 %v6110_v59  ;;  %v4011_v59 = vld [vmem:[#allocation7 + $0x260] sm:$0xff] }
 0xc49   :  { %3675 = vmatprep.subr.mxu1 %v6113_v36  ;;  %2751 = vmatpush1.msra.mxu0 %v4006_v29  ;;  %v4012_v36 = vld [vmem:[#allocation8 + $0x248] sm:$0xff]  ;;  %v4046_v29 = vld [vmem:[#allocation8 + $0xc0] sm:$0xff] }
 0xc4a   :  { %3676 = vmatpush3.msra.mxu1 %v6117_v47  ;;  %2752 = vmatprep.subr.mxu0 %v4007_v30  ;;  %v4014_v47 = vld [vmem:[#allocation8 + $0x240] sm:$0xff]  ;;  %v4047_v30 = vld [vmem:[#allocation7 + $0x218] sm:$0xff] }
 0xc4b   :  { %3677 = vmatprep.subr.mxu1 %v6121_v16  ;;  %2753 = vmatpush1.msra.mxu0 %v4008_v1  ;;  %v4016_v16 = vld [vmem:[#allocation8 + $0x218] sm:$0xff] }
 0xc4c   :  { %3678 = vmatpush3.msra.mxu1 %v6125_v58  ;;  %2754 = vmatprep.subr.mxu0 %v4009_v54  ;;  %v4018_v58 = vld [vmem:[#allocation8 + $0x210] sm:$0xff] }
 0xc4d   :  { %3679 = vmatprep.subr.mxu1 %v6129_v33  ;;  %2755 = vmatpush1.msra.mxu0 %v4010_v61  ;;  %v4020_v33 = vld [vmem:[#allocation8 + $0x1e8] sm:$0xff]  ;;  %v4049_v54 = vld [vmem:[#allocation7 + $0x290] sm:$0xff] }
 0xc4e   :  { %3680 = vmatpush3.msra.mxu1 %v4011_v59  ;;  %2756 = vmatprep.subr.mxu0 %v4012_v36  ;;  %v4050_v59 = vld [vmem:[#allocation8 + $0x90] sm:$0xff] }
 0xc4f   :  { %3681 = vmatprep.subr.mxu1 %v4013_v4  ;;  %2757 = vmatpush1.msra.mxu0 %v4014_v47  ;;  %v4051_v36 = vld [vmem:[#allocation7 + $0x210] sm:$0xff]  ;;  %v4052_v4 = vld [vmem:[#allocation8 + $0x68] sm:$0xff] }
 0xc50   :  { %3682 = vmatpush3.msra.mxu1 %v4015_v20  ;;  %2758 = vmatprep.subr.mxu0 %v4016_v16  ;;  %v4053_v47 = vld [vmem:[#allocation7 + $0x288] sm:$0xff]  ;;  %v4054_v20 = vld [vmem:[#allocation8 + $0x60] sm:$0xff] }
 0xc51   :  { %3683 = vmatprep.subr.mxu1 %v4017_v22  ;;  %2759 = vmatpush1.msra.mxu0 %v4018_v58  ;;  %v4055_v16 = vld [vmem:[#allocation7 + $0x208] sm:$0xff]  ;;  %v4056_v22 = vld [vmem:[#allocation8 + $0x38] sm:$0xff] }
 0xc52   :  { %3684 = vmatpush3.msra.mxu1 %v4019_v24  ;;  %2760 = vmatprep.subr.mxu0 %v4020_v33  ;;  %v4057_v24 = vld [vmem:[#allocation7 + $0x280] sm:$0xff] }
 0xc53   :  { %3685 = vmatprep.subr.mxu1 %v4021_v48  ;;  %2761 = vmatpush1.msra.mxu0 %v4022_v23  ;;  %v4058_v33 = vld [vmem:[#allocation7 + $0x200] sm:$0xff]  ;;  %v4059_v48 = vld [vmem:[#allocation8 + $0x30] sm:$0xff]  ;;  %v4060_v23 = vld [vmem:[#allocation8 + $0x2e8] sm:$0xff] }
 0xc54   :  { %3686 = vmatpush3.msra.mxu1 %v4023_v27  ;;  %2762 = vmatprep.subr.mxu0 %v4024_v52  ;;  %v4061_v27 = vld [vmem:[#allocation8 + $0x2e0] sm:$0xff]  ;;  %v4062_v52 = vld [vmem:[#allocation8 + $0x8] sm:$0xff] }
 0xc55   :  { %3687 = vmatprep.subr.mxu1 %v4025_v39  ;;  %2763 = vmatpush1.msra.mxu0 %v4026_v53  ;;  %v4063_v39 = vld [vmem:[#allocation8 + $0x2b8] sm:$0xff]  ;;  %v4064_v53 = vld [vmem:[#allocation8] sm:$0xff] }
 0xc56   :  { %3688 = vmatpush3.msra.mxu1 %v4027_v11  ;;  %2764 = vmatprep.subr.mxu0 %v4028_v51  ;;  %v4065_v11 = vld [vmem:[#allocation8 + $0x2b0] sm:$0xff]  ;;  %v4066_v51 = vld [vmem:[#allocation8 + $0x288] sm:$0xff] }
 0xc57   :  { %3689 = vmatprep.subr.mxu1 %v4029_v50  ;;  %v2474_v62 = vpop.f32.mrf.mxu0  ;;  %2765 = vmatpush1.msra.mxu0 %v4030_v43  ;;  %v4067_v50 = vld [vmem:[#allocation8 + $0x280] sm:$0xff]  ;;  %v4069_v43 = vld [vmem:[#allocation8 + $0x258] sm:$0xff] }
 0xc58   :  { %v2483_v3 = vmul.f32 %v2474_v62, %v7161_v46  ;;  %3690 = vmatpush3.msra.mxu1 %v4031_v7  ;;  %2766 = vmatprep.subr.mxu0 %v4032_v9  ;;  %v4068_v62 = vld [vmem:[#allocation8 + $0x2f8] sm:$0xff]  ;;  %v4071_v7 = vld [vmem:[#allocation8 + $0x228] sm:$0xff]  ;;  %v4072_v9 = vld [vmem:[#allocation8 + $0x220] sm:$0xff] }
 0xc59   :  { %3691 = vmatprep.subr.mxu1 %v4033_v38  ;;  %v2476_v44 = vpop.f32.mrf.mxu0  ;;  %2767 = vmatpush1.msra.mxu0 %v4034_v12  ;;  %v4073_v38 = vld [vmem:[#allocation8 + $0x1f8] sm:$0xff]  ;;  %v4075_v12 = vld [vmem:[#allocation8 + $0x1c8] sm:$0xff] }
 0xc5a   :  { %vm2489_vm6 = vcmp.gt.f32.partialorder %v2483_v3, 0.0  ;;  %vm2495_vm8 = vcmp.lt.f32.partialorder %v2483_v3, 0.0  ;;  %v2484_v40 = vmul.f32 %v2476_v44, %v7166_v15  ;;  %3692 = vmatpush3.msra.mxu1 %v4035_v26  ;;  %2768 = vmatprep.subr.mxu0 %v4036_v32  ;;  %v4070_v3 = vld [vmem:[#allocation8 + $0x250] sm:$0xff]  ;;  %v4077_v26 = vld [vmem:[#allocation8 + $0x198] sm:$0xff] }
 0xc5b   :  { %v2501_v56 = vsel %vm2495_vm8, -0.05, %v6818_v42  ;;  %3693 = vmatprep.subr.mxu1 %v4037_v13  ;;  %2769 = vmatpush1.msra.mxu0 %v4038_v6  ;;  %v4074_v44 = vld [vmem:[#allocation8 + $0x1f0] sm:$0xff]  ;;  %v4080_v13 = vld [vmem:[#allocation8 + $0x160] sm:$0xff]  ;;  %v4081_v6 = vld [vmem:[#allocation8 + $0x138] sm:$0xff] }
 0xc5c   :  { %v2507_v28 = vsel %vm2489_vm6, 0.05, %v2501_v56  ;;  %vm2490_vm9 = vcmp.gt.f32.partialorder %v2484_v40, 0.0  ;;  %vm2496_vm10 = vcmp.lt.f32.partialorder %v2484_v40, 0.0  ;;  %3694 = vmatpush3.msra.mxu1 %v4039_v10  ;;  %2770 = vmatprep.subr.mxu0 %v4040_v18  ;;  %v4076_v40 = vld [vmem:[#allocation8 + $0x1c0] sm:$0xff]  ;;  %v4078_v32 = vld [vmem:[#allocation8 + $0x190] sm:$0xff] }
 0xc5d   :  { %v2513_v34 = vadd.f32 %v2507_v28, %v6187_v5  ;;  %v2502_v35 = vsel %vm2496_vm10, -0.05, %v6818_v42  ;;  %3695 = vmatprep.subr.mxu1 %v4041_v37  ;;  %2771 = vmatpush1.msra.mxu0 %v4042_v2  ;;  %v4048_v5 = vld [vmem:[#allocation8 + $0x98] sm:$0xff]  ;;  %v4079_v56 = vld [vmem:[#allocation8 + $0x168] sm:$0xff]  ;;  %v4082_v28 = vld [vmem:[#allocation8 + $0x130] sm:$0xff] }
 0xc5e   :  { %v2508_v49 = vsel %vm2490_vm9, 0.05, %v2502_v35  ;;  %3696 = vmatpush3.msra.mxu1 %v4043_v19  ;;  %2772 = vmatprep.subr.mxu0 %v4044_v17  ;;  %v4083_v10 = vld [vmem:[#allocation8 + $0x108] sm:$0xff]  ;;  %v4084_v18 = vld [vmem:[#allocation8 + $0x100] sm:$0xff]  ;;  %v4086_v35 = vld [vmem:[#allocation8 + $0xd0] sm:$0xff] }
 0xc5f   :  { %v2514_v21 = vadd.f32 %v2508_v49, %v6182_v41  ;;  %3697 = vmatprep.subr.mxu1 %v4045_v31  ;;  %2773 = vmatpush1.msra.mxu0 %v4046_v29  ;;  %v2519_v1 = vmax.f32 %v2513_v34, 0.0  ;;  %v4085_v34 = vld [vmem:[#allocation8 + $0xd8] sm:$0xff]  ;;  %v4087_v37 = vld [vmem:[#allocation8 + $0xa8] sm:$0xff]  ;;  %v4088_v2 = vld [vmem:[#allocation8 + $0xa0] sm:$0xff] }
 0xc60   :  { %3698 = vmatpush3.msra.mxu1 %v4047_v30  ;;  %2774 = vmatprep.subr.mxu0 %v4048_v5  ;;  %v4089_v49 = vld [vmem:[#allocation8 + $0x78] sm:$0xff]  ;;  %v4090_v19 = vld [vmem:[#allocation8 + $0x70] sm:$0xff]  ;;  %v4091_v17 = vld [vmem:[#allocation8 + $0x48] sm:$0xff] }
 0xc61   :  { %3699 = vmatprep.subr.mxu1 %v4049_v54  ;;  %v2520_v61 = vmax.f32 %v2514_v21, 0.0  ;;  %2775 = vmatpush1.msra.mxu0 %v4050_v59  ;;  %v6357_v58 = vmin.f32 %v2519_v1, 0.1  ;;  %v4092_v21 = vld [vmem:[#allocation8 + $0x40] sm:$0xff]  ;;  %v4093_v31 = vld [vmem:[#allocation8 + $0x18] sm:$0xff]  ;;  %v4094_v29 = vld [vmem:[#allocation8 + $0x10] sm:$0xff] }
 0xc62   :  { %3700 = vmatpush3.msra.mxu1 %v4051_v36  ;;  %2776 = vmatprep.subr.mxu0 %v4052_v4 }
 0xc63   :  { %3701 = vmatprep.subr.mxu1 %v4053_v47  ;;  %v6355_v41 = vmin.f32 %v2520_v61, 0.1  ;;  %2777 = vmatpush1.msra.mxu0 %v4054_v20 }
 0xc64   :  { %3702 = vmatpush3.msra.mxu1 %v4055_v16  ;;  %2778 = vmatprep.subr.mxu0 %v4056_v22 }
 0xc65   :  { %3703 = vmatprep.subr.mxu1 %v4057_v24  ;;  %2731 = vmatprep.mubr.f32.mxu1 %v6355_v41 }
 0xc66   :  { %3704 = vmatpush3.msra.mxu1 %v4058_v33  ;;  %2779 = vmatpush1.msra.mxu0 %v4059_v48 }
 0xc67   :  { %2732 = vmatmul.mubr.f32.vlgmr.msra.gmra.mxu1 %v6357_v58  ;;  %2821 = vmatprep.subr.mxu1 %v4060_v23 }
 0xc68   :  { %2822 = vmatpush1.msra.mxu1 %v4061_v27  ;;  %2780 = vmatprep.subr.mxu0 %v4062_v52 }
 0xc69   :  { %2823 = vmatprep.subr.mxu1 %v4063_v39  ;;  %2781 = vmatpush1.msra.mxu0 %v4064_v53 }
 0xc6a   :  { %2824 = vmatpush1.msra.mxu1 %v4065_v11  ;;  %2814 = vmatprep.mubr.f32.mxu0 %v6818_v42 }
 0xc6b   :  { %2825 = vmatprep.subr.mxu1 %v4066_v51  ;;  %2885 = vmatprep.mubr.f32.mxu1 %v6818_v42  ;;  %v4095_v51 = vld [vmem:[%s6415_s5] sm:$0x3]  ;;  %s4246_s5 = smov [#allocation10]  }
 0xc6c   :  { %2826 = vmatpush1.msra.mxu1 %v4067_v50  ;;  %2892 = vmatprep.subr.mxu0 %v4068_v62  ;;  %v4096_v50 = vld [vmem:[#allocation8 + $0x2f0] sm:$0xff]  ;;  %v4097_v62 = vld [vmem:[#allocation8 + $0x2c8] sm:$0xff]  ;;  %s3064_s24 = sshll.u32 %s4246_s5, 4  ;;  %s3065_s24 = int_to_ptr.vmem [resolvable:$true] %s3064_s24 }
 0xc6d   :  { %2827 = vmatprep.subr.mxu1 %v4069_v43  ;;  %v4098_v43 = vld [vmem:[#allocation8 + $0x2c0] sm:$0xff]  ;;  %s4207_s25 = scalar_lea.vmem %s3065_s24, 192  ;;  %p4212_p7 = scmp.lt.s32.totalorder %s3065_s24, %s3065_s24 }
 0xc6e   :  { %2828 = vmatpush1.msra.mxu1 %v4070_v3  ;;  %v4099_v3 = vld [vmem:[#allocation8 + $0x298] sm:$0xff]  ;;  %p4208_p6 = scmp.ne.s32.totalorder %s3065_s24, %s4207_s25  ;;  %p4213_p8 = scmp.lt.s32.totalorder %s4207_s25, %s4207_s25 }
 0xc6f   :  { %2829 = vmatprep.subr.mxu1 %v4071_v7  ;;  %v4100_v7 = vld [vmem:[#allocation8 + $0x290] sm:$0xff] }
 0xc70   :  { %2830 = vmatpush1.msra.mxu1 %v4072_v9  ;;  %v4101_v9 = vld [vmem:[#allocation8 + $0x268] sm:$0xff]  ;;  %p4214_p9 = por %p4213_p8, %p4212_p7 }
 0xc71   :  { %2831 = vmatprep.subr.mxu1 %v4073_v38  ;;  %v4102_v38 = vld [vmem:[#allocation8 + $0x260] sm:$0xff] }
 0xc72   :  { %2832 = vmatpush1.msra.mxu1 %v4074_v44  ;;  %v4103_v44 = vld [vmem:[#allocation8 + $0x238] sm:$0xff]  ;;  %p4215_p10 = pnand %p4214_p9, %p4208_p6 }
 0xc73   :  { %2833 = vmatprep.subr.mxu1 %v4075_v12  ;;  %v4104_v12 = vld [vmem:[#allocation8 + $0x230] sm:$0xff] }
 0xc74   :  { %2834 = vmatpush1.msra.mxu1 %v4076_v40  ;;  %v4105_v40 = vld [vmem:[#allocation8 + $0x208] sm:$0xff] }
 0xc75   :  { %2835 = vmatprep.subr.mxu1 %v4077_v26  ;;  %v4106_v26 = vld [vmem:[#allocation8 + $0x200] sm:$0xff] }
 0xc76   :  { %2836 = vmatpush1.msra.mxu1 %v4078_v32  ;;  %v4107_v32 = vld [vmem:[#allocation8 + $0x1d8] sm:$0xff] }
 0xc77   :  { %2837 = vmatprep.subr.mxu1 %v4079_v56  ;;  %v4108_v56 = vld [vmem:[#allocation8 + $0x1d0] sm:$0xff] }
 0xc78   :  { %2838 = vmatpush1.msra.mxu1 %v4080_v13  ;;  %v4109_v13 = vld [vmem:[#allocation8 + $0x1a8] sm:$0xff] }
 0xc79   :  { %2839 = vmatprep.subr.mxu1 %v4081_v6  ;;  %v4110_v6 = vld [vmem:[#allocation8 + $0x1a0] sm:$0xff] }
 0xc7a   :  { %2840 = vmatpush1.msra.mxu1 %v4082_v28  ;;  %v4111_v28 = vld [vmem:[#allocation8 + $0x178] sm:$0xff] }
 0xc7b   :  { %2841 = vmatprep.subr.mxu1 %v4083_v10  ;;  %v4112_v10 = vld [vmem:[#allocation8 + $0x170] sm:$0xff] }
 0xc7c   :  { %2842 = vmatpush1.msra.mxu1 %v4084_v18  ;;  %v4113_v18 = vld [vmem:[#allocation8 + $0x148] sm:$0xff] }
 0xc7d   :  { %2843 = vmatprep.subr.mxu1 %v4085_v34  ;;  %v4114_v34 = vld [vmem:[#allocation8 + $0x140] sm:$0xff] }
 0xc7e   :  { %2844 = vmatpush1.msra.mxu1 %v4086_v35  ;;  %v4115_v35 = vld [vmem:[#allocation8 + $0x118] sm:$0xff] }
 0xc7f   :  { %2845 = vmatprep.subr.mxu1 %v4087_v37  ;;  %v4116_v37 = vld [vmem:[#allocation8 + $0x110] sm:$0xff] }
 0xc80   :  { %2846 = vmatpush1.msra.mxu1 %v4088_v2  ;;  %v4117_v2 = vld [vmem:[#allocation8 + $0xe8] sm:$0xff] }
 0xc81   :  { %2847 = vmatprep.subr.mxu1 %v4089_v49  ;;  %v4118_v49 = vld [vmem:[#allocation8 + $0xe0] sm:$0xff] }
 0xc82   :  { %2848 = vmatpush1.msra.mxu1 %v4090_v19  ;;  %v4119_v19 = vld [vmem:[#allocation8 + $0xb8] sm:$0xff] }
 0xc83   :  { %2849 = vmatprep.subr.mxu1 %v4091_v17  ;;  %v4120_v17 = vld [vmem:[#allocation8 + $0xb0] sm:$0xff] }
 0xc84   :  { %2850 = vmatpush1.msra.mxu1 %v4092_v21  ;;  %v4121_v21 = vld [vmem:[#allocation8 + $0x88] sm:$0xff] }
 0xc85   :  { %2851 = vmatprep.subr.mxu1 %v4093_v31  ;;  %v4122_v31 = vld [vmem:[#allocation8 + $0x80] sm:$0xff] }
 0xc86   :  { %2852 = vmatpush1.msra.mxu1 %v4094_v29  ;;  %v4123_v29 = vld [vmem:[#allocation8 + $0x58] sm:$0xff] }
 0xd07   :  { %v3635_v30 = vpop.f32.mrf.mxu1 }
 0xd08   :  { %v3670_v5 = vpop.f32.mrf.mxu0 }
 0xd09   :  { %v3636_v1 = vpop.f32.mrf.mxu1 }
 0xd0a   :  { %v3671_v54 = vpop.f32.mrf.mxu0  ;;  %v3637_v61 = vadd.f32 %v3636_v1, %v3635_v30  ;;  %v4124_v30 = vld [vmem:[#allocation8 + $0x50] sm:$0xff]  ;;  %v4126_v1 = vld [vmem:[#allocation8 + $0x20] sm:$0xff] }
 0xd0b   :  { %v3672_v59 = vadd.f32 %v3671_v54, %v3670_v5  ;;  %v4125_v5 = vld [vmem:[#allocation8 + $0x28] sm:$0xff] }
 0xd0d   :  { %v2664_v47 = vadd.f32 %v3672_v59, %v3637_v61 }
 0xd27   :  { %v3705_v36 = vpop.f32.mrf.mxu1 }
 0xd29   :  { %v3706_v4 = vpop.f32.mrf.mxu1 }
 0xd2a   :  { %v3707_v20 = vadd.f32 %v3706_v4, %v3705_v36 }
 0xd2c   :  { %v2734_v16 = vadd.f32 %v3707_v20, %v2664_v47 }
 0xd2e   :  { %v2737_v22 = vadd.f32 %v2734_v16, %v6949_v25 }
 0xd30   :  { %v2738_v24 = vsel %vm770_vm7, %v2737_v22, -inf }
 0xd31   :  { %2739 = vmax.xlane.f32.xlu0 %v2738_v24 }
 0xdba   :  { %v2740_v33 = vpop.xlane.xlu0 %2739 }
 0xdbb   :  { %v2741_v48 = vsub.f32 %v2737_v22, %v2740_v33 }
 0xdbd   :  { %v2742_v23 = vmul.f32 1.442695, %v2741_v48 }
 0xdbf   :  { %3737 = vpow2.f32 %v2742_v23 }
 0xdcc   :  { %v3738_v27 = vpop.eup %3737 }
 0xdcd   :  { %v2744_v52 = vsel %vm770_vm7, %v3738_v27, 0.0 }
 0xdce   :  { %2745 = vadd.xlane.f32.xlu1 %v2744_v52 }
 0xe57   :  { %v2746_v39 = vpop.xlane.xlu1 %2745 }
 0xe58   :  { %3739 = vrcp.f32 %v2746_v39 }
 0xe65   :  { %v3740_v53 = vpop.eup %3739 }
 0xe66   :  { %v2748_v11 = vmul.f32 %v3740_v53, %v3738_v27 }
 0xe68   :  { %v6369_v25 = vsub.f32 %v2748_v11, %v4095_v51 }
 0xe6a   :  { %2815 = vmatmul.mubr.f32.vlgmr.msra.gmra.mxu0 %v6369_v25  ;;  %2886 = vmatmul.mubr.f32.vlgmr.msra.gmra.mxu1 %v6369_v25 }
 0xe6b   :  { %2893 = vmatpush1.msra.mxu0 %v4096_v50  ;;  %2956 = vmatprep.mubr.f32.mxu0 %v6818_v42 }
 0xe6c   :  { %2894 = vmatprep.subr.mxu0 %v4097_v62 }
 0xe6d   :  { %2895 = vmatpush1.msra.mxu0 %v4098_v43 }
 0xe6e   :  { %2896 = vmatprep.subr.mxu0 %v4099_v3 }
 0xe6f   :  { %2897 = vmatpush1.msra.mxu0 %v4100_v7 }
 0xe70   :  { %2898 = vmatprep.subr.mxu0 %v4101_v9 }
 0xe71   :  { %2899 = vmatpush1.msra.mxu0 %v4102_v38 }
 0xe72   :  { %2900 = vmatprep.subr.mxu0 %v4103_v44 }
 0xe73   :  { %2901 = vmatpush1.msra.mxu0 %v4104_v12 }
 0xe74   :  { %2902 = vmatprep.subr.mxu0 %v4105_v40 }
 0xe75   :  { %2903 = vmatpush1.msra.mxu0 %v4106_v26  ;;  %v7286_v26 = vld [vmem:[#allocation42_spill] sm:$0xff] }
 0xe76   :  { %2904 = vmatprep.subr.mxu0 %v4107_v32 }
 0xe77   :  { %2905 = vmatpush1.msra.mxu0 %v4108_v56 }
 0xe78   :  { %2906 = vmatprep.subr.mxu0 %v4109_v13  ;;  %v7288_v13 = vld [vmem:[#allocation44_spill] sm:$0xff] }
 0xe79   :  { %2907 = vmatpush1.msra.mxu0 %v4110_v6 }
 0xe7a   :  { %2908 = vmatprep.subr.mxu0 %v4111_v28  ;;  %v7289_v28 = vld [vmem:[#allocation43_spill] sm:$0xff] }
 0xe7b   :  { %2909 = vmatpush1.msra.mxu0 %v4112_v10 }
 0xe7c   :  { %2910 = vmatprep.subr.mxu0 %v4113_v18 }
 0xe7d   :  { %2911 = vmatpush1.msra.mxu0 %v4114_v34  ;;  %v7290_v34 = vld [vmem:[#allocation24_spill] sm:$0xff] }
 0xe7e   :  { %2912 = vmatprep.subr.mxu0 %v4115_v35 }
 0xe7f   :  { %2913 = vmatpush1.msra.mxu0 %v4116_v37 }
 0xe80   :  { %2914 = vmatprep.subr.mxu0 %v4117_v2 }
 0xe81   :  { %2915 = vmatpush1.msra.mxu0 %v4118_v49 }
 0xe82   :  { %2916 = vmatprep.subr.mxu0 %v4119_v19 }
 0xe83   :  { %2917 = vmatpush1.msra.mxu0 %v4120_v17 }
 0xe84   :  { %2918 = vmatprep.subr.mxu0 %v4121_v21 }
 0xe85   :  { %2919 = vmatpush1.msra.mxu0 %v4122_v31 }
 0xe86   :  { %2920 = vmatprep.subr.mxu0 %v4123_v29 }
 0xe87   :  { %2921 = vmatpush1.msra.mxu0 %v4124_v30 }
 0xe88   :  { %2922 = vmatprep.subr.mxu0 %v4125_v5 }
 0xe89   :  { %2923 = vmatpush1.msra.mxu0 %v4126_v1 }
 0xe8a   :  { %2957 = vmatmul.mubr.f32.vlgmr.msra.gmra.mxu0 %v6369_v25 }
 0xf2a   :  { %v2816_v54 = vpop.f32.mrf.mxu0  ;;  %v2887_v61 = vpop.f32.mrf.mxu1 }
 0xf2b   :  { %v2963_v59 = vmul.f32 %v2816_v54, %v7283_v8  ;;  %v2965_v36 = vmul.f32 %v2887_v61, %v7284_v0 }
 0xf2c   :  { %v2818_v4 = vpop.f32.mrf.mxu0  ;;  %v2889_v47 = vpop.f32.mrf.mxu1 }
 0xf2d   :  { %vm2969_vm7 = vcmp.gt.f32.partialorder %v2963_v59, 0.0  ;;  %vm2975_vm11 = vcmp.lt.f32.partialorder %v2963_v59, 0.0  ;;  %vm2971_vm12 = vcmp.gt.f32.partialorder %v2965_v36, 0.0  ;;  %vm2977_vm13 = vcmp.lt.f32.partialorder %v2965_v36, 0.0  ;;  %v7291_v36 = vld [vmem:[#allocation54_spill] sm:$0xff] }
 0xf2e   :  { %v2981_v20 = vsel %vm2975_vm11, -0.05, %v6818_v42  ;;  %v2983_v16 = vsel %vm2977_vm13, -0.05, %v6818_v42  ;;  %v2964_v22 = vmul.f32 %v2818_v4, %v7285_v55  ;;  %v2966_v24 = vmul.f32 %v2889_v47, %v6895_v60  ;;  %v7292_v47 = vld [vmem:[#allocation53_spill] sm:$0xff] }
 0xf2f   :  { %v2987_v33 = vsel %vm2969_vm7, 0.05, %v2981_v20  ;;  %v2989_v48 = vsel %vm2971_vm12, 0.05, %v2983_v16 }
 0xf30   :  { %v2993_v23 = vadd.f32 %v2987_v33, %v6333_v63  ;;  %v2995_v27 = vadd.f32 %v2989_v48, %v6337_v45  ;;  %vm2970_vm14 = vcmp.gt.f32.partialorder %v2964_v22, 0.0  ;;  %vm2976_vm15 = vcmp.lt.f32.partialorder %v2964_v22, 0.0 }
 0xf31   :  { %v2982_v52 = vsel %vm2976_vm15, -0.05, %v6818_v42  ;;  %vm2972_vm0 = vcmp.gt.f32.partialorder %v2966_v24, 0.0  ;;  %vm2978_vm1 = vcmp.lt.f32.partialorder %v2966_v24, 0.0 }
 0xf32   :  { %v2999_v39 = vmax.f32 %v2993_v23, 0.0  ;;  %v3001_v53 = vmax.f32 %v2995_v27, 0.0  ;;  %v2988_v11 = vsel %vm2970_vm14, 0.05, %v2982_v52  ;;  %v2984_v51 = vsel %vm2978_vm1, -0.05, %v6818_v42 }
 0xf33   :  { %v2994_v25 = vadd.f32 %v2988_v11, %v6331_v57  ;;  %v2990_v50 = vsel %vm2972_vm0, 0.05, %v2984_v51  ;;  %v7287_v57 = vld [vmem:[#allocation41_spill] sm:$0xff] }
 0xf34   :  { %v3005_v62 = vmin.f32 %v2999_v39, 0.1  ;;  %v3007_v43 = vmin.f32 %v3001_v53, 0.1  ;;  %v2996_v63 = vadd.f32 %v2990_v50, %v6335_v14 }
 0xf35   :  { %v3000_v3 = vmax.f32 %v2994_v25, 0.0 }
 0xf36   :  { %v3002_v45 = vmax.f32 %v2996_v63, 0.0  ;;  %v3011_v7 = vmul.f32 %v3005_v62, %v7283_v8  ;;  %v3013_v38 = vmul.f32 %v3007_v43, %v7284_v0 }
 0xf37   :  { %v3006_v9 = vmin.f32 %v3000_v3, 0.1 }
 0xf38   :  { %v3008_v44 = vmin.f32 %v3002_v45, 0.1  ;;  %v3017_v32 = vadd.f32 %v3011_v7, %v7286_v26  ;;  %v3019_v6 = vadd.f32 %v3013_v38, %v7288_v13 }
 0xf39   :  { %v3012_v12 = vmul.f32 %v3006_v9, %v7285_v55 }
 0xf3a   :  { %v3014_v40 = vmul.f32 %v3008_v44, %v6895_v60 }
 0xf3b   :  { %v3018_v56 = vadd.f32 %v3012_v12, %v7287_v57 }
 0xf3c   :  { %v3020_v14 = vadd.f32 %v3014_v40, %v7289_v28 }
 0xf3d   :  { %v3029_v10 = vcombine.low %v3017_v32, %v3018_v56 }
 0xf3e   :  { %v3030_v18 = vcombine.low %v3019_v6, %v3020_v14 }
 0xf3f   :  { %v3037_v8 = vrot.slane %v3029_v10, %v7290_v34 }
 0xf40   :  { %v3044_v35 = vrot.slane %v3030_v18, %v7290_v34 }
 0xf42   :  { %v3045_v0 = vcombine.low %v3037_v8, %v3044_v35 }
 0xf44   :  { %3056 = vst [vmem:[#allocation10] sm:$0xff] %v3045_v0 }
 0xf4a   :  { %v2958_v37 = vpop.f32.mrf.mxu0 }
 0xf4b   :  { %v2967_v55 = vmul.f32 %v2958_v37, %v7161_v46 }
 0xf4c   :  { %v2960_v60 = vpop.f32.mrf.mxu0 }
 0xf4d   :  { %vm2973_vm2 = vcmp.gt.f32.partialorder %v2967_v55, 0.0  ;;  %vm2979_vm3 = vcmp.lt.f32.partialorder %v2967_v55, 0.0  ;;  %v2968_v2 = vmul.f32 %v2960_v60, %v7166_v15 }
 0xf4e   :  { %v2985_v49 = vsel %vm2979_vm3, -0.05, %v6818_v42 }
 0xf4f   :  { %v2991_v19 = vsel %vm2973_vm2, 0.05, %v2985_v49  ;;  %vm2974_vm4 = vcmp.gt.f32.partialorder %v2968_v2, 0.0  ;;  %vm2980_vm5 = vcmp.lt.f32.partialorder %v2968_v2, 0.0 }
 0xf50   :  { %v2997_v17 = vadd.f32 %v2991_v19, %v6357_v58  ;;  %v2986_v21 = vsel %vm2980_vm5, -0.05, %v6818_v42 }
 0xf51   :  { %v2992_v31 = vsel %vm2974_vm4, 0.05, %v2986_v21 }
 0xf52   :  { %v3003_v29 = vmax.f32 %v2997_v17, 0.0  ;;  %v2998_v30 = vadd.f32 %v2992_v31, %v6355_v41 }
 0xf54   :  { %v3009_v5 = vmin.f32 %v3003_v29, 0.1  ;;  %v3004_v1 = vmax.f32 %v2998_v30, 0.0 }
 0xf56   :  { %v3015_v54 = vmul.f32 %v3009_v5, %v7161_v46  ;;  %v3010_v61 = vmin.f32 %v3004_v1, 0.1 }
 0xf58   :  { %v3016_v59 = vmul.f32 %v3010_v61, %v7166_v15  ;;  %v3021_v4 = vadd.f32 %v3015_v54, %v7291_v36 }
 0xf5a   :  { %v3022_v20 = vadd.f32 %v3016_v59, %v7292_v47 }
 0xf5c   :  { %v3046_v58 = vcombine.low %v3021_v4, %v3022_v20 }
 0xf5e   :  { %3077 = vst.sshfl [vmem:[#allocation10 + $0x8] sm:$0x33 pattern:$0x76325410] %v3046_v58 }
 0xf5f   :  { %4218 = shalt.err (!%p4215_p10)
}
 0xf60   :  { %3067 = dma.vmem_to_hbm [thread:$0]  %s3065_s24, 192, %s6416_s6, [#allocation4]  }
 0xf61   :  { %4233 = dma.done.wait [#allocation4], 192  }
 0xf62   :  { %4234 = vsyncadd [#allocation4], 4294967104 }
 0xf63   :  { %3071 = vsyncpa [#allocation3], 1 }
 0xf64   :  { %3072 = vsyncpa [#allocation6], 1 }
 0xf65   :  { %3073 = vsyncpa [#allocation9], 1 }
 0xf66   :  { %3074 = vsyncpa [#allocation4], 1 }

</bundles_post_ra>
